<compile_context>
chip_gen: v5e
topology: v5e:2x2
jax: 0.10.0
libtpu: 0.0.40
codegen_flags: <defaults>
</compile_context>

<pallas_src>
import functools

import jax
import jax.numpy as jnp
import numpy as np
from jax import lax
from jax.experimental import pallas as pl
from jax.experimental.pallas import tpu as pltpu


# ----------------------------- configuration -------------------------------
DIM = 32                  # model dim
EXPANSION = 2
INNER = DIM * EXPANSION   # 64
KERNEL_SIZE = 31
PAD_L = KERNEL_SIZE // 2                                   # 15
PAD_R = KERNEL_SIZE // 2 - (KERNEL_SIZE + 1) % 2           # 15  (calc_same_padding)
HALO = 16                 # sublane-aligned left time halo (>= PAD_L)
LN_EPS = 1e-5             # torch.nn.LayerNorm default eps
CLN_EPS = 1e-6            # ChanLayerNorm eps for float32 inputs (clamp semantics)

_HI = lax.Precision.HIGHEST


def _round_up(x, m):
    return ((x + m - 1) // m) * m


# ------------------------------ Pallas kernel ------------------------------
def _conformer_kernel(n, halo, x_ref, ln_g_ref, ln_b_ref, m_ln_ref,
                      w1a_ref, w1b_ref, b1a_ref, b1b_ref,
                      dw_w_ref, dw_b_ref, cln_g_ref, m_cln_ref,
                      w2_ref, b2_ref, o_ref):
    # x: (T, GROUP*DIM) — GROUP batch elements packed along lanes, time padded with
    # a zero halo of `halo` rows on the left (and enough zero rows on the right).
    x = x_ref[0]

    # ---- nn.LayerNorm(dim): per-batch-group mean/var over the 32 feature lanes
    # via a block-diagonal averaging matmul (lane-group reduction on the MXU). ----
    m_ln = m_ln_ref[...]
    mean = jnp.dot(x, m_ln, preferred_element_type=jnp.float32, precision=_HI)
    xc = x - mean
    var = jnp.dot(xc * xc, m_ln, preferred_element_type=jnp.float32, precision=_HI)
    y = xc * lax.rsqrt(var + LN_EPS) * ln_g_ref[...] + ln_b_ref[...]

    # ---- pointwise Conv1d(dim -> 2*inner) split into GLU value / gate halves ----
    a = jnp.dot(y, w1a_ref[...], preferred_element_type=jnp.float32, precision=_HI) + b1a_ref[...]
    g = jnp.dot(y, w1b_ref[...], preferred_element_type=jnp.float32, precision=_HI) + b1b_ref[...]
    glu = a * jax.nn.sigmoid(g)                            # (T, GROUP*INNER)

    # Zero the time-halo rows (the wrapper zero-padded x there, but the LayerNorm
    # bias / conv bias made them nonzero again) so the depthwise conv sees the
    # same zero padding as F.pad in the reference module.
    rows = lax.broadcasted_iota(jnp.int32, glu.shape, 0)
    glu = jnp.where((rows >= halo) & (rows < halo + n), glu, 0.0)

    # ---- depthwise Conv1d(kernel_size=31, groups=inner), "same" padding ---------
    # Kept entirely in registers: 31 static sublane-shifted value slices of glu,
    # tap-weight broadcasts hoisted out of the accumulation chain.
    ci = dw_w_ref.shape[1]
    w_taps = dw_w_ref[...]                                 # (K, GROUP*INNER)
    wb = [jnp.broadcast_to(w_taps[k:k + 1, :], (n, ci)) for k in range(KERNEL_SIZE)]
    base = halo - PAD_L                                    # = 1
    acc = jnp.broadcast_to(dw_b_ref[...], (n, ci))
    for k in range(KERNEL_SIZE):
        acc = acc + glu[base + k:base + k + n, :] * wb[k]

    # ---- Swish -----------------------------------------------------------------
    s = acc * jax.nn.sigmoid(acc)

    # ---- ChanLayerNorm over the inner channels of each packed batch group -------
    # (var.clamp(min=eps).rsqrt() * gamma, no beta — matches the PyTorch module.)
    m_cln = m_cln_ref[...]
    cmean = jnp.dot(s, m_cln, preferred_element_type=jnp.float32, precision=_HI)
    sc = s - cmean
    cvar = jnp.dot(sc * sc, m_cln, preferred_element_type=jnp.float32, precision=_HI)
    z = sc * lax.rsqrt(jnp.maximum(cvar, CLN_EPS)) * cln_g_ref[...]

    # ---- pointwise Conv1d(inner -> dim); Dropout(0.0) is identity ---------------
    out = jnp.dot(z, w2_ref[...], preferred_element_type=jnp.float32, precision=_HI) + b2_ref[...]
    o_ref[0] = out


@jax.jit
def conformer_conv_module(x, params):
    """x: (B, N, DIM) float32  ->  (B, N, DIM) float32"""
    B, N, D = x.shape
    assert D == DIM
    x = x.astype(jnp.float32)

    # --- choose how many batch elements to pack along the lane axis ---
    GROUP = 4 if B % 4 == 0 else 2
    B_pad = _round_up(B, GROUP)
    NG = B_pad // GROUP
    CD = GROUP * D            # packed width of the outer (dim) stages
    CI = GROUP * INNER        # packed width of the inner (2*dim) stages
    T = _round_up(N + PAD_L + HALO, 8)   # padded time length (>= N + 31)

    # --- wrapper-side layout plumbing: (B, N, D) -> (NG, T, GROUP*D), zero halo ---
    xb = x if B_pad == B else jnp.zeros((B_pad, N, D), jnp.float32).at[:B].set(x)
    xg = xb.reshape(NG, GROUP, N, D).transpose(0, 2, 1, 3).reshape(NG, N, CD)
    xp = jnp.zeros((NG, T, CD), jnp.float32).at[:, HALO:HALO + N, :].set(xg)

    # --- pack the parameters for the lane-packed layout ---
    eye_g = jnp.eye(GROUP, dtype=jnp.float32)
    tile = lambda a: jnp.tile(a, (1, GROUP))
    w1a_bd = jnp.kron(eye_g, params["w1"][:, :INNER])          # (CD, CI)
    w1b_bd = jnp.kron(eye_g, params["w1"][:, INNER:])          # (CD, CI)
    w2_bd = jnp.kron(eye_g, params["w2"])                      # (CI, CD)
    m_ln = jnp.kron(eye_g, jnp.full((D, D), 1.0 / D, jnp.float32))        # (CD, CD)
    m_cln = jnp.kron(eye_g, jnp.full((INNER, INNER), 1.0 / INNER, jnp.float32))  # (CI, CI)
    ln_g = tile(params["ln_g"]); ln_b = tile(params["ln_b"])
    b1a = tile(params["b1"][:, :INNER]); b1b = tile(params["b1"][:, INNER:])
    dw_w = tile(params["dw_w"]); dw_b = tile(params["dw_b"])
    cln_g = tile(params["cln_g"]); b2 = tile(params["b2"])

    const = lambda shape: pl.BlockSpec(shape, lambda i: (0, 0))
    kernel = functools.partial(_conformer_kernel, N, HALO)

    out_packed = pl.pallas_call(
        kernel,
        out_shape=jax.ShapeDtypeStruct((NG, N, CD), jnp.float32),
        grid_spec=pltpu.PrefetchScalarGridSpec(
            num_scalar_prefetch=0,
            grid=(NG,),
            in_specs=[
                pl.BlockSpec((1, T, CD), lambda i: (i, 0, 0)),   # packed, time-padded x
                const((1, CD)),                                   # ln gamma (tiled)
                const((1, CD)),                                   # ln beta  (tiled)
                const((CD, CD)),                                  # block-diag LN averaging
                const((CD, CI)),                                  # w1 (GLU value half, block-diag)
                const((CD, CI)),                                  # w1 (GLU gate half, block-diag)
                const((1, CI)),                                   # b1 value half (tiled)
                const((1, CI)),                                   # b1 gate half  (tiled)
                const((KERNEL_SIZE, CI)),                         # depthwise weights (tiled)
                const((1, CI)),                                   # depthwise bias (tiled)
                const((1, CI)),                                   # chan-LN gamma (tiled)
                const((CI, CI)),                                  # block-diag chan-LN averaging
                const((CI, CD)),                                  # w2 (block-diag)
                const((1, CD)),                                   # b2 (tiled)
            ],
            out_specs=pl.BlockSpec((1, N, CD), lambda i: (i, 0, 0)),
        ),
        compiler_params=pltpu.CompilerParams(dimension_semantics=("parallel",)),
    )(xp, ln_g, ln_b, m_ln, w1a_bd, w1b_bd, b1a, b1b,
      dw_w, dw_b, cln_g, m_cln, w2_bd, b2)

    out = out_packed.reshape(NG, N, GROUP, D).transpose(0, 2, 1, 3).reshape(B_pad, N, D)
    return out[:B]


# ------------------------- pure-JAX reference -------------------------------
def conformer_conv_reference(x, params):
    mean = jnp.mean(x, axis=-1, keepdims=True)
    var = jnp.mean((x - mean) ** 2, axis=-1, keepdims=True)
    y = (x - mean) * lax.rsqrt(var + LN_EPS) * params["ln_g"][0] + params["ln_b"][0]

    h = jnp.einsum("bnd,dc->bnc", y, params["w1"], precision="highest") + params["b1"][0]
    glu = h[..., :INNER] * jax.nn.sigmoid(h[..., INNER:])

    xp = jnp.pad(glu, ((0, 0), (PAD_L, PAD_R), (0, 0)))
    N = x.shape[1]
    acc = jnp.zeros_like(glu)
    for k in range(KERNEL_SIZE):
        acc = acc + xp[:, k:k + N, :] * params["dw_w"][k][None, None, :]
    acc = acc + params["dw_b"][0]

    s = acc * jax.nn.sigmoid(acc)
    cmean = jnp.mean(s, axis=-1, keepdims=True)
    cvar = jnp.mean((s - cmean) ** 2, axis=-1, keepdims=True)
    z = (s - cmean) * lax.rsqrt(jnp.maximum(cvar, CLN_EPS)) * params["cln_g"][0]

    return jnp.einsum("bnc,cd->bnd", z, params["w2"], precision="highest") + params["b2"][0]


# ------------------------------- main ---------------------------------------
if __name__ == "__main__":
    key = jax.random.PRNGKey(0)
    keys = jax.random.split(key, 11)

    B, N = 2, 16
    x = jax.random.normal(keys[0], (B, N, DIM), dtype=jnp.float32)

    params = {
        "ln_g": jnp.ones((1, DIM), jnp.float32),
        "ln_b": jnp.zeros((1, DIM), jnp.float32),
        "w1": 0.05 * jax.random.normal(keys[1], (DIM, 2 * INNER), jnp.float32),
        "b1": 0.01 * jax.random.normal(keys[2], (1, 2 * INNER), jnp.float32),
        "dw_w": 0.05 * jax.random.normal(keys[3], (KERNEL_SIZE, INNER), jnp.float32),
        "dw_b": 0.01 * jax.random.normal(keys[4], (1, INNER), jnp.float32),
        "cln_g": jnp.ones((1, INNER), jnp.float32),
        "w2": 0.05 * jax.random.normal(keys[5], (INNER, DIM), jnp.float32),
        "b2": 0.01 * jax.random.normal(keys[6], (1, DIM), jnp.float32),
    }

    out = conformer_conv_module(x, params)
    out = jax.block_until_ready(out)

    ref = jax.block_until_ready(conformer_conv_reference(x, params))
    np.testing.assert_allclose(np.asarray(out), np.asarray(ref), rtol=1e-3, atol=1e-3)

    print("KERNEL_OK")
</pallas_src>

<mosaic_0001>
module attributes {stable_mosaic.version = 11 : i64} {
  func.func @_conformer_kernel(%arg0: i32, %arg1: memref<1x48x64xf32, #tpu.memory_space<vmem>>, %arg2: memref<1x64xf32, #tpu.memory_space<vmem>>, %arg3: memref<1x64xf32, #tpu.memory_space<vmem>>, %arg4: memref<64x64xf32, #tpu.memory_space<vmem>>, %arg5: memref<64x128xf32, #tpu.memory_space<vmem>>, %arg6: memref<64x128xf32, #tpu.memory_space<vmem>>, %arg7: memref<1x128xf32, #tpu.memory_space<vmem>>, %arg8: memref<1x128xf32, #tpu.memory_space<vmem>>, %arg9: memref<31x128xf32, #tpu.memory_space<vmem>>, %arg10: memref<1x128xf32, #tpu.memory_space<vmem>>, %arg11: memref<1x128xf32, #tpu.memory_space<vmem>>, %arg12: memref<128x128xf32, #tpu.memory_space<vmem>>, %arg13: memref<128x64xf32, #tpu.memory_space<vmem>>, %arg14: memref<1x64xf32, #tpu.memory_space<vmem>>, %arg15: memref<1x16x64xf32, #tpu.memory_space<vmem>>) attributes {dimension_semantics = [#tpu.dimension_semantics<parallel>], iteration_bounds = array<i64: 1>, scalar_prefetch = 0 : i64, scratch_operands = 0 : i64, tpu.core_type = #tpu.core_type<tc>, window_params = [{transform_indices = @transform_0, window_bounds = array<i64: 1, 48, 64>}, {pipeline_mode = #tpu.pipeline_mode<synchronous>, transform_indices = @transform_1, window_bounds = array<i64: 1, 64>}, {pipeline_mode = #tpu.pipeline_mode<synchronous>, transform_indices = @transform_2, window_bounds = array<i64: 1, 64>}, {pipeline_mode = #tpu.pipeline_mode<synchronous>, transform_indices = @transform_3, window_bounds = array<i64: 64, 64>}, {pipeline_mode = #tpu.pipeline_mode<synchronous>, transform_indices = @transform_4, window_bounds = array<i64: 64, 128>}, {pipeline_mode = #tpu.pipeline_mode<synchronous>, transform_indices = @transform_5, window_bounds = array<i64: 64, 128>}, {pipeline_mode = #tpu.pipeline_mode<synchronous>, transform_indices = @transform_6, window_bounds = array<i64: 1, 128>}, {pipeline_mode = #tpu.pipeline_mode<synchronous>, transform_indices = @transform_7, window_bounds = array<i64: 1, 128>}, {pipeline_mode = #tpu.pipeline_mode<synchronous>, transform_indices = @transform_8, window_bounds = array<i64: 31, 128>}, {pipeline_mode = #tpu.pipeline_mode<synchronous>, transform_indices = @transform_9, window_bounds = array<i64: 1, 128>}, {pipeline_mode = #tpu.pipeline_mode<synchronous>, transform_indices = @transform_10, window_bounds = array<i64: 1, 128>}, {pipeline_mode = #tpu.pipeline_mode<synchronous>, transform_indices = @transform_11, window_bounds = array<i64: 128, 128>}, {pipeline_mode = #tpu.pipeline_mode<synchronous>, transform_indices = @transform_12, window_bounds = array<i64: 128, 64>}, {pipeline_mode = #tpu.pipeline_mode<synchronous>, transform_indices = @transform_13, window_bounds = array<i64: 1, 64>}, {transform_indices = @transform_14, window_bounds = array<i64: 1, 16, 64>}]} {
    %c0 = arith.constant 0 : index
    %c0_0 = arith.constant 0 : index
    %c0_1 = arith.constant 0 : index
    %0 = vector.load %arg1[%c0, %c0_0, %c0_1] : memref<1x48x64xf32, #tpu.memory_space<vmem>>, vector<1x48x64xf32>
    %1 = vector.shape_cast %0 : vector<1x48x64xf32> to vector<48x64xf32>
    %c0_2 = arith.constant 0 : index
    %c0_3 = arith.constant 0 : index
    %2 = vector.load %arg4[%c0_2, %c0_3] : memref<64x64xf32, #tpu.memory_space<vmem>>, vector<64x64xf32>
    %cst = arith.constant dense<0.000000e+00> : vector<48x64xf32>
    %3 = tpu.matmul %1, %2, %cst {dimension_numbers = #tpu.dot_dimension_numbers<[1], [0], [0], [1], [0, 0, 1, 1], [], []>, precision = #tpu.contract_precision<fp32>} : vector<48x64xf32>, vector<64x64xf32>, vector<48x64xf32> -> vector<48x64xf32>
    %4 = arith.subf %1, %3 : vector<48x64xf32>
    %5 = arith.mulf %4, %4 : vector<48x64xf32>
    %cst_4 = arith.constant dense<0.000000e+00> : vector<48x64xf32>
    %6 = tpu.matmul %5, %2, %cst_4 {dimension_numbers = #tpu.dot_dimension_numbers<[1], [0], [0], [1], [0, 0, 1, 1], [], []>, precision = #tpu.contract_precision<fp32>} : vector<48x64xf32>, vector<64x64xf32>, vector<48x64xf32> -> vector<48x64xf32>
    %cst_5 = arith.constant 9.99999974E-6 : f32
    %7 = vector.broadcast %cst_5 : f32 to vector<48x64xf32>
    %8 = arith.addf %6, %7 : vector<48x64xf32>
    %9 = math.rsqrt %8 : vector<48x64xf32>
    %10 = arith.mulf %4, %9 : vector<48x64xf32>
    %c0_6 = arith.constant 0 : index
    %c0_7 = arith.constant 0 : index
    %11 = vector.load %arg2[%c0_6, %c0_7] : memref<1x64xf32, #tpu.memory_space<vmem>>, vector<1x64xf32>
    %12 = vector.broadcast %11 : vector<1x64xf32> to vector<48x64xf32>
    %13 = arith.mulf %10, %12 : vector<48x64xf32>
    %c0_8 = arith.constant 0 : index
    %c0_9 = arith.constant 0 : index
    %14 = vector.load %arg3[%c0_8, %c0_9] : memref<1x64xf32, #tpu.memory_space<vmem>>, vector<1x64xf32>
    %15 = vector.broadcast %14 : vector<1x64xf32> to vector<48x64xf32>
    %16 = arith.addf %13, %15 : vector<48x64xf32>
    %c0_10 = arith.constant 0 : index
    %c0_11 = arith.constant 0 : index
    %17 = vector.load %arg5[%c0_10, %c0_11] : memref<64x128xf32, #tpu.memory_space<vmem>>, vector<64x128xf32>
    %cst_12 = arith.constant dense<0.000000e+00> : vector<48x128xf32>
    %18 = tpu.matmul %16, %17, %cst_12 {dimension_numbers = #tpu.dot_dimension_numbers<[1], [0], [0], [1], [0, 0, 1, 1], [], []>, precision = #tpu.contract_precision<fp32>} : vector<48x64xf32>, vector<64x128xf32>, vector<48x128xf32> -> vector<48x128xf32>
    %c0_13 = arith.constant 0 : index
    %c0_14 = arith.constant 0 : index
    %19 = vector.load %arg7[%c0_13, %c0_14] : memref<1x128xf32, #tpu.memory_space<vmem>>, vector<1x128xf32>
    %20 = vector.broadcast %19 : vector<1x128xf32> to vector<48x128xf32>
    %21 = arith.addf %18, %20 : vector<48x128xf32>
    %c0_15 = arith.constant 0 : index
    %c0_16 = arith.constant 0 : index
    %22 = vector.load %arg6[%c0_15, %c0_16] : memref<64x128xf32, #tpu.memory_space<vmem>>, vector<64x128xf32>
    %cst_17 = arith.constant dense<0.000000e+00> : vector<48x128xf32>
    %23 = tpu.matmul %16, %22, %cst_17 {dimension_numbers = #tpu.dot_dimension_numbers<[1], [0], [0], [1], [0, 0, 1, 1], [], []>, precision = #tpu.contract_precision<fp32>} : vector<48x64xf32>, vector<64x128xf32>, vector<48x128xf32> -> vector<48x128xf32>
    %c0_18 = arith.constant 0 : index
    %c0_19 = arith.constant 0 : index
    %24 = vector.load %arg8[%c0_18, %c0_19] : memref<1x128xf32, #tpu.memory_space<vmem>>, vector<1x128xf32>
    %25 = vector.broadcast %24 : vector<1x128xf32> to vector<48x128xf32>
    %26 = arith.addf %23, %25 : vector<48x128xf32>
    %27 = arith.negf %26 : vector<48x128xf32>
    %28 = math.exp %27 : vector<48x128xf32>
    %cst_20 = arith.constant 1.000000e+00 : f32
    %29 = vector.broadcast %cst_20 : f32 to vector<48x128xf32>
    %30 = arith.addf %29, %28 : vector<48x128xf32>
    %31 = arith.divf %29, %30 : vector<48x128xf32>
    %32 = arith.mulf %21, %31 : vector<48x128xf32>
    %33 = tpu.iota {dimensions = array<i32: 0>} : vector<48x128xi32>
    %c16_i32 = arith.constant 16 : i32
    %34 = vector.broadcast %c16_i32 : i32 to vector<48x128xi32>
    %35 = arith.cmpi sge, %33, %34 : vector<48x128xi32>
    %c32_i32 = arith.constant 32 : i32
    %36 = vector.broadcast %c32_i32 : i32 to vector<48x128xi32>
    %37 = arith.cmpi slt, %33, %36 : vector<48x128xi32>
    %38 = arith.andi %35, %37 : vector<48x128xi1>
    %cst_21 = arith.constant 0.000000e+00 : f32
    %39 = vector.broadcast %cst_21 : f32 to vector<48x128xf32>
    %40 = arith.select %38, %32, %39 : vector<48x128xi1>, vector<48x128xf32>
    %c0_22 = arith.constant 0 : index
    %c0_23 = arith.constant 0 : index
    %41 = vector.load %arg9[%c0_22, %c0_23] : memref<31x128xf32, #tpu.memory_space<vmem>>, vector<31x128xf32>
    %42 = vector.extract_strided_slice %41 {offsets = [0, 0], sizes = [1, 128], strides = [1, 1]} : vector<31x128xf32> to vector<1x128xf32>
    %43 = vector.shape_cast %42 : vector<1x128xf32> to vector<1x128xf32>
    %44 = vector.broadcast %43 : vector<1x128xf32> to vector<16x128xf32>
    %45 = vector.extract_strided_slice %41 {offsets = [1, 0], sizes = [1, 128], strides = [1, 1]} : vector<31x128xf32> to vector<1x128xf32>
    %46 = vector.shape_cast %45 : vector<1x128xf32> to vector<1x128xf32>
    %47 = vector.broadcast %46 : vector<1x128xf32> to vector<16x128xf32>
    %48 = vector.extract_strided_slice %41 {offsets = [2, 0], sizes = [1, 128], strides = [1, 1]} : vector<31x128xf32> to vector<1x128xf32>
    %49 = vector.shape_cast %48 : vector<1x128xf32> to vector<1x128xf32>
    %50 = vector.broadcast %49 : vector<1x128xf32> to vector<16x128xf32>
    %51 = vector.extract_strided_slice %41 {offsets = [3, 0], sizes = [1, 128], strides = [1, 1]} : vector<31x128xf32> to vector<1x128xf32>
    %52 = vector.shape_cast %51 : vector<1x128xf32> to vector<1x128xf32>
    %53 = vector.broadcast %52 : vector<1x128xf32> to vector<16x128xf32>
    %54 = vector.extract_strided_slice %41 {offsets = [4, 0], sizes = [1, 128], strides = [1, 1]} : vector<31x128xf32> to vector<1x128xf32>
    %55 = vector.shape_cast %54 : vector<1x128xf32> to vector<1x128xf32>
    %56 = vector.broadcast %55 : vector<1x128xf32> to vector<16x128xf32>
    %57 = vector.extract_strided_slice %41 {offsets = [5, 0], sizes = [1, 128], strides = [1, 1]} : vector<31x128xf32> to vector<1x128xf32>
    %58 = vector.shape_cast %57 : vector<1x128xf32> to vector<1x128xf32>
    %59 = vector.broadcast %58 : vector<1x128xf32> to vector<16x128xf32>
    %60 = vector.extract_strided_slice %41 {offsets = [6, 0], sizes = [1, 128], strides = [1, 1]} : vector<31x128xf32> to vector<1x128xf32>
    %61 = vector.shape_cast %60 : vector<1x128xf32> to vector<1x128xf32>
    %62 = vector.broadcast %61 : vector<1x128xf32> to vector<16x128xf32>
    %63 = vector.extract_strided_slice %41 {offsets = [7, 0], sizes = [1, 128], strides = [1, 1]} : vector<31x128xf32> to vector<1x128xf32>
    %64 = vector.shape_cast %63 : vector<1x128xf32> to vector<1x128xf32>
    %65 = vector.broadcast %64 : vector<1x128xf32> to vector<16x128xf32>
    %66 = vector.extract_strided_slice %41 {offsets = [8, 0], sizes = [1, 128], strides = [1, 1]} : vector<31x128xf32> to vector<1x128xf32>
    %67 = vector.shape_cast %66 : vector<1x128xf32> to vector<1x128xf32>
    %68 = vector.broadcast %67 : vector<1x128xf32> to vector<16x128xf32>
    %69 = vector.extract_strided_slice %41 {offsets = [9, 0], sizes = [1, 128], strides = [1, 1]} : vector<31x128xf32> to vector<1x128xf32>
    %70 = vector.shape_cast %69 : vector<1x128xf32> to vector<1x128xf32>
    %71 = vector.broadcast %70 : vector<1x128xf32> to vector<16x128xf32>
    %72 = vector.extract_strided_slice %41 {offsets = [10, 0], sizes = [1, 128], strides = [1, 1]} : vector<31x128xf32> to vector<1x128xf32>
    %73 = vector.shape_cast %72 : vector<1x128xf32> to vector<1x128xf32>
    %74 = vector.broadcast %73 : vector<1x128xf32> to vector<16x128xf32>
    %75 = vector.extract_strided_slice %41 {offsets = [11, 0], sizes = [1, 128], strides = [1, 1]} : vector<31x128xf32> to vector<1x128xf32>
    %76 = vector.shape_cast %75 : vector<1x128xf32> to vector<1x128xf32>
    %77 = vector.broadcast %76 : vector<1x128xf32> to vector<16x128xf32>
    %78 = vector.extract_strided_slice %41 {offsets = [12, 0], sizes = [1, 128], strides = [1, 1]} : vector<31x128xf32> to vector<1x128xf32>
    %79 = vector.shape_cast %78 : vector<1x128xf32> to vector<1x128xf32>
    %80 = vector.broadcast %79 : vector<1x128xf32> to vector<16x128xf32>
    %81 = vector.extract_strided_slice %41 {offsets = [13, 0], sizes = [1, 128], strides = [1, 1]} : vector<31x128xf32> to vector<1x128xf32>
    %82 = vector.shape_cast %81 : vector<1x128xf32> to vector<1x128xf32>
    %83 = vector.broadcast %82 : vector<1x128xf32> to vector<16x128xf32>
    %84 = vector.extract_strided_slice %41 {offsets = [14, 0], sizes = [1, 128], strides = [1, 1]} : vector<31x128xf32> to vector<1x128xf32>
    %85 = vector.shape_cast %84 : vector<1x128xf32> to vector<1x128xf32>
    %86 = vector.broadcast %85 : vector<1x128xf32> to vector<16x128xf32>
    %87 = vector.extract_strided_slice %41 {offsets = [15, 0], sizes = [1, 128], strides = [1, 1]} : vector<31x128xf32> to vector<1x128xf32>
    %88 = vector.shape_cast %87 : vector<1x128xf32> to vector<1x128xf32>
    %89 = vector.broadcast %88 : vector<1x128xf32> to vector<16x128xf32>
    %90 = vector.extract_strided_slice %41 {offsets = [16, 0], sizes = [1, 128], strides = [1, 1]} : vector<31x128xf32> to vector<1x128xf32>
    %91 = vector.shape_cast %90 : vector<1x128xf32> to vector<1x128xf32>
    %92 = vector.broadcast %91 : vector<1x128xf32> to vector<16x128xf32>
    %93 = vector.extract_strided_slice %41 {offsets = [17, 0], sizes = [1, 128], strides = [1, 1]} : vector<31x128xf32> to vector<1x128xf32>
    %94 = vector.shape_cast %93 : vector<1x128xf32> to vector<1x128xf32>
    %95 = vector.broadcast %94 : vector<1x128xf32> to vector<16x128xf32>
    %96 = vector.extract_strided_slice %41 {offsets = [18, 0], sizes = [1, 128], strides = [1, 1]} : vector<31x128xf32> to vector<1x128xf32>
    %97 = vector.shape_cast %96 : vector<1x128xf32> to vector<1x128xf32>
    %98 = vector.broadcast %97 : vector<1x128xf32> to vector<16x128xf32>
    %99 = vector.extract_strided_slice %41 {offsets = [19, 0], sizes = [1, 128], strides = [1, 1]} : vector<31x128xf32> to vector<1x128xf32>
    %100 = vector.shape_cast %99 : vector<1x128xf32> to vector<1x128xf32>
    %101 = vector.broadcast %100 : vector<1x128xf32> to vector<16x128xf32>
    %102 = vector.extract_strided_slice %41 {offsets = [20, 0], sizes = [1, 128], strides = [1, 1]} : vector<31x128xf32> to vector<1x128xf32>
    %103 = vector.shape_cast %102 : vector<1x128xf32> to vector<1x128xf32>
    %104 = vector.broadcast %103 : vector<1x128xf32> to vector<16x128xf32>
    %105 = vector.extract_strided_slice %41 {offsets = [21, 0], sizes = [1, 128], strides = [1, 1]} : vector<31x128xf32> to vector<1x128xf32>
    %106 = vector.shape_cast %105 : vector<1x128xf32> to vector<1x128xf32>
    %107 = vector.broadcast %106 : vector<1x128xf32> to vector<16x128xf32>
    %108 = vector.extract_strided_slice %41 {offsets = [22, 0], sizes = [1, 128], strides = [1, 1]} : vector<31x128xf32> to vector<1x128xf32>
    %109 = vector.shape_cast %108 : vector<1x128xf32> to vector<1x128xf32>
    %110 = vector.broadcast %109 : vector<1x128xf32> to vector<16x128xf32>
    %111 = vector.extract_strided_slice %41 {offsets = [23, 0], sizes = [1, 128], strides = [1, 1]} : vector<31x128xf32> to vector<1x128xf32>
    %112 = vector.shape_cast %111 : vector<1x128xf32> to vector<1x128xf32>
    %113 = vector.broadcast %112 : vector<1x128xf32> to vector<16x128xf32>
    %114 = vector.extract_strided_slice %41 {offsets = [24, 0], sizes = [1, 128], strides = [1, 1]} : vector<31x128xf32> to vector<1x128xf32>
    %115 = vector.shape_cast %114 : vector<1x128xf32> to vector<1x128xf32>
    %116 = vector.broadcast %115 : vector<1x128xf32> to vector<16x128xf32>
    %117 = vector.extract_strided_slice %41 {offsets = [25, 0], sizes = [1, 128], strides = [1, 1]} : vector<31x128xf32> to vector<1x128xf32>
    %118 = vector.shape_cast %117 : vector<1x128xf32> to vector<1x128xf32>
    %119 = vector.broadcast %118 : vector<1x128xf32> to vector<16x128xf32>
    %120 = vector.extract_strided_slice %41 {offsets = [26, 0], sizes = [1, 128], strides = [1, 1]} : vector<31x128xf32> to vector<1x128xf32>
    %121 = vector.shape_cast %120 : vector<1x128xf32> to vector<1x128xf32>
    %122 = vector.broadcast %121 : vector<1x128xf32> to vector<16x128xf32>
    %123 = vector.extract_strided_slice %41 {offsets = [27, 0], sizes = [1, 128], strides = [1, 1]} : vector<31x128xf32> to vector<1x128xf32>
    %124 = vector.shape_cast %123 : vector<1x128xf32> to vector<1x128xf32>
    %125 = vector.broadcast %124 : vector<1x128xf32> to vector<16x128xf32>
    %126 = vector.extract_strided_slice %41 {offsets = [28, 0], sizes = [1, 128], strides = [1, 1]} : vector<31x128xf32> to vector<1x128xf32>
    %127 = vector.shape_cast %126 : vector<1x128xf32> to vector<1x128xf32>
    %128 = vector.broadcast %127 : vector<1x128xf32> to vector<16x128xf32>
    %129 = vector.extract_strided_slice %41 {offsets = [29, 0], sizes = [1, 128], strides = [1, 1]} : vector<31x128xf32> to vector<1x128xf32>
    %130 = vector.shape_cast %129 : vector<1x128xf32> to vector<1x128xf32>
    %131 = vector.broadcast %130 : vector<1x128xf32> to vector<16x128xf32>
    %132 = vector.extract_strided_slice %41 {offsets = [30, 0], sizes = [1, 128], strides = [1, 1]} : vector<31x128xf32> to vector<1x128xf32>
    %133 = vector.shape_cast %132 : vector<1x128xf32> to vector<1x128xf32>
    %134 = vector.broadcast %133 : vector<1x128xf32> to vector<16x128xf32>
    %c0_24 = arith.constant 0 : index
    %c0_25 = arith.constant 0 : index
    %135 = vector.load %arg10[%c0_24, %c0_25] : memref<1x128xf32, #tpu.memory_space<vmem>>, vector<1x128xf32>
    %136 = vector.shape_cast %135 : vector<1x128xf32> to vector<1x128xf32>
    %137 = vector.broadcast %136 : vector<1x128xf32> to vector<16x128xf32>
    %138 = vector.extract_strided_slice %40 {offsets = [1, 0], sizes = [16, 128], strides = [1, 1]} : vector<48x128xf32> to vector<16x128xf32>
    %139 = arith.mulf %138, %44 : vector<16x128xf32>
    %140 = arith.addf %137, %139 : vector<16x128xf32>
    %141 = vector.extract_strided_slice %40 {offsets = [2, 0], sizes = [16, 128], strides = [1, 1]} : vector<48x128xf32> to vector<16x128xf32>
    %142 = arith.mulf %141, %47 : vector<16x128xf32>
    %143 = arith.addf %140, %142 : vector<16x128xf32>
    %144 = vector.extract_strided_slice %40 {offsets = [3, 0], sizes = [16, 128], strides = [1, 1]} : vector<48x128xf32> to vector<16x128xf32>
    %145 = arith.mulf %144, %50 : vector<16x128xf32>
    %146 = arith.addf %143, %145 : vector<16x128xf32>
    %147 = vector.extract_strided_slice %40 {offsets = [4, 0], sizes = [16, 128], strides = [1, 1]} : vector<48x128xf32> to vector<16x128xf32>
    %148 = arith.mulf %147, %53 : vector<16x128xf32>
    %149 = arith.addf %146, %148 : vector<16x128xf32>
    %150 = vector.extract_strided_slice %40 {offsets = [5, 0], sizes = [16, 128], strides = [1, 1]} : vector<48x128xf32> to vector<16x128xf32>
    %151 = arith.mulf %150, %56 : vector<16x128xf32>
    %152 = arith.addf %149, %151 : vector<16x128xf32>
    %153 = vector.extract_strided_slice %40 {offsets = [6, 0], sizes = [16, 128], strides = [1, 1]} : vector<48x128xf32> to vector<16x128xf32>
    %154 = arith.mulf %153, %59 : vector<16x128xf32>
    %155 = arith.addf %152, %154 : vector<16x128xf32>
    %156 = vector.extract_strided_slice %40 {offsets = [7, 0], sizes = [16, 128], strides = [1, 1]} : vector<48x128xf32> to vector<16x128xf32>
    %157 = arith.mulf %156, %62 : vector<16x128xf32>
    %158 = arith.addf %155, %157 : vector<16x128xf32>
    %159 = vector.extract_strided_slice %40 {offsets = [8, 0], sizes = [16, 128], strides = [1, 1]} : vector<48x128xf32> to vector<16x128xf32>
    %160 = arith.mulf %159, %65 : vector<16x128xf32>
    %161 = arith.addf %158, %160 : vector<16x128xf32>
    %162 = vector.extract_strided_slice %40 {offsets = [9, 0], sizes = [16, 128], strides = [1, 1]} : vector<48x128xf32> to vector<16x128xf32>
    %163 = arith.mulf %162, %68 : vector<16x128xf32>
    %164 = arith.addf %161, %163 : vector<16x128xf32>
    %165 = vector.extract_strided_slice %40 {offsets = [10, 0], sizes = [16, 128], strides = [1, 1]} : vector<48x128xf32> to vector<16x128xf32>
    %166 = arith.mulf %165, %71 : vector<16x128xf32>
    %167 = arith.addf %164, %166 : vector<16x128xf32>
    %168 = vector.extract_strided_slice %40 {offsets = [11, 0], sizes = [16, 128], strides = [1, 1]} : vector<48x128xf32> to vector<16x128xf32>
    %169 = arith.mulf %168, %74 : vector<16x128xf32>
    %170 = arith.addf %167, %169 : vector<16x128xf32>
    %171 = vector.extract_strided_slice %40 {offsets = [12, 0], sizes = [16, 128], strides = [1, 1]} : vector<48x128xf32> to vector<16x128xf32>
    %172 = arith.mulf %171, %77 : vector<16x128xf32>
    %173 = arith.addf %170, %172 : vector<16x128xf32>
    %174 = vector.extract_strided_slice %40 {offsets = [13, 0], sizes = [16, 128], strides = [1, 1]} : vector<48x128xf32> to vector<16x128xf32>
    %175 = arith.mulf %174, %80 : vector<16x128xf32>
    %176 = arith.addf %173, %175 : vector<16x128xf32>
    %177 = vector.extract_strided_slice %40 {offsets = [14, 0], sizes = [16, 128], strides = [1, 1]} : vector<48x128xf32> to vector<16x128xf32>
    %178 = arith.mulf %177, %83 : vector<16x128xf32>
    %179 = arith.addf %176, %178 : vector<16x128xf32>
    %180 = vector.extract_strided_slice %40 {offsets = [15, 0], sizes = [16, 128], strides = [1, 1]} : vector<48x128xf32> to vector<16x128xf32>
    %181 = arith.mulf %180, %86 : vector<16x128xf32>
    %182 = arith.addf %179, %181 : vector<16x128xf32>
    %183 = vector.extract_strided_slice %40 {offsets = [16, 0], sizes = [16, 128], strides = [1, 1]} : vector<48x128xf32> to vector<16x128xf32>
    %184 = arith.mulf %183, %89 : vector<16x128xf32>
    %185 = arith.addf %182, %184 : vector<16x128xf32>
    %186 = vector.extract_strided_slice %40 {offsets = [17, 0], sizes = [16, 128], strides = [1, 1]} : vector<48x128xf32> to vector<16x128xf32>
    %187 = arith.mulf %186, %92 : vector<16x128xf32>
    %188 = arith.addf %185, %187 : vector<16x128xf32>
    %189 = vector.extract_strided_slice %40 {offsets = [18, 0], sizes = [16, 128], strides = [1, 1]} : vector<48x128xf32> to vector<16x128xf32>
    %190 = arith.mulf %189, %95 : vector<16x128xf32>
    %191 = arith.addf %188, %190 : vector<16x128xf32>
    %192 = vector.extract_strided_slice %40 {offsets = [19, 0], sizes = [16, 128], strides = [1, 1]} : vector<48x128xf32> to vector<16x128xf32>
    %193 = arith.mulf %192, %98 : vector<16x128xf32>
    %194 = arith.addf %191, %193 : vector<16x128xf32>
    %195 = vector.extract_strided_slice %40 {offsets = [20, 0], sizes = [16, 128], strides = [1, 1]} : vector<48x128xf32> to vector<16x128xf32>
    %196 = arith.mulf %195, %101 : vector<16x128xf32>
    %197 = arith.addf %194, %196 : vector<16x128xf32>
    %198 = vector.extract_strided_slice %40 {offsets = [21, 0], sizes = [16, 128], strides = [1, 1]} : vector<48x128xf32> to vector<16x128xf32>
    %199 = arith.mulf %198, %104 : vector<16x128xf32>
    %200 = arith.addf %197, %199 : vector<16x128xf32>
    %201 = vector.extract_strided_slice %40 {offsets = [22, 0], sizes = [16, 128], strides = [1, 1]} : vector<48x128xf32> to vector<16x128xf32>
    %202 = arith.mulf %201, %107 : vector<16x128xf32>
    %203 = arith.addf %200, %202 : vector<16x128xf32>
    %204 = vector.extract_strided_slice %40 {offsets = [23, 0], sizes = [16, 128], strides = [1, 1]} : vector<48x128xf32> to vector<16x128xf32>
    %205 = arith.mulf %204, %110 : vector<16x128xf32>
    %206 = arith.addf %203, %205 : vector<16x128xf32>
    %207 = vector.extract_strided_slice %40 {offsets = [24, 0], sizes = [16, 128], strides = [1, 1]} : vector<48x128xf32> to vector<16x128xf32>
    %208 = arith.mulf %207, %113 : vector<16x128xf32>
    %209 = arith.addf %206, %208 : vector<16x128xf32>
    %210 = vector.extract_strided_slice %40 {offsets = [25, 0], sizes = [16, 128], strides = [1, 1]} : vector<48x128xf32> to vector<16x128xf32>
    %211 = arith.mulf %210, %116 : vector<16x128xf32>
    %212 = arith.addf %209, %211 : vector<16x128xf32>
    %213 = vector.extract_strided_slice %40 {offsets = [26, 0], sizes = [16, 128], strides = [1, 1]} : vector<48x128xf32> to vector<16x128xf32>
    %214 = arith.mulf %213, %119 : vector<16x128xf32>
    %215 = arith.addf %212, %214 : vector<16x128xf32>
    %216 = vector.extract_strided_slice %40 {offsets = [27, 0], sizes = [16, 128], strides = [1, 1]} : vector<48x128xf32> to vector<16x128xf32>
    %217 = arith.mulf %216, %122 : vector<16x128xf32>
    %218 = arith.addf %215, %217 : vector<16x128xf32>
    %219 = vector.extract_strided_slice %40 {offsets = [28, 0], sizes = [16, 128], strides = [1, 1]} : vector<48x128xf32> to vector<16x128xf32>
    %220 = arith.mulf %219, %125 : vector<16x128xf32>
    %221 = arith.addf %218, %220 : vector<16x128xf32>
    %222 = vector.extract_strided_slice %40 {offsets = [29, 0], sizes = [16, 128], strides = [1, 1]} : vector<48x128xf32> to vector<16x128xf32>
    %223 = arith.mulf %222, %128 : vector<16x128xf32>
    %224 = arith.addf %221, %223 : vector<16x128xf32>
    %225 = vector.extract_strided_slice %40 {offsets = [30, 0], sizes = [16, 128], strides = [1, 1]} : vector<48x128xf32> to vector<16x128xf32>
    %226 = arith.mulf %225, %131 : vector<16x128xf32>
    %227 = arith.addf %224, %226 : vector<16x128xf32>
    %228 = vector.extract_strided_slice %40 {offsets = [31, 0], sizes = [16, 128], strides = [1, 1]} : vector<48x128xf32> to vector<16x128xf32>
    %229 = arith.mulf %228, %134 : vector<16x128xf32>
    %230 = arith.addf %227, %229 : vector<16x128xf32>
    %231 = arith.negf %230 : vector<16x128xf32>
    %232 = math.exp %231 : vector<16x128xf32>
    %cst_26 = arith.constant 1.000000e+00 : f32
    %233 = vector.broadcast %cst_26 : f32 to vector<16x128xf32>
    %234 = arith.addf %233, %232 : vector<16x128xf32>
    %235 = arith.divf %233, %234 : vector<16x128xf32>
    %236 = arith.mulf %230, %235 : vector<16x128xf32>
    %c0_27 = arith.constant 0 : index
    %c0_28 = arith.constant 0 : index
    %237 = vector.load %arg12[%c0_27, %c0_28] : memref<128x128xf32, #tpu.memory_space<vmem>>, vector<128x128xf32>
    %cst_29 = arith.constant dense<0.000000e+00> : vector<16x128xf32>
    %238 = tpu.matmul %236, %237, %cst_29 {dimension_numbers = #tpu.dot_dimension_numbers<[1], [0], [0], [1], [0, 0, 1, 1], [], []>, precision = #tpu.contract_precision<fp32>} : vector<16x128xf32>, vector<128x128xf32>, vector<16x128xf32> -> vector<16x128xf32>
    %239 = arith.subf %236, %238 : vector<16x128xf32>
    %240 = arith.mulf %239, %239 : vector<16x128xf32>
    %cst_30 = arith.constant dense<0.000000e+00> : vector<16x128xf32>
    %241 = tpu.matmul %240, %237, %cst_30 {dimension_numbers = #tpu.dot_dimension_numbers<[1], [0], [0], [1], [0, 0, 1, 1], [], []>, precision = #tpu.contract_precision<fp32>} : vector<16x128xf32>, vector<128x128xf32>, vector<16x128xf32> -> vector<16x128xf32>
    %cst_31 = arith.constant 9.99999997E-7 : f32
    %242 = vector.broadcast %cst_31 : f32 to vector<16x128xf32>
    %243 = arith.maximumf %241, %242 : vector<16x128xf32>
    %244 = math.rsqrt %243 : vector<16x128xf32>
    %245 = arith.mulf %239, %244 : vector<16x128xf32>
    %c0_32 = arith.constant 0 : index
    %c0_33 = arith.constant 0 : index
    %246 = vector.load %arg11[%c0_32, %c0_33] : memref<1x128xf32, #tpu.memory_space<vmem>>, vector<1x128xf32>
    %247 = vector.broadcast %246 : vector<1x128xf32> to vector<16x128xf32>
    %248 = arith.mulf %245, %247 : vector<16x128xf32>
    %c0_34 = arith.constant 0 : index
    %c0_35 = arith.constant 0 : index
    %249 = vector.load %arg13[%c0_34, %c0_35] : memref<128x64xf32, #tpu.memory_space<vmem>>, vector<128x64xf32>
    %cst_36 = arith.constant dense<0.000000e+00> : vector<16x64xf32>
    %250 = tpu.matmul %248, %249, %cst_36 {dimension_numbers = #tpu.dot_dimension_numbers<[1], [0], [0], [1], [0, 0, 1, 1], [], []>, precision = #tpu.contract_precision<fp32>} : vector<16x128xf32>, vector<128x64xf32>, vector<16x64xf32> -> vector<16x64xf32>
    %c0_37 = arith.constant 0 : index
    %c0_38 = arith.constant 0 : index
    %251 = vector.load %arg14[%c0_37, %c0_38] : memref<1x64xf32, #tpu.memory_space<vmem>>, vector<1x64xf32>
    %252 = vector.broadcast %251 : vector<1x64xf32> to vector<16x64xf32>
    %253 = arith.addf %250, %252 : vector<16x64xf32>
    %c0_39 = arith.constant 0 : index
    %c0_40 = arith.constant 0 : index
    %c0_41 = arith.constant 0 : index
    %254 = vector.load %arg15[%c0_39, %c0_40, %c0_41] : memref<1x16x64xf32, #tpu.memory_space<vmem>>, vector<1x16x64xf32>
    %255 = vector.shape_cast %254 : vector<1x16x64xf32> to vector<16x64xf32>
    %256 = vector.shape_cast %253 : vector<16x64xf32> to vector<1x16x64xf32>
    tpu.vector_store %arg15[%c0_39, %c0_40, %c0_41], %256 {strides = array<i32>} : memref<1x16x64xf32, #tpu.memory_space<vmem>>, vector<1x16x64xf32>,
    return
  }
  func.func @transform_0(%arg0: i32) -> (i32, i32, i32) {
    %c0_i32 = arith.constant 0 : i32
    %c0_i32_0 = arith.constant 0 : i32
    %c0_i32_1 = arith.constant 0 : i32
    return %arg0, %c0_i32, %c0_i32_0 : i32, i32, i32
  }
  func.func @transform_1(%arg0: i32) -> (i32, i32) {
    %c0_i32 = arith.constant 0 : i32
    %c0_i32_0 = arith.constant 0 : i32
    %c0_i32_1 = arith.constant 0 : i32
    return %c0_i32, %c0_i32_0 : i32, i32
  }
  func.func @transform_2(%arg0: i32) -> (i32, i32) {
    %c0_i32 = arith.constant 0 : i32
    %c0_i32_0 = arith.constant 0 : i32
    %c0_i32_1 = arith.constant 0 : i32
    return %c0_i32, %c0_i32_0 : i32, i32
  }
  func.func @transform_3(%arg0: i32) -> (i32, i32) {
    %c0_i32 = arith.constant 0 : i32
    %c0_i32_0 = arith.constant 0 : i32
    %c0_i32_1 = arith.constant 0 : i32
    return %c0_i32, %c0_i32_0 : i32, i32
  }
  func.func @transform_4(%arg0: i32) -> (i32, i32) {
    %c0_i32 = arith.constant 0 : i32
    %c0_i32_0 = arith.constant 0 : i32
    %c0_i32_1 = arith.constant 0 : i32
    return %c0_i32, %c0_i32_0 : i32, i32
  }
  func.func @transform_5(%arg0: i32) -> (i32, i32) {
    %c0_i32 = arith.constant 0 : i32
    %c0_i32_0 = arith.constant 0 : i32
    %c0_i32_1 = arith.constant 0 : i32
    return %c0_i32, %c0_i32_0 : i32, i32
  }
  func.func @transform_6(%arg0: i32) -> (i32, i32) {
    %c0_i32 = arith.constant 0 : i32
    %c0_i32_0 = arith.constant 0 : i32
    %c0_i32_1 = arith.constant 0 : i32
    return %c0_i32, %c0_i32_0 : i32, i32
  }
  func.func @transform_7(%arg0: i32) -> (i32, i32) {
    %c0_i32 = arith.constant 0 : i32
    %c0_i32_0 = arith.constant 0 : i32
    %c0_i32_1 = arith.constant 0 : i32
    return %c0_i32, %c0_i32_0 : i32, i32
  }
  func.func @transform_8(%arg0: i32) -> (i32, i32) {
    %c0_i32 = arith.constant 0 : i32
    %c0_i32_0 = arith.constant 0 : i32
    %c0_i32_1 = arith.constant 0 : i32
    return %c0_i32, %c0_i32_0 : i32, i32
  }
  func.func @transform_9(%arg0: i32) -> (i32, i32) {
    %c0_i32 = arith.constant 0 : i32
    %c0_i32_0 = arith.constant 0 : i32
    %c0_i32_1 = arith.constant 0 : i32
    return %c0_i32, %c0_i32_0 : i32, i32
  }
  func.func @transform_10(%arg0: i32) -> (i32, i32) {
    %c0_i32 = arith.constant 0 : i32
    %c0_i32_0 = arith.constant 0 : i32
    %c0_i32_1 = arith.constant 0 : i32
    return %c0_i32, %c0_i32_0 : i32, i32
  }
  func.func @transform_11(%arg0: i32) -> (i32, i32) {
    %c0_i32 = arith.constant 0 : i32
    %c0_i32_0 = arith.constant 0 : i32
    %c0_i32_1 = arith.constant 0 : i32
    return %c0_i32, %c0_i32_0 : i32, i32
  }
  func.func @transform_12(%arg0: i32) -> (i32, i32) {
    %c0_i32 = arith.constant 0 : i32
    %c0_i32_0 = arith.constant 0 : i32
    %c0_i32_1 = arith.constant 0 : i32
    return %c0_i32, %c0_i32_0 : i32, i32
  }
  func.func @transform_13(%arg0: i32) -> (i32, i32) {
    %c0_i32 = arith.constant 0 : i32
    %c0_i32_0 = arith.constant 0 : i32
    %c0_i32_1 = arith.constant 0 : i32
    return %c0_i32, %c0_i32_0 : i32, i32
  }
  func.func @transform_14(%arg0: i32) -> (i32, i32, i32) {
    %c0_i32 = arith.constant 0 : i32
    %c0_i32_0 = arith.constant 0 : i32
    %c0_i32_1 = arith.constant 0 : i32
    return %arg0, %c0_i32, %c0_i32_0 : i32, i32, i32
  }
}

</mosaic_0001>

<bundles_post_ra>
// kernel: tile.64
= control target key start
LH: loop header
LB: loop body
LE: loop exit
PB: predicated region body
PF: predicated region fallthrough
CT: control target
= control target key end

     0   :  { %vm128_vm0 = vcmask 1047556   ;;  %s239_s15 = smov 64   ;;  %vm154_vm1 = vcmask 1046532   ;;  %vm130_vm2 = vcmask 523264   ;;  %vm167_vm3 = vcmask 1048064   ;;  %s379_s0 = inlined_call_operand.vmem [shape: f32[31,2,64], index: 0, kind: input, shape index: {}]   ;;  %s380_s1 = inlined_call_operand.vmem [shape: f32[31,128], index: 1, kind: output, shape index: {}]  }
   0x1   :  { %v225_v0 = vld [vmem:[%s379_s0 + $0xe] sm:$0x3]  ;;  %v226_v1 = vld [vmem:[%s379_s0 + $0xc] sm:$0x3]  ;;  %v227_v2 = vld [vmem:[%s379_s0 + $0xa] sm:$0x3] }
   0x2   :  { %99 = vst [vmem:[#allocation0 + $0x38] sm:$0x3] %v225_v0  ;;  %v228_v3 = vld [vmem:[%s379_s0 + $0x8] sm:$0x3]  ;;  %v229_v4 = vld [vmem:[%s379_s0 + $0x6] sm:$0x3] }
   0x3   :  { %103 = vst [vmem:[#allocation0 + $0x30] sm:$0x3] %v226_v1  ;;  %v230_v5 = vld [vmem:[%s379_s0 + $0x4] sm:$0x3]  ;;  %v231_v6 = vld [vmem:[%s379_s0 + $0x2] sm:$0x3] }
   0x4   :  { %107 = vst [vmem:[#allocation0 + $0x28] sm:$0x3] %v227_v2  ;;  %v124_v7 = vld [vmem:[%s379_s0] sm:$0x3]  ;;  %v209_v8 = vld [vmem:[%s379_s0 + $0x2e] sm:$0x3] }
   0x5   :  { %111 = vst [vmem:[#allocation0 + $0x20] sm:$0x3] %v228_v3  ;;  %v210_v9 = vld [vmem:[%s379_s0 + $0x2c] sm:$0x3]  ;;  %v211_v10 = vld [vmem:[%s379_s0 + $0x2a] sm:$0x3] }
   0x6   :  { %115 = vst [vmem:[#allocation0 + $0x18] sm:$0x3] %v229_v4  ;;  %v212_v11 = vld [vmem:[%s379_s0 + $0x28] sm:$0x3]  ;;  %v213_v12 = vld [vmem:[%s379_s0 + $0x26] sm:$0x3] }
   0x7   :  { %119 = vst [vmem:[#allocation0 + $0x10] sm:$0x3] %v230_v5  ;;  %v214_v13 = vld [vmem:[%s379_s0 + $0x24] sm:$0x3]  ;;  %v215_v14 = vld [vmem:[%s379_s0 + $0x22] sm:$0x3] }
   0x8   :  { %123 = vst [vmem:[#allocation0 + $0x8] sm:$0x3] %v231_v6  ;;  %v216_v15 = vld [vmem:[%s379_s0 + $0x20] sm:$0x3]  ;;  %v217_v17 = vld [vmem:[%s379_s0 + $0x1e] sm:$0x3] }
   0x9   :  { %125 = vst [vmem:[#allocation0] sm:$0x3] %v124_v7  ;;  %v218_v18 = vld [vmem:[%s379_s0 + $0x1c] sm:$0x3]  ;;  %v219_v21 = vld [vmem:[%s379_s0 + $0x1a] sm:$0x3] }
   0xa   :  { %35 = vst [vmem:[#allocation0 + $0xb8] sm:$0x3] %v209_v8  ;;  %v220_v22 = vld [vmem:[%s379_s0 + $0x18] sm:$0x3]  ;;  %v221_v23 = vld [vmem:[%s379_s0 + $0x16] sm:$0x3] }
   0xb   :  { %39 = vst [vmem:[#allocation0 + $0xb0] sm:$0x3] %v210_v9  ;;  %v222_v24 = vld [vmem:[%s379_s0 + $0x14] sm:$0x3]  ;;  %v223_v25 = vld [vmem:[%s379_s0 + $0x12] sm:$0x3] }
   0xc   :  { %43 = vst [vmem:[#allocation0 + $0xa8] sm:$0x3] %v211_v10  ;;  %v162_v16 = vld [vmem:[#allocation0 + $0x1] ss:$8 sm:$0xf0]  }
   0xd   :  { %47 = vst [vmem:[#allocation0 + $0xa0] sm:$0x3] %v212_v11  ;;  %v224_v26 = vld [vmem:[%s379_s0 + $0x10] sm:$0x3]  ;;  %v202_v28 = vld [vmem:[%s379_s0 + $0x3c] sm:$0x3] }
   0xe   :  { %51 = vst [vmem:[#allocation0 + $0x98] sm:$0x3] %v213_v12  ;;  %v203_v29 = vld [vmem:[%s379_s0 + $0x3a] sm:$0x3]  ;;  %v204_v32 = vld [vmem:[%s379_s0 + $0x38] sm:$0x3] }
   0xf   :  { %55 = vst [vmem:[#allocation0 + $0x90] sm:$0x3] %v214_v13  ;;  %v205_v33 = vld [vmem:[%s379_s0 + $0x36] sm:$0x3]  ;;  %v206_v34 = vld [vmem:[%s379_s0 + $0x34] sm:$0x3] }
  0x10   :  { %v160_v19 = vld [vmem:[#allocation0 + $0x1] ss:$8 sm:$0xf]   ;;  %59 = vst [vmem:[#allocation0 + $0x88] sm:$0x3] %v215_v14 }
  0x11   :  { %v164_v20 = vsel %vm128_vm0, %v162_v16, %v160_v19  ;;  %63 = vst [vmem:[#allocation0 + $0x80] sm:$0x3] %v216_v15  ;;  %v207_v35 = vld [vmem:[%s379_s0 + $0x32] sm:$0x3]  ;;  %v208_v36 = vld [vmem:[%s379_s0 + $0x30] sm:$0x3] }
  0x12   :  { %165 = vrot.lane.b32.xlu0 %v164_v20, %s239_s15  ;;  %67 = vst [vmem:[#allocation0 + $0x78] sm:$0x3] %v217_v17  ;;  %v126_v43 = vld [vmem:[#allocation0] ss:$8 sm:$0xf]  }
  0x13   :  { %71 = vst [vmem:[#allocation0 + $0x70] sm:$0x3] %v218_v18  ;;  %v127_v44 = vld [vmem:[#allocation0] ss:$8 sm:$0xf0]  }
  0x14   :  { %75 = vst [vmem:[#allocation0 + $0x68] sm:$0x3] %v219_v21  ;;  %v183_v27 = vld [vmem:[#allocation0 + $0x81] ss:$8 sm:$0xf0]   ;;  %v129_v45 = vsel %vm128_vm0, %v127_v44, %v126_v43 }
  0x15   :  { %79 = vst [vmem:[#allocation0 + $0x60] sm:$0x3] %v220_v22  ;;  %v144_v47 = vld [vmem:[#allocation0 + $0x80] ss:$8 sm:$0xf0]  }
  0x16   :  { %83 = vst [vmem:[#allocation0 + $0x58] sm:$0x3] %v221_v23 }
  0x17   :  { %87 = vst [vmem:[#allocation0 + $0x50] sm:$0x3] %v222_v24 }
  0x18   :  { %v181_v30 = vld [vmem:[#allocation0 + $0x81] ss:$8 sm:$0xf]   ;;  %91 = vst [vmem:[#allocation0 + $0x48] sm:$0x3] %v223_v25 }
  0x19   :  { %v185_v31 = vsel %vm128_vm0, %v183_v27, %v181_v30  ;;  %95 = vst [vmem:[#allocation0 + $0x40] sm:$0x3] %v224_v26  ;;  %v142_v46 = vld [vmem:[#allocation0 + $0x80] ss:$8 sm:$0xf]  }
  0x1a   :  { %186 = vrot.lane.b32.xlu1 %v185_v31, %s239_s15  ;;  %7 = vst [vmem:[#allocation0 + $0xf0] sm:$0x3] %v202_v28  ;;  %v146_v48 = vsel %vm128_vm0, %v144_v47, %v142_v46 }
  0x1b   :  { %11 = vst [vmem:[#allocation0 + $0xe8] sm:$0x3] %v203_v29 }
  0x1c   :  { %15 = vst [vmem:[#allocation0 + $0xe0] sm:$0x3] %v204_v32  ;;  %v172_v37 = vld [vmem:[#allocation0 + $0x41] ss:$8 sm:$0xf0]  }
  0x1d   :  { %19 = vst [vmem:[#allocation0 + $0xd8] sm:$0x3] %v205_v33  ;;  %v135_v50 = vld [vmem:[#allocation0 + $0x40] ss:$8 sm:$0xf0]  }
  0x1e   :  { %23 = vst [vmem:[#allocation0 + $0xd0] sm:$0x3] %v206_v34 }
  0x1f   :  { %27 = vst [vmem:[#allocation0 + $0xc8] sm:$0x3] %v207_v35 }
  0x20   :  { %v170_v38 = vld [vmem:[#allocation0 + $0x41] ss:$8 sm:$0xf]   ;;  %31 = vst [vmem:[#allocation0 + $0xc0] sm:$0x3] %v208_v36 }
  0x21   :  { %v174_v39 = vsel %vm128_vm0, %v172_v37, %v170_v38  ;;  %131 = vst.msk [vmem:[%s380_s1] sm:$0xff] %vm130_vm2, %v129_v45   ;;  %v133_v49 = vld [vmem:[#allocation0 + $0x40] ss:$8 sm:$0xf]  }
  0x22   :  { %175 = vrot.lane.b32.xlu0 %v174_v39, %s239_s15  ;;  %233 = vst.msk [vmem:[%s380_s1 + $0x10] sm:$0xff] %vm130_vm2, %v146_v48   ;;  %v137_v51 = vsel %vm128_vm0, %v135_v50, %v133_v49 }
  0x23   :  { %v194_v40 = vld [vmem:[#allocation0 + $0xc1] ss:$8 sm:$0x70]   ;;  %232 = vst.msk [vmem:[%s380_s1 + $0x8] sm:$0xff] %vm130_vm2, %v137_v51  }
  0x24   :  { %v153_v53 = vld [vmem:[#allocation0 + $0xc0] ss:$8 sm:$0x70]  }
  0x27   :  { %v192_v41 = vld [vmem:[#allocation0 + $0xc1] ss:$8 sm:$0xf]   ;;  %v151_v52 = vld [vmem:[#allocation0 + $0xc0] ss:$8 sm:$0xf]  }
  0x28   :  { %v196_v42 = vsel %vm154_vm1, %v194_v40, %v192_v41  ;;  %v155_v54 = vsel %vm154_vm1, %v153_v53, %v151_v52 }
  0x29   :  { %197 = vrot.lane.b32.xlu1 %v196_v42, %s239_s15  ;;  %234 = vst.msk [vmem:[%s380_s1 + $0x18] sm:$0x7f] %vm130_vm2, %v155_v54  }
  0x84   :  { %v166_v55 = vpop.permute.xlu0 %165  }
  0x85   :  { %168 = vst.msk [vmem:[%s380_s1] sm:$0xff] %vm167_vm3, %v166_v55  }
  0x8c   :  { %v187_v56 = vpop.permute.xlu1 %186  }
  0x8d   :  { %236 = vst.msk [vmem:[%s380_s1 + $0x10] sm:$0xff] %vm167_vm3, %v187_v56  }
  0x94   :  { %v176_v57 = vpop.permute.xlu0 %175  }
  0x95   :  { %235 = vst.msk [vmem:[%s380_s1 + $0x8] sm:$0xff] %vm167_vm3, %v176_v57  }
  0x9b   :  { %v198_v58 = vpop.permute.xlu1 %197  }
  0x9c   :  { %237 = vst.msk [vmem:[%s380_s1 + $0x18] sm:$0x7f] %vm167_vm3, %v198_v58  }

// kernel: conformer_conv_module.1
= control target key start
LH: loop header
LB: loop body
LE: loop exit
PB: predicated region body
PF: predicated region fallthrough
CT: control target
= control target key end

     0   :  { %vm61_vm0 = vcmask 523264   ;;  %s6099_s3 = inlined_call_operand.vmem [shape: f32[64,64], index: 3, kind: input, shape index: {}]   ;;  %s6100_s0 = inlined_call_operand.vmem [shape: f32[1,48,64], index: 0, kind: input, shape index: {}]   ;;  %s6101_s1 = inlined_call_operand.vmem [shape: f32[1,64], index: 1, kind: input, shape index: {}]   ;;  %s6102_s2 = inlined_call_operand.vmem [shape: f32[1,64], index: 2, kind: input, shape index: {}]   ;;  %s6103_s4 = inlined_call_operand.vmem [shape: f32[64,128], index: 4, kind: input, shape index: {}]   ;;  %s6104_s5 = inlined_call_operand.vmem [shape: f32[64,128], index: 5, kind: input, shape index: {}]   ;;  %s6105_s6 = inlined_call_operand.vmem [shape: f32[1,128], index: 6, kind: input, shape index: {}]   ;;  %s6106_s7 = inlined_call_operand.vmem [shape: f32[1,128], index: 7, kind: input, shape index: {}]   ;;  %s6107_s9 = inlined_call_operand.vmem [shape: f32[1,128], index: 9, kind: input, shape index: {}]   ;;  %s6108_s8 = inlined_call_operand.vmem [shape: f32[31,128], index: 8, kind: input, shape index: {}]   ;;  %s6109_s11 = inlined_call_operand.vmem [shape: f32[128,128], index: 11, kind: input, shape index: {}]   ;;  %s6110_s10 = inlined_call_operand.vmem [shape: f32[1,128], index: 10, kind: input, shape index: {}]   ;;  %s6111_s12 = inlined_call_operand.vmem [shape: f32[128,64], index: 12, kind: input, shape index: {}]   ;;  %s6112_s13 = inlined_call_operand.vmem [shape: f32[1,64], index: 13, kind: input, shape index: {}]   ;;  %s6113_s14 = inlined_call_operand.vmem [shape: f32[1,16,64], index: 14, kind: output, shape index: {}]  }
   0x1   :  { %v60_v0 = vld [vmem:[%s6099_s3 + $0x38] sm:$0xff]  ;;  %v59_v1 = vld [vmem:[%s6099_s3 + $0x30] sm:$0xff]  ;;  %v58_v2 = vld [vmem:[%s6099_s3 + $0x28] sm:$0xff] }
   0x2   :  { %v3928_v3 = vand.u32 4294901760, %v60_v0  ;;  %v3930_v4 = vand.u32 4294901760, %v59_v1  ;;  %v3932_v5 = vand.u32 4294901760, %v58_v2  ;;  %v57_v6 = vld [vmem:[%s6099_s3 + $0x20] sm:$0xff]  ;;  %v56_v7 = vld [vmem:[%s6099_s3 + $0x18] sm:$0xff]  ;;  %v55_v8 = vld [vmem:[%s6099_s3 + $0x10] sm:$0xff] }
   0x3   :  { %v3943_v9 = vand.u32 4294901760, %v57_v6  ;;  %v3945_v10 = vand.u32 4294901760, %v56_v7  ;;  %v3947_v11 = vand.u32 4294901760, %v55_v8  ;;  %v54_v12 = vld [vmem:[%s6099_s3 + $0x8] sm:$0xff]  ;;  %v3955_v13 = vld [vmem:[%s6100_s0] sm:$0xff]  ;;  %v4068_v51 = vld [vmem:[%s6100_s0 + $0x10] sm:$0xff] }
   0x4   :  { %89 = vmatpush.msra.mxu0 %v3928_v3  ;;  %3785 = vmatpush.msra.mxu2 %v3928_v3  ;;  %v3960_v14 = vsub.f32 %v60_v0, %v3928_v3  ;;  %v3963_v15 = vsub.f32 %v59_v1, %v3930_v4  ;;  %v3966_v16 = vsub.f32 %v58_v2, %v3932_v5  ;;  %v3971_v17 = vld [vmem:[%s6100_s0 + $0x20] sm:$0xff]  ;;  %v3973_v18 = vand.u32 4294901760, %v54_v12  ;;  %v4001_v27 = vld [vmem:[%s6100_s0 + $0x8] sm:$0xff] }
   0x5   :  { %v53_v19 = vld [vmem:[%s6099_s3] sm:$0xff]  ;;  %v3979_v20 = vsub.f32 %v57_v6, %v3943_v9  ;;  %v63_v21 = vsel %vm61_vm0, %v3955_v13, 0  ;;  %v75_v22 = vsel %vm61_vm0, %v3971_v17, 0  ;;  %v4009_v30 = vsub.f32 %v56_v7, %v3945_v10  ;;  %v4044_v42 = vld [vmem:[%s6100_s0 + $0x28] sm:$0xff] }
   0x6   :  { %91 = vmatpush.msra.mxu0 %v3930_v4  ;;  %3786 = vmatpush.msra.mxu2 %v3930_v4  ;;  %v3988_v23 = vand.u32 4294901760, %v3960_v14  ;;  %v3991_v24 = vand.u32 4294901760, %v3963_v15  ;;  %v3994_v25 = vand.u32 4294901760, %v3966_v16  ;;  %v3996_v26 = vand.u32 4294901760, %v63_v21 }
   0x7   :  { %v4004_v28 = vand.u32 4294901760, %v3979_v20  ;;  %v4006_v29 = vand.u32 4294901760, %v75_v22  ;;  %v4012_v31 = vsub.f32 %v55_v8, %v3947_v11  ;;  %v4022_v35 = vand.u32 4294901760, %v53_v19 }
   0x8   :  { %93 = vmatpush.msra.mxu0 %v3932_v5  ;;  %3787 = vmatpush.msra.mxu2 %v3932_v5  ;;  %v164_v32 = vsub.f32 %v3960_v14, %v3988_v23  ;;  %v170_v33 = vsub.f32 %v3963_v15, %v3991_v24  ;;  %v176_v34 = vsub.f32 %v3966_v16, %v3994_v25  ;;  %v4031_v38 = vand.u32 4294901760, %v4009_v30 }
   0x9   :  { %v4025_v36 = vsub.f32 %v63_v21, %v3996_v26  ;;  %v4028_v37 = vsub.f32 %v75_v22, %v4006_v29  ;;  %v66_v39 = vsel %vm61_vm0, %v4001_v27, 0  ;;  %v182_v41 = vsub.f32 %v3979_v20, %v4004_v28 }
   0xa   :  { %95 = vmatpush.msra.mxu0 %v3943_v9  ;;  %3788 = vmatpush.msra.mxu2 %v3943_v9  ;;  %v4037_v40 = vand.u32 4294901760, %v164_v32  ;;  %v4046_v43 = vand.u32 4294901760, %v170_v33  ;;  %v4051_v46 = vand.u32 4294901760, %v4012_v31  ;;  %v4055_v47 = vand.u32 4294901760, %v176_v34 }
   0xb   :  { %v106_v44 = vand.u32 4294901760, %v4025_v36  ;;  %v138_v45 = vand.u32 4294901760, %v4028_v37  ;;  %v4058_v48 = vsub.f32 %v54_v12, %v3973_v18  ;;  %v4061_v49 = vsub.f32 %v53_v19, %v4022_v35  ;;  %v4122_v12 = vld [vmem:[%s6100_s0 + $0x18] sm:$0xff] }
   0xc   :  { %97 = vmatpush.msra.mxu0 %v3945_v10  ;;  %3789 = vmatpush.msra.mxu2 %v3945_v10  ;;  %v4063_v50 = vand.u32 4294901760, %v66_v39  ;;  %v188_v54 = vsub.f32 %v4009_v30, %v4031_v38  ;;  %v78_v55 = vsel %vm61_vm0, %v4044_v42, 0  ;;  %v4084_v56 = vand.u32 4294901760, %v182_v41 }
   0xd   :  { %166 = vmatpush.msra.mxu1 %v4037_v40  ;;  %3793 = vmatpush.msra.mxu3 %v4037_v40  ;;  %v107_v52 = vsub.f32 %v4025_v36, %v106_v44  ;;  %v139_v53 = vsub.f32 %v4028_v37, %v138_v45  ;;  %v4087_v57 = vand.u32 4294901760, %v4058_v48  ;;  %v194_v59 = vsub.f32 %v4012_v31, %v4051_v46 }
   0xe   :  { %99 = vmatpush.msra.mxu0 %v3947_v11  ;;  %3790 = vmatpush.msra.mxu2 %v3947_v11  ;;  %v4090_v58 = vsub.f32 %v66_v39, %v4063_v50  ;;  %v4097_v60 = vand.u32 4294901760, %v4061_v49  ;;  %v4099_v61 = vand.u32 4294901760, %v78_v55  ;;  %v69_v62 = vsel %vm61_vm0, %v4068_v51, 0 }
   0xf   :  { %172 = vmatpush.msra.mxu1 %v4046_v43  ;;  %3794 = vmatpush.msra.mxu3 %v4046_v43  ;;  %v108_v63 = vand.u32 4294901760, %v107_v52  ;;  %v140_v0 = vand.u32 4294901760, %v139_v53  ;;  %v4106_v2 = vand.u32 4294901760, %v69_v62  ;;  %v4110_v6 = vand.u32 4294901760, %v188_v54 }
  0x10   :  { %101 = vmatpush.msra.mxu0 %v3973_v18  ;;  %3791 = vmatpush.msra.mxu2 %v3973_v18  ;;  %v114_v1 = vand.u32 4294901760, %v4090_v58  ;;  %v200_v7 = vsub.f32 %v4058_v48, %v4087_v57  ;;  %v4115_v8 = vsub.f32 %v78_v55, %v4099_v61  ;;  %v4126_v19 = vand.u32 4294901760, %v194_v59 }
  0x11   :  { %178 = vmatpush.msra.mxu1 %v4055_v47  ;;  %3795 = vmatpush.msra.mxu3 %v4055_v47  ;;  %v206_v21 = vsub.f32 %v4061_v49, %v4097_v60  ;;  %v4135_v33 = vsub.f32 %v69_v62, %v4106_v2  ;;  %v72_v41 = vsel %vm61_vm0, %v4122_v12, 0 }
  0x12   :  { %103 = vmatpush.msra.mxu0 %v4022_v35  ;;  %3792 = vmatpush.msra.mxu2 %v4022_v35  ;;  %v146_v22 = vand.u32 4294901760, %v4115_v8  ;;  %v115_v32 = vsub.f32 %v4090_v58, %v114_v1  ;;  %v4139_v34 = vand.u32 4294901760, %v200_v7  ;;  %v4155_v55 = vand.u32 4294901760, %v72_v41 }
  0x13   :  { %184 = vmatpush.msra.mxu1 %v4084_v56  ;;  %3796 = vmatpush.msra.mxu3 %v4084_v56  ;;  %v4150_v52 = vand.u32 4294901760, %v206_v21  ;;  %v122_v54 = vand.u32 4294901760, %v4135_v33 }
  0x14   :  { %109 = vmatmul.f32.vlgmr.msra.gmra.mxu0 %v108_v63  ;;  %141 = vmatmul.f32.vlgmr.msra.gmra.mxu2 %v140_v0  ;;  %v147_v39 = vsub.f32 %v4115_v8, %v146_v22  ;;  %v116_v53 = vand.u32 4294901760, %v115_v32  ;;  %v4168_v63 = vsub.f32 %v72_v41, %v4155_v55 }
  0x15   :  { %190 = vmatpush.msra.mxu1 %v4110_v6  ;;  %3797 = vmatpush.msra.mxu3 %v4110_v6  ;;  %v123_v62 = vsub.f32 %v4135_v33, %v122_v54 }
  0x16   :  { %244 = vmatpush.msrb.mxu2 %v3960_v14  ;;  %369 = vmatpush.msrb.mxu0 %v3988_v23  ;;  %v148_v59 = vand.u32 4294901760, %v147_v39  ;;  %v130_v7 = vand.u32 4294901760, %v4168_v63 }
  0x17   :  { %196 = vmatpush.msra.mxu1 %v4126_v19  ;;  %3798 = vmatpush.msra.mxu3 %v4126_v19  ;;  %v124_v0 = vand.u32 4294901760, %v123_v62 }
  0x18   :  { %247 = vmatpush.msrb.mxu2 %v3963_v15  ;;  %373 = vmatpush.msrb.mxu0 %v3991_v24  ;;  %v131_v21 = vsub.f32 %v4168_v63, %v130_v7 }
  0x19   :  { %202 = vmatpush.msra.mxu1 %v4139_v34  ;;  %3799 = vmatpush.msra.mxu3 %v4139_v34 }
  0x1a   :  { %250 = vmatpush.msrb.mxu2 %v3966_v16  ;;  %377 = vmatpush.msrb.mxu0 %v3994_v25  ;;  %v132_v32 = vand.u32 4294901760, %v131_v21 }
  0x1b   :  { %208 = vmatpush.msra.mxu1 %v4150_v52  ;;  %3800 = vmatpush.msra.mxu3 %v4150_v52 }
  0x1c   :  { %253 = vmatpush.msrb.mxu2 %v3979_v20  ;;  %117 = vmatmul.f32.gmra.mxu0 %v116_v53 }
  0x1d   :  { %149 = vmatmul.f32.gmra.mxu2 %v148_v59  ;;  %210 = vmatmul.f32.vlgmr.msra.gmra.mxu1 %v3996_v26 }
  0x1e   :  { %226 = vmatmul.f32.vlgmr.msra.gmra.mxu3 %v4006_v29  ;;  %432 = vmatpush.msrb.mxu1 %v3928_v3 }
  0x1f   :  { %256 = vmatpush.msrb.mxu2 %v4009_v30  ;;  %306 = vmatpush.msrb.mxu3 %v3928_v3 }
  0x20   :  { %434 = vmatpush.msrb.mxu1 %v3930_v4  ;;  %381 = vmatpush.msrb.mxu0 %v4004_v28 }
  0x21   :  { %259 = vmatpush.msrb.mxu2 %v4012_v31  ;;  %308 = vmatpush.msrb.mxu3 %v3930_v4 }
  0x22   :  { %436 = vmatpush.msrb.mxu1 %v3932_v5  ;;  %385 = vmatpush.msrb.mxu0 %v4031_v38 }
  0x23   :  { %262 = vmatpush.msrb.mxu2 %v4058_v48  ;;  %310 = vmatpush.msrb.mxu3 %v3932_v5 }
  0x24   :  { %125 = vmatmul.f32.gmra.mxu0 %v124_v0  ;;  %438 = vmatpush.msrb.mxu1 %v3943_v9 }
  0x25   :  { %265 = vmatpush.msrb.mxu2 %v4061_v49  ;;  %312 = vmatpush.msrb.mxu3 %v3943_v9 }
  0x26   :  { %214 = vmatmul.f32.gmra.mxu1 %v4063_v50  ;;  %230 = vmatmul.f32.gmra.mxu3 %v4099_v61 }
  0x27   :  { %268 = vmatmul.f32.vlgmr.msrb.gmra.mxu2 %v4025_v36  ;;  %314 = vmatpush.msrb.mxu3 %v3945_v10 }
  0x28   :  { %440 = vmatpush.msrb.mxu1 %v3945_v10  ;;  %389 = vmatpush.msrb.mxu0 %v4051_v46 }
  0x29   :  { %316 = vmatpush.msrb.mxu3 %v3947_v11  ;;  %511 = vmatpush.msra.mxu2 %v3928_v3 }
  0x2a   :  { %442 = vmatpush.msrb.mxu1 %v3947_v11  ;;  %393 = vmatpush.msrb.mxu0 %v4087_v57 }
  0x2b   :  { %318 = vmatpush.msrb.mxu3 %v3973_v18  ;;  %513 = vmatpush.msra.mxu2 %v3930_v4 }
  0x2c   :  { %133 = vmatmul.f32.gmra.mxu0 %v132_v32  ;;  %444 = vmatpush.msrb.mxu1 %v3973_v18 }
  0x2d   :  { %320 = vmatpush.msrb.mxu3 %v4022_v35  ;;  %397 = vmatpush.msrb.mxu0 %v4097_v60 }
  0x2e   :  { %218 = vmatmul.f32.gmra.mxu1 %v4106_v2  ;;  %324 = vmatmul.f32.vlgmr.msrb.gmra.mxu3 %v106_v44 }
  0x2f   :  { %273 = vmatmul.f32.gmra.mxu2 %v4090_v58  ;;  %446 = vmatpush.msrb.mxu1 %v4022_v35 }
  0x30   :  { %588 = vmatpush.msra.mxu3 %v4037_v40  ;;  %515 = vmatpush.msra.mxu2 %v3932_v5 }
  0x31   :  { %666 = vmatpush.msra.mxu0 %v3960_v14  ;;  %728 = vmatpush.msra.mxu1 %v3928_v3 }
  0x32   :  { %594 = vmatpush.msra.mxu3 %v4046_v43  ;;  %517 = vmatpush.msra.mxu2 %v3943_v9 }
  0x33   :  { %669 = vmatpush.msra.mxu0 %v3963_v15  ;;  %730 = vmatpush.msra.mxu1 %v3930_v4 }
  0x34   :  { %399 = vmatmul.f32.vlgmr.msrb.gmra.mxu0 %v3996_v26  ;;  %600 = vmatpush.msra.mxu3 %v4055_v47 }
  0x35   :  { %519 = vmatpush.msra.mxu2 %v3945_v10  ;;  %672 = vmatpush.msra.mxu0 %v3966_v16 }
  0x36   :  { %222 = vmatmul.f32.gmra.mxu1 %v4155_v55  ;;  %330 = vmatmul.f32.gmra.mxu3 %v114_v1 }
  0x37   :  { %278 = vmatmul.f32.gmra.mxu2 %v4135_v33  ;;  %606 = vmatpush.msra.mxu3 %v4084_v56 }
  0x38   :  { %521 = vmatpush.msra.mxu2 %v3947_v11  ;;  %675 = vmatpush.msra.mxu0 %v3979_v20 }
  0x39   :  { %612 = vmatpush.msra.mxu3 %v4110_v6  ;;  %732 = vmatpush.msra.mxu1 %v3932_v5 }
  0x3a   :  { %678 = vmatpush.msra.mxu0 %v4009_v30  ;;  %523 = vmatpush.msra.mxu2 %v3973_v18 }
  0x3b   :  { %618 = vmatpush.msra.mxu3 %v4126_v19  ;;  %734 = vmatpush.msra.mxu1 %v3943_v9 }
  0x3c   :  { %403 = vmatmul.f32.gmra.mxu0 %v4063_v50  ;;  %525 = vmatpush.msra.mxu2 %v4022_v35 }
  0x3d   :  { %624 = vmatpush.msra.mxu3 %v4139_v34  ;;  %681 = vmatpush.msra.mxu0 %v4012_v31 }
  0x3e   :  { %336 = vmatmul.f32.gmra.mxu3 %v122_v54  ;;  %448 = vmatmul.f32.vlgmr.msrb.gmra.mxu1 %v3996_v26 }
  0x3f   :  { %283 = vmatmul.f32.gmra.mxu2 %v4168_v63  ;;  %736 = vmatpush.msra.mxu1 %v3945_v10 }
  0x40   :  { %630 = vmatpush.msra.mxu3 %v4150_v52  ;;  %684 = vmatpush.msra.mxu0 %v4058_v48 }
  0x41   :  { %738 = vmatpush.msra.mxu1 %v3947_v11  ;;  %791 = vmatpush.msrb.mxu2 %v3988_v23 }
  0x42   :  { %687 = vmatpush.msra.mxu0 %v4061_v49  ;;  %854 = vmatpush.msrb.mxu3 %v3928_v3 }
  0x43   :  { %740 = vmatpush.msra.mxu1 %v3973_v18  ;;  %795 = vmatpush.msrb.mxu2 %v3991_v24 }
  0x44   :  { %407 = vmatmul.f32.gmra.mxu0 %v4106_v2  ;;  %856 = vmatpush.msrb.mxu3 %v3930_v4 }
  0x45   :  { %742 = vmatpush.msra.mxu1 %v4022_v35  ;;  %799 = vmatpush.msrb.mxu2 %v3994_v25 }
  0x46   :  { %342 = vmatmul.f32.gmra.mxu3 %v130_v7  ;;  %452 = vmatmul.f32.gmra.mxu1 %v4063_v50 }
  0x47   :  { %288 = vmatmul.f32.gmra.mxu2 %v4028_v37  ;;  %858 = vmatpush.msrb.mxu3 %v3932_v5 }
  0x48   :  { %803 = vmatpush.msrb.mxu2 %v4004_v28 }
  0x49   :  { %860 = vmatpush.msrb.mxu3 %v3943_v9 }
  0x4a   :  { %807 = vmatpush.msrb.mxu2 %v4031_v38 }
  0x4b   :  { %862 = vmatpush.msrb.mxu3 %v3945_v10 }
  0x4c   :  { %411 = vmatmul.f32.gmra.mxu0 %v4155_v55  ;;  %811 = vmatpush.msrb.mxu2 %v4051_v46 }
  0x4d   :  { %864 = vmatpush.msrb.mxu3 %v3947_v11 }
  0x4e   :  { %348 = vmatmul.f32.gmra.mxu3 %v138_v45  ;;  %456 = vmatmul.f32.gmra.mxu1 %v4106_v2 }
  0x4f   :  { %293 = vmatmul.f32.gmra.mxu2 %v4115_v8  ;;  %866 = vmatpush.msrb.mxu3 %v3973_v18 }
  0x50   :  { %815 = vmatpush.msrb.mxu2 %v4087_v57 }
  0x51   :  { %868 = vmatpush.msrb.mxu3 %v4022_v35 }
  0x52   :  { %819 = vmatpush.msrb.mxu2 %v4097_v60 }
  0x54   :  { %415 = vmatmul.f32.gmra.mxu0 %v4006_v29 }
  0x56   :  { %354 = vmatmul.f32.gmra.mxu3 %v146_v22  ;;  %460 = vmatmul.f32.gmra.mxu1 %v4155_v55 }
  0x5c   :  { %419 = vmatmul.f32.gmra.mxu0 %v4099_v61 }
  0x5e   :  { %464 = vmatmul.f32.gmra.mxu1 %v4006_v29 }
  0x66   :  { %468 = vmatmul.f32.gmra.mxu1 %v4099_v61 }
  0x91   :  { %v110_v3 = vpop.f32.mrf.mxu0 }
  0x97   :  { %v4283_v4 = vpop.f32.mrf.mxu2 }
  0x99   :  { %v118_v5 = vpop.f32.mrf.mxu0 }
  0x9a   :  { %v211_v9 = vpop.f32.mrf.mxu1 }
  0x9b   :  { %v212_v26 = vadd.f32 %v211_v9, %v110_v3 }
  0xa0   :  { %v4285_v10 = vpop.f32.mrf.mxu2 }
  0xa1   :  { %v4287_v11 = vpop.f32.mrf.mxu3  ;;  %v126_v14 = vpop.f32.mrf.mxu0 }
  0xa3   :  { %v215_v15 = vpop.f32.mrf.mxu1 }
  0xa4   :  { %v216_v37 = vadd.f32 %v215_v15, %v118_v5  ;;  %v228_v15 = vadd.f32 %v4287_v11, %v4283_v4 }
  0xa9   :  { %v4289_v16 = vpop.f32.mrf.mxu3  ;;  %v134_v18 = vpop.f32.mrf.mxu0 }
  0xaa   :  { %v269_v20 = vpop.f32.mrf.mxu2 }
  0xab   :  { %v219_v23 = vpop.f32.mrf.mxu1  ;;  %v270_v30 = vadd.f32 %v269_v20, %v212_v26 }
  0xac   :  { %v220_v56 = vadd.f32 %v219_v23, %v126_v14 }
  0xb1   :  { %v325_v24 = vpop.f32.mrf.mxu3  ;;  %v400_v25 = vpop.f32.mrf.mxu0 }
  0xb2   :  { %v274_v28 = vpop.f32.mrf.mxu2  ;;  %v326_v31 = vadd.f32 %v325_v24, %v270_v30 }
  0xb3   :  { %v223_v29 = vpop.f32.mrf.mxu1  ;;  %v275_v44 = vadd.f32 %v274_v28, %v216_v37  ;;  %v232_v37 = vadd.f32 %v4289_v16, %v4285_v10 }
  0xb4   :  { %v401_v38 = vadd.f32 %v400_v25, %v326_v31  ;;  %v224_v41 = vadd.f32 %v223_v29, %v134_v18 }
  0xb9   :  { %v331_v35 = vpop.f32.mrf.mxu3  ;;  %v404_v36 = vpop.f32.mrf.mxu0 }
  0xba   :  { %v279_v40 = vpop.f32.mrf.mxu2  ;;  %v332_v46 = vadd.f32 %v331_v35, %v275_v44 }
  0xbb   :  { %v449_v43 = vpop.f32.mrf.mxu1  ;;  %v280_v1 = vadd.f32 %v279_v40, %v220_v56 }
  0xbc   :  { %v450_v45 = vadd.f32 %v449_v43, %v401_v38  ;;  %v405_v57 = vadd.f32 %v404_v36, %v332_v46 }
  0xbe   :  { %v4292_v47 = vsub.f32 %v3955_v13, %v450_v45 }
  0xc0   :  { %v478_v48 = vmul.f32 %v4292_v47, %v4292_v47 }
  0xc1   :  { %v337_v49 = vpop.f32.mrf.mxu3  ;;  %v408_v50 = vpop.f32.mrf.mxu0 }
  0xc2   :  { %v485_v58 = vsel %vm61_vm0, %v478_v48, 0  ;;  %v284_v6 = vpop.f32.mrf.mxu2  ;;  %v338_v8 = vadd.f32 %v337_v49, %v280_v1 }
  0xc3   :  { %v453_v60 = vpop.f32.mrf.mxu1  ;;  %v4297_v61 = vand.u32 4294901760, %v485_v58  ;;  %v285_v63 = vadd.f32 %v284_v6, %v224_v41 }
  0xc4   :  { %v454_v2 = vadd.f32 %v453_v60, %v405_v57  ;;  %v409_v52 = vadd.f32 %v408_v50, %v338_v8 }
  0xc5   :  { %632 = vmatmul.f32.vlgmr.msra.gmra.mxu3 %v4297_v61  ;;  %v527_v13 = vsub.f32 %v485_v58, %v4297_v61 }
  0xc6   :  { %v4302_v19 = vsub.f32 %v4001_v27, %v454_v2 }
  0xc7   :  { %690 = vmatmul.f32.vlgmr.msra.gmra.mxu0 %v527_v13  ;;  %v528_v22 = vand.u32 4294901760, %v527_v13 }
  0xc8   :  { %v479_v33 = vmul.f32 %v4302_v19, %v4302_v19 }
  0xc9   :  { %v343_v34 = vpop.f32.mrf.mxu3  ;;  %746 = vmatmul.f32.vlgmr.msra.gmra.mxu1 %v528_v22  ;;  %v529_v39 = vsub.f32 %v527_v13, %v528_v22  ;;  %v412_v54 = vpop.f32.mrf.mxu0 }
  0xca   :  { %v488_v53 = vsel %vm61_vm0, %v479_v33, 0  ;;  %v344_v7 = vadd.f32 %v343_v34, %v285_v63  ;;  %v289_v32 = vpop.f32.mrf.mxu2 }
  0xcb   :  { %v457_v55 = vpop.f32.mrf.mxu1  ;;  %v530_v59 = vand.u32 4294901760, %v529_v39  ;;  %v4307_v62 = vand.u32 4294901760, %v488_v53 }
  0xcc   :  { %v458_v27 = vadd.f32 %v457_v55, %v409_v52  ;;  %v413_v18 = vadd.f32 %v412_v54, %v344_v7 }
  0xcd   :  { %531 = vmatmul.f32.vlgmr.msra.gmra.mxu2 %v530_v59  ;;  %636 = vmatmul.f32.gmra.mxu3 %v4307_v62  ;;  %v535_v0 = vsub.f32 %v488_v53, %v4307_v62 }
  0xce   :  { %v4312_v21 = vsub.f32 %v4068_v51, %v458_v27  ;;  %v290_v51 = vadd.f32 %v289_v32, %v228_v15 }
  0xcf   :  { %695 = vmatmul.f32.gmra.mxu0 %v535_v0  ;;  %v536_v3 = vand.u32 4294901760, %v535_v0 }
  0xd0   :  { %v480_v5 = vmul.f32 %v4312_v21, %v4312_v21 }
  0xd1   :  { %v349_v9 = vpop.f32.mrf.mxu3  ;;  %752 = vmatmul.f32.gmra.mxu1 %v536_v3  ;;  %v537_v14 = vsub.f32 %v535_v0, %v536_v3  ;;  %v416_v28 = vpop.f32.mrf.mxu0 }
  0xd2   :  { %v491_v20 = vsel %vm61_vm0, %v480_v5, 0  ;;  %v350_v30 = vadd.f32 %v349_v9, %v290_v51  ;;  %v294_v35 = vpop.f32.mrf.mxu2  ;;  %v986_v9 = vld [vmem:[%s6103_s4 + $0x30] sm:$0xff] }
  0xd3   :  { %v461_v23 = vpop.f32.mrf.mxu1  ;;  %v538_v24 = vand.u32 4294901760, %v537_v14  ;;  %v4319_v25 = vand.u32 4294901760, %v491_v20  ;;  %v4372_v14 = vand.u32 4294901760, %v986_v9 }
  0xd4   :  { %v462_v26 = vadd.f32 %v461_v23, %v413_v18  ;;  %v417_v38 = vadd.f32 %v416_v28, %v350_v30  ;;  %v985_v28 = vld [vmem:[%s6103_s4 + $0x28] sm:$0xff] }
  0xd5   :  { %539 = vmatmul.f32.gmra.mxu2 %v538_v24  ;;  %640 = vmatmul.f32.gmra.mxu3 %v4319_v25  ;;  %v543_v29 = vsub.f32 %v491_v20, %v4319_v25  ;;  %v4378_v18 = vsub.f32 %v986_v9, %v4372_v14  ;;  %v4398_v30 = vand.u32 4294901760, %v985_v28 }
  0xd6   :  { %v4324_v31 = vsub.f32 %v4122_v12, %v462_v26  ;;  %v295_v12 = vadd.f32 %v294_v35, %v232_v37  ;;  %v983_v37 = vld [vmem:[%s6103_s4 + $0x18] sm:$0xff] }
  0xd7   :  { %700 = vmatmul.f32.gmra.mxu0 %v543_v29  ;;  %v544_v4 = vand.u32 4294901760, %v543_v29  ;;  %v4405_v35 = vsub.f32 %v985_v28, %v4398_v30 }
  0xd8   :  { %v481_v11 = vmul.f32 %v4324_v31, %v4324_v31 }
  0xd9   :  { %758 = vmatmul.f32.gmra.mxu1 %v544_v4  ;;  %v545_v36 = vsub.f32 %v543_v29, %v544_v4  ;;  %v355_v43 = vpop.f32.mrf.mxu3  ;;  %v420_v57 = vpop.f32.mrf.mxu0  ;;  %v984_v4 = vld [vmem:[%s6103_s4 + $0x20] sm:$0xff] }
  0xda   :  { %v494_v40 = vsel %vm61_vm0, %v481_v11, 0  ;;  %v356_v50 = vadd.f32 %v355_v43, %v295_v12  ;;  %v1099_v11 = vand.u32 4294901760, %v4378_v18  ;;  %v982_v12 = vld [vmem:[%s6103_s4 + $0x10] sm:$0xff] }
  0xdb   :  { %v465_v44 = vpop.f32.mrf.mxu1  ;;  %v546_v45 = vand.u32 4294901760, %v545_v36  ;;  %v550_v46 = vand.u32 4294901760, %v494_v40  ;;  %v4409_v36 = vand.u32 4294901760, %v984_v4 }
  0xdc   :  { %v466_v48 = vadd.f32 %v465_v44, %v417_v38  ;;  %v421_v60 = vadd.f32 %v420_v57, %v356_v50  ;;  %v1100_v43 = vsub.f32 %v4378_v18, %v1099_v11  ;;  %v1105_v44 = vand.u32 4294901760, %v4405_v35 }
  0xdd   :  { %547 = vmatmul.f32.gmra.mxu2 %v546_v45  ;;  %644 = vmatmul.f32.gmra.mxu3 %v550_v46  ;;  %v551_v49 = vsub.f32 %v494_v40, %v550_v46  ;;  %v4424_v45 = vsub.f32 %v984_v4, %v4409_v36 }
  0xde   :  { %v4332_v56 = vsub.f32 %v3971_v17, %v466_v48  ;;  %v1106_v50 = vsub.f32 %v4405_v35, %v1105_v44 }
  0xdf   :  { %705 = vmatmul.f32.gmra.mxu0 %v551_v49  ;;  %v552_v58 = vand.u32 4294901760, %v551_v49  ;;  %v1111_v57 = vand.u32 4294901760, %v4424_v45 }
  0xe0   :  { %v482_v10 = vmul.f32 %v4332_v56, %v4332_v56 }
  0xe1   :  { %764 = vmatmul.f32.gmra.mxu1 %v552_v58  ;;  %v553_v16 = vsub.f32 %v551_v49, %v552_v58  ;;  %v1101_v49 = vand.u32 4294901760, %v1100_v43 }
  0xe2   :  { %v497_v1 = vsel %vm61_vm0, %v482_v10, 0 }
  0xe3   :  { %v469_v2 = vpop.f32.mrf.mxu1  ;;  %v554_v6 = vand.u32 4294901760, %v553_v16  ;;  %v558_v13 = vand.u32 4294901760, %v497_v1  ;;  %v4445_v16 = vand.u32 4294901760, %v982_v12 }
  0xe4   :  { %v470_v8 = vadd.f32 %v469_v2, %v421_v60  ;;  %v981_v60 = vld [vmem:[%s6103_s4 + $0x8] sm:$0xff]  ;;  %v1112_v2 = vsub.f32 %v4424_v45, %v1111_v57 }
  0xe5   :  { %555 = vmatmul.f32.gmra.mxu2 %v554_v6  ;;  %648 = vmatmul.f32.gmra.mxu3 %v558_v13  ;;  %v559_v22 = vsub.f32 %v497_v1, %v558_v13  ;;  %v1107_v1 = vand.u32 4294901760, %v1106_v50 }
  0xe6   :  { %v4338_v17 = vsub.f32 %v4044_v42, %v470_v8  ;;  %v1122_v8 = vsub.f32 %v982_v12, %v4445_v16 }
  0xe7   :  { %710 = vmatmul.f32.gmra.mxu0 %v559_v22  ;;  %v560_v33 = vand.u32 4294901760, %v559_v22 }
  0xe8   :  { %v483_v34 = vmul.f32 %v4338_v17, %v4338_v17 }
  0xe9   :  { %770 = vmatmul.f32.gmra.mxu1 %v560_v33  ;;  %v561_v39 = vsub.f32 %v559_v22, %v560_v33  ;;  %v980_v22 = vld [vmem:[%s6103_s4] sm:$0xff] }
  0xea   :  { %v500_v41 = vsel %vm61_vm0, %v483_v34, 0  ;;  %v1113_v34 = vand.u32 4294901760, %v1112_v2 }
  0xeb   :  { %v562_v52 = vand.u32 4294901760, %v561_v39  ;;  %v566_v53 = vand.u32 4294901760, %v500_v41 }
  0xed   :  { %563 = vmatmul.f32.gmra.mxu2 %v562_v52  ;;  %652 = vmatmul.f32.gmra.mxu3 %v566_v53  ;;  %v567_v54 = vsub.f32 %v500_v41, %v566_v53  ;;  %v4463_v52 = vand.u32 4294901760, %v980_v22 }
  0xef   :  { %715 = vmatmul.f32.gmra.mxu0 %v567_v54  ;;  %v568_v55 = vand.u32 4294901760, %v567_v54 }
  0xf1   :  { %776 = vmatmul.f32.gmra.mxu1 %v568_v55  ;;  %v569_v59 = vsub.f32 %v567_v54, %v568_v55  ;;  %v1123_v54 = vand.u32 4294901760, %v1122_v8 }
  0xf3   :  { %v570_v42 = vand.u32 4294901760, %v569_v59  ;;  %v1124_v9 = vsub.f32 %v1122_v8, %v1123_v54 }
  0xf5   :  { %571 = vmatmul.f32.gmra.mxu2 %v570_v42  ;;  %870 = vmatmul.f32.vlgmr.msrb.gmra.mxu3 %v4297_v61  ;;  %v1125_v4 = vand.u32 4294901760, %v1124_v9 }
  0xfd   :  { %821 = vmatmul.f32.vlgmr.msrb.gmra.mxu2 %v4297_v61  ;;  %874 = vmatmul.f32.gmra.mxu3 %v4307_v62  ;;  %v987_v61 = vld [vmem:[%s6103_s4 + $0x38] sm:$0xff] }
 0x105   :  { %825 = vmatmul.f32.gmra.mxu2 %v4307_v62  ;;  %878 = vmatmul.f32.gmra.mxu3 %v4319_v25  ;;  %v4356_v62 = vand.u32 4294901760, %v987_v61 }
 0x107   :  { %v4359_v7 = vsub.f32 %v987_v61, %v4356_v62  ;;  %1019 = vmatpush.msrb.mxu0 %v4356_v62  ;;  %1236 = vmatpush.msra.mxu3 %v4356_v62  ;;  %v1134_v61 = vsub.f32 %v980_v22, %v4463_v52 }
 0x109   :  { %1174 = vmatpush.msra.mxu2 %v4359_v7  ;;  %v1093_v5 = vand.u32 4294901760, %v4359_v7  ;;  %1021 = vmatpush.msrb.mxu0 %v4372_v14 }
 0x10a   :  { %1238 = vmatpush.msra.mxu3 %v4372_v14 }
 0x10b   :  { %v1094_v15 = vsub.f32 %v4359_v7, %v1093_v5  ;;  %1177 = vmatpush.msra.mxu2 %v4378_v18  ;;  %1023 = vmatpush.msrb.mxu0 %v4398_v30 }
 0x10c   :  { %1240 = vmatpush.msra.mxu3 %v4398_v30 }
 0x10d   :  { %829 = vmatmul.f32.gmra.mxu2 %v4319_v25  ;;  %882 = vmatmul.f32.gmra.mxu3 %v550_v46  ;;  %v1095_v20 = vand.u32 4294901760, %v1094_v15  ;;  %v1135_v15 = vand.u32 4294901760, %v1134_v61 }
 0x10e   :  { %1180 = vmatpush.msra.mxu2 %v4405_v35  ;;  %1025 = vmatpush.msrb.mxu0 %v4409_v36 }
 0x10f   :  { %1096 = vmatpush.msrb.mxu1 %v1095_v20  ;;  %1242 = vmatpush.msra.mxu3 %v4409_v36 }
 0x110   :  { %1183 = vmatpush.msra.mxu2 %v4424_v45  ;;  %v1136_v45 = vsub.f32 %v1134_v61, %v1135_v15 }
 0x111   :  { %1102 = vmatpush.msrb.mxu1 %v1101_v49 }
 0x112   :  { %v1137_v12 = vand.u32 4294901760, %v1136_v45 }
 0x113   :  { %1108 = vmatpush.msrb.mxu1 %v1107_v1 }
 0x115   :  { %833 = vmatmul.f32.gmra.mxu2 %v550_v46  ;;  %886 = vmatmul.f32.gmra.mxu3 %v558_v13  ;;  %v4427_v46 = vand.u32 4294901760, %v983_v37 }
 0x116   :  { %1114 = vmatpush.msrb.mxu1 %v1113_v34 }
 0x117   :  { %v4441_v58 = vsub.f32 %v983_v37, %v4427_v46  ;;  %1027 = vmatpush.msrb.mxu0 %v4427_v46  ;;  %1244 = vmatpush.msra.mxu3 %v4427_v46 }
 0x119   :  { %1186 = vmatpush.msra.mxu2 %v4441_v58  ;;  %v1117_v6 = vand.u32 4294901760, %v4441_v58  ;;  %1029 = vmatpush.msrb.mxu0 %v4445_v16 }
 0x11a   :  { %1246 = vmatpush.msra.mxu3 %v4445_v16 }
 0x11b   :  { %v1118_v39 = vsub.f32 %v4441_v58, %v1117_v6  ;;  %1189 = vmatpush.msra.mxu2 %v1122_v8 }
 0x11d   :  { %837 = vmatmul.f32.gmra.mxu2 %v558_v13  ;;  %890 = vmatmul.f32.gmra.mxu3 %v566_v53  ;;  %v4453_v13 = vand.u32 4294901760, %v981_v60  ;;  %v1119_v42 = vand.u32 4294901760, %v1118_v39 }
 0x11f   :  { %v1128_v41 = vsub.f32 %v981_v60, %v4453_v13  ;;  %1031 = vmatpush.msrb.mxu0 %v4453_v13  ;;  %1248 = vmatpush.msra.mxu3 %v4453_v13 }
 0x120   :  { %1120 = vmatpush.msrb.mxu1 %v1119_v42 }
 0x121   :  { %1192 = vmatpush.msra.mxu2 %v1128_v41  ;;  %1033 = vmatpush.msrb.mxu0 %v4463_v52 }
 0x122   :  { %1250 = vmatpush.msra.mxu3 %v4463_v52  ;;  %1126 = vmatpush.msrb.mxu1 %v1125_v4 }
 0x123   :  { %1195 = vmatpush.msra.mxu2 %v1134_v61  ;;  %1299 = vmatpush.msra.mxu0 %v1093_v5 }
 0x125   :  { %841 = vmatmul.f32.gmra.mxu2 %v566_v53  ;;  %1303 = vmatpush.msra.mxu0 %v1099_v11 }
 0x127   :  { %1307 = vmatpush.msra.mxu0 %v1105_v44 }
 0x129   :  { %1311 = vmatpush.msra.mxu0 %v1111_v57 }
 0x12b   :  { %1315 = vmatpush.msra.mxu0 %v1117_v6 }
 0x12d   :  { %1319 = vmatpush.msra.mxu0 %v1123_v54 }
 0x144   :  { %v4387_v25 = vpop.f32.mrf.mxu0 }
 0x146   :  { %v4396_v29 = vpop.f32.mrf.mxu1 }
 0x148   :  { %v4349_v63 = vpop.f32.mrf.mxu3 }
 0x14c   :  { %v4433_v48 = vpop.f32.mrf.mxu0 }
 0x14e   :  { %v753_v33 = vpop.f32.mrf.mxu1 }
 0x150   :  { %v532_v27 = vpop.f32.mrf.mxu2  ;;  %v4351_v0 = vpop.f32.mrf.mxu3 }
 0x151   :  { %v533_v10 = vadd.f32 1e-05, %v532_v27  ;;  %v1129_v27 = vand.u32 4294901760, %v1128_v41 }
 0x153   :  { %v634_v53 = vadd.f32 %v4349_v63, %v533_v10  ;;  %v1130_v63 = vsub.f32 %v1128_v41, %v1129_v27  ;;  %1323 = vmatpush.msra.mxu0 %v1129_v27  ;;  %v4512_v27 = vld [vmem:[%s6102_s2] ss:$0 sm:$0xff] }
 0x154   :  { %v701_v37 = vpop.f32.mrf.mxu0 }
 0x155   :  { %v692_v28 = vadd.f32 %v4387_v25, %v634_v53  ;;  %v1131_v43 = vand.u32 4294901760, %v1130_v63  ;;  %1327 = vmatpush.msra.mxu0 %v1135_v15 }
 0x157   :  { %v748_v50 = vadd.f32 %v4396_v29, %v692_v28  ;;  %1132 = vmatpush.msrb.mxu1 %v1131_v43  ;;  %v1409_v43 = vld [vmem:[%s6104_s5 + $0x38] sm:$0xff] }
 0x158   :  { %v4363_v32 = vpop.f32.mrf.mxu2  ;;  %v4365_v3 = vpop.f32.mrf.mxu3 }
 0x159   :  { %v541_v20 = vadd.f32 1e-05, %v4363_v32  ;;  %v759_v32 = vpop.f32.mrf.mxu1  ;;  %1138 = vmatpush.msrb.mxu1 %v1137_v12 }
 0x15b   :  { %v638_v49 = vadd.f32 %v4351_v0, %v541_v20  ;;  %1362 = vmatpush.msra.mxu1 %v4356_v62 }
 0x15c   :  { %v706_v0 = vpop.f32.mrf.mxu0 }
 0x15d   :  { %v697_v58 = vadd.f32 %v4433_v48, %v638_v49  ;;  %1364 = vmatpush.msra.mxu1 %v4372_v14 }
 0x15f   :  { %1366 = vmatpush.msra.mxu1 %v4398_v30  ;;  %v754_v35 = vadd.f32 %v753_v33, %v697_v58 }
 0x160   :  { %v4382_v23 = vpop.f32.mrf.mxu2  ;;  %v4384_v24 = vpop.f32.mrf.mxu3 }
 0x161   :  { %v549_v18 = vadd.f32 1e-05, %v4382_v23  ;;  %1368 = vmatpush.msra.mxu1 %v4409_v36  ;;  %v765_v23 = vpop.f32.mrf.mxu1 }
 0x163   :  { %v642_v29 = vadd.f32 %v4365_v3, %v549_v18  ;;  %1370 = vmatpush.msra.mxu1 %v4427_v46 }
 0x164   :  { %v711_v2 = vpop.f32.mrf.mxu0 }
 0x165   :  { %v702_v10 = vadd.f32 %v701_v37, %v642_v29  ;;  %1372 = vmatpush.msra.mxu1 %v4445_v16 }
 0x167   :  { %1374 = vmatpush.msra.mxu1 %v4453_v13  ;;  %v760_v36 = vadd.f32 %v759_v32, %v702_v10 }
 0x168   :  { %v4389_v51 = vpop.f32.mrf.mxu2  ;;  %v4391_v26 = vpop.f32.mrf.mxu3 }
 0x169   :  { %v557_v14 = vadd.f32 1e-05, %v4389_v51  ;;  %1376 = vmatpush.msra.mxu1 %v4463_v52  ;;  %v771_v13 = vpop.f32.mrf.mxu1  ;;  %v4503_v52 = vld [vmem:[%s6101_s1] ss:$0 sm:$0xff] }
 0x16b   :  { %v646_v30 = vadd.f32 %v4384_v24, %v557_v14 }
 0x16c   :  { %v716_v28 = vpop.f32.mrf.mxu0 }
 0x16d   :  { %v707_v39 = vadd.f32 %v706_v0, %v646_v30  ;;  %v1406_v30 = vld [vmem:[%s6104_s5 + $0x20] sm:$0xff] }
 0x16f   :  { %v766_v61 = vadd.f32 %v765_v23, %v707_v39 }
 0x170   :  { %v4414_v38 = vpop.f32.mrf.mxu2  ;;  %v4416_v40 = vpop.f32.mrf.mxu3 }
 0x171   :  { %v565_v33 = vadd.f32 1e-05, %v4414_v38 }
 0x178   :  { %v4467_v55 = vpop.f32.mrf.mxu2  ;;  %v871_v59 = vpop.f32.mrf.mxu3 }
 0x179   :  { %v573_v16 = vadd.f32 1e-05, %v4467_v55  ;;  %v650_v55 = vadd.f32 %v4391_v26, %v565_v33 }
 0x180   :  { %v822_v25 = vpop.f32.mrf.mxu2  ;;  %v875_v5 = vpop.f32.mrf.mxu3 }
 0x181   :  { %v823_v7 = vadd.f32 %v822_v25, %v748_v50  ;;  %v4525_v50 = vand.u32 4294901760, %v1409_v43  ;;  %v1408_v25 = vld [vmem:[%s6104_s5 + $0x30] sm:$0xff] }
 0x183   :  { %v872_v11 = vadd.f32 %v871_v59, %v823_v7  ;;  %v654_v59 = vadd.f32 %v4416_v40, %v573_v16  ;;  %v777_v7 = vpop.f32.mrf.mxu1  ;;  %1423 = vmatpush.msrb.mxu2 %v4525_v50  ;;  %v4537_v58 = vsub.f32 %v1409_v43, %v4525_v50  ;;  %v4579_v16 = vand.u32 4294901760, %v1406_v30 }
 0x185   :  { %3808 = vrsqrt.f32 %v872_v11  ;;  %vm900_vm2 = vweird.f32 %v872_v11  ;;  %v717_v45 = vadd.f32 %v716_v28, %v654_v59  ;;  %v1497_v10 = vand.u32 4294901760, %v4537_v58 }
 0x188   :  { %v826_v44 = vpop.f32.mrf.mxu2  ;;  %v879_v1 = vpop.f32.mrf.mxu3 }
 0x189   :  { %v827_v62 = vadd.f32 %v826_v44, %v754_v35  ;;  %v778_v35 = vadd.f32 %v777_v7, %v717_v45  ;;  %v4540_v44 = vand.u32 4294901760, %v1408_v25 }
 0x18b   :  { %v3809_v48 = vpop.eup %3808  ;;  %v876_v57 = vadd.f32 %v875_v5, %v827_v62  ;;  %v1407_v62 = vld [vmem:[%s6104_s5 + $0x28] sm:$0xff]  ;;  %1425 = vmatpush.msrb.mxu2 %v4540_v44 }
 0x18c   :  { %v895_v60 = vmul.f32 %v3809_v48, %v872_v11  ;;  %vm901_vm1 = vweird.f32 %v3809_v48 }
 0x18d   :  { %3810 = vrsqrt.f32 %v876_v57  ;;  %vm902_vm3 = vmor %vm900_vm2, %vm901_vm1  ;;  %vm910_vm5 = vweird.f32 %v876_v57 }
 0x18e   :  { %v896_v3 = vmul.f32 %v3809_v48, %v895_v60  ;;  %v4550_v60 = vand.u32 4294901760, %v1407_v62 }
 0x190   :  { %v897_v6 = vmul.f32 0.5, %v896_v3  ;;  %v830_v8 = vpop.f32.mrf.mxu2  ;;  %v883_v38 = vpop.f32.mrf.mxu3  ;;  %v4556_v3 = vsub.f32 %v1408_v25, %v4540_v44  ;;  %1427 = vmatpush.msrb.mxu2 %v4550_v60 }
 0x191   :  { %v831_v46 = vadd.f32 %v830_v8, %v760_v36  ;;  %v4570_v8 = vsub.f32 %v1407_v62, %v4550_v60 }
 0x192   :  { %v898_v51 = vsub.f32 1.5, %v897_v6  ;;  %v1498_v6 = vsub.f32 %v4537_v58, %v1497_v10  ;;  %v1503_v33 = vand.u32 4294901760, %v4556_v3  ;;  %1429 = vmatpush.msrb.mxu2 %v4579_v16 }
 0x193   :  { %v3811_v22 = vpop.eup %3810  ;;  %v4498_v34 = vadd.f32 %v879_v1, %v831_v46 }
 0x194   :  { %v899_v41 = vmul.f32 %v3809_v48, %v898_v51  ;;  %v905_v24 = vmul.f32 %v3811_v22, %v876_v57  ;;  %vm911_vm4 = vweird.f32 %v3811_v22 }
 0x195   :  { %3812 = vrsqrt.f32 %v4498_v34  ;;  %vm912_vm6 = vmor %vm910_vm5, %vm911_vm4  ;;  %vm920_vm8 = vweird.f32 %v4498_v34 }
 0x196   :  { %v903_v53 = vsel %vm902_vm3, %v3809_v48, %v899_v41  ;;  %v906_v54 = vmul.f32 %v3811_v22, %v905_v24 }
 0x197   :  { %v954_v42 = vmul.f32 %v903_v53, %v4292_v47  ;;  %v712_v47 = vadd.f32 %v711_v2, %v650_v55  ;;  %v1499_v53 = vand.u32 4294901760, %v1498_v6 }
 0x198   :  { %v907_v9 = vmul.f32 0.5, %v906_v54  ;;  %v834_v63 = vpop.f32.mrf.mxu2  ;;  %v887_v48 = vpop.f32.mrf.mxu3  ;;  %v1404_v54 = vld [vmem:[%s6104_s5 + $0x10] sm:$0xff] }
 0x199   :  { %v964_v15 = vmul.f32 %v4503_v52, %v954_v42  ;;  %v835_v20 = vadd.f32 %v834_v63, %v766_v61  ;;  %v772_v29 = vadd.f32 %v771_v13, %v712_v47  ;;  %1500 = vmatpush.msrb.mxu3 %v1499_v53  ;;  %v1509_v63 = vand.u32 4294901760, %v4570_v8 }
 0x19a   :  { %v908_v4 = vsub.f32 1.5, %v907_v9  ;;  %v1504_v9 = vsub.f32 %v4556_v3, %v1503_v33 }
 0x19b   :  { %v4515_v37 = vpop.eup %3812  ;;  %v974_v26 = vadd.f32 %v4512_v27, %v964_v15  ;;  %v4518_v40 = vadd.f32 %v883_v38, %v835_v20  ;;  %v4614_v15 = vsub.f32 %v1406_v30, %v4579_v16  ;;  %v1510_v45 = vsub.f32 %v4570_v8, %v1509_v63 }
 0x19c   :  { %v909_v12 = vmul.f32 %v3811_v22, %v908_v4  ;;  %v915_v49 = vmul.f32 %v4515_v37, %v4498_v34  ;;  %vm921_vm7 = vweird.f32 %v4515_v37  ;;  %v1405_v34 = vld [vmem:[%s6104_s5 + $0x18] sm:$0xff]  ;;  %v1505_v43 = vand.u32 4294901760, %v1504_v9 }
 0x19d   :  { %v993_v32 = vsel %vm61_vm0, %v974_v26, 0  ;;  %3814 = vrsqrt.f32 %v4518_v40  ;;  %vm922_vm9 = vmor %vm920_vm8, %vm921_vm7  ;;  %v4622_v4 = vand.u32 4294901760, %v1405_v34  ;;  %v1515_v25 = vand.u32 4294901760, %v4614_v15 }
 0x19e   :  { %v4532_v5 = vand.u32 4294901760, %v993_v32  ;;  %v913_v18 = vsel %vm912_vm6, %v3811_v22, %v909_v12  ;;  %v916_v11 = vmul.f32 %v4515_v37, %v915_v49  ;;  %1506 = vmatpush.msrb.mxu3 %v1505_v43  ;;  %vm930_vm11 = vweird.f32 %v4518_v40 }
 0x19f   :  { %v955_v0 = vmul.f32 %v913_v18, %v4302_v19  ;;  %v4637_v7 = vsub.f32 %v1405_v34, %v4622_v4  ;;  %1431 = vmatpush.msrb.mxu2 %v4622_v4 }
 0x1a0   :  { %v917_v23 = vmul.f32 0.5, %v916_v11  ;;  %v838_v14 = vpop.f32.mrf.mxu2  ;;  %1140 = vmatmul.f32.vlgmr.msrb.gmra.mxu1 %v4532_v5  ;;  %v4547_v57 = vsub.f32 %v993_v32, %v4532_v5  ;;  %v891_v49 = vpop.f32.mrf.mxu3 }
 0x1a1   :  { %v965_v19 = vmul.f32 %v4503_v52, %v955_v0  ;;  %v839_v1 = vadd.f32 %v838_v14, %v772_v29  ;;  %1640 = vmatpush.msrb.mxu1 %v4525_v50  ;;  %v1511_v29 = vand.u32 4294901760, %v1510_v45 }
 0x1a2   :  { %v918_v36 = vsub.f32 1.5, %v917_v23  ;;  %1198 = vmatmul.f32.vlgmr.msra.gmra.mxu2 %v4547_v57  ;;  %v4564_v2 = vand.u32 4294901760, %v4547_v57 }
 0x1a3   :  { %v4572_v46 = vpop.eup %3814  ;;  %v975_v51 = vadd.f32 %v4512_v27, %v965_v19  ;;  %v4575_v22 = vadd.f32 %v887_v48, %v839_v1  ;;  %1642 = vmatpush.msrb.mxu1 %v4540_v44  ;;  %1512 = vmatpush.msrb.mxu3 %v1511_v29  ;;  %v1403_v19 = vld [vmem:[%s6104_s5 + $0x8] sm:$0xff]  ;;  %v1402_v1 = vld [vmem:[%s6104_s5] sm:$0xff] }
 0x1a4   :  { %v919_v39 = vmul.f32 %v4515_v37, %v918_v36  ;;  %v925_v13 = vmul.f32 %v4572_v46, %v4518_v40  ;;  %1254 = vmatmul.f32.vlgmr.msra.gmra.mxu3 %v4564_v2  ;;  %v1037_v41 = vsub.f32 %v4547_v57, %v4564_v2  ;;  %vm931_vm10 = vweird.f32 %v4572_v46 }
 0x1a5   :  { %v996_v24 = vsel %vm61_vm0, %v975_v51, 0  ;;  %3816 = vrsqrt.f32 %v4575_v22  ;;  %1644 = vmatpush.msrb.mxu1 %v4550_v60  ;;  %vm932_vm12 = vmor %vm930_vm11, %vm931_vm10  ;;  %v1516_v40 = vsub.f32 %v4614_v15, %v1515_v25  ;;  %v4687_v34 = vand.u32 4294901760, %v1403_v19 }
 0x1a6   :  { %v4602_v38 = vand.u32 4294901760, %v996_v24  ;;  %v923_v55 = vsel %vm922_vm9, %v4515_v37, %v919_v39  ;;  %v926_v59 = vmul.f32 %v4572_v46, %v925_v13  ;;  %v4606_v42 = vand.u32 4294901760, %v1037_v41 }
 0x1a7   :  { %v956_v61 = vmul.f32 %v923_v55, %v4312_v21  ;;  %1646 = vmatpush.msrb.mxu1 %v4579_v16  ;;  %v4624_v37 = vand.u32 4294901760, %v1404_v54  ;;  %v1517_v13 = vand.u32 4294901760, %v1516_v40  ;;  %v1521_v41 = vand.u32 4294901760, %v4637_v7 }
 0x1a8   :  { %v927_v20 = vmul.f32 0.5, %v926_v59  ;;  %v842_v28 = vpop.f32.mrf.mxu2  ;;  %1039 = vmatmul.f32.vlgmr.msrb.gmra.mxu0 %v4606_v42  ;;  %1144 = vmatmul.f32.gmra.mxu1 %v4602_v38  ;;  %v4620_v21 = vsub.f32 %v996_v24, %v4602_v38  ;;  %vm940_vm14 = vweird.f32 %v4575_v22 }
 0x1a9   :  { %v966_v26 = vmul.f32 %v4503_v52, %v956_v61  ;;  %v843_v47 = vadd.f32 %v842_v28, %v778_v35  ;;  %1578 = vmatpush.msrb.mxu0 %v4537_v58  ;;  %1648 = vmatpush.msrb.mxu1 %v4622_v4  ;;  %v4647_v35 = vsub.f32 %v1404_v54, %v4624_v37  ;;  %v4689_v54 = vand.u32 4294901760, %v1402_v1 }
 0x1aa   :  { %v928_v12 = vsub.f32 1.5, %v927_v20  ;;  %1203 = vmatmul.f32.gmra.mxu2 %v4620_v21  ;;  %v4633_v32 = vand.u32 4294901760, %v4620_v21  ;;  %1518 = vmatpush.msrb.mxu3 %v1517_v13  ;;  %v4705_v20 = vsub.f32 %v1403_v19, %v4687_v34 }
 0x1ab   :  { %v4640_v18 = vpop.eup %3816  ;;  %v976_v11 = vadd.f32 %v4512_v27, %v966_v26  ;;  %v4643_v0 = vadd.f32 %v891_v49, %v843_v47  ;;  %1581 = vmatpush.msrb.mxu0 %v4556_v3  ;;  %1433 = vmatpush.msrb.mxu2 %v4624_v37  ;;  %v1527_v24 = vand.u32 4294901760, %v4647_v35  ;;  %v4708_v28 = vsub.f32 %v1402_v1, %v4689_v54 }
 0x1ac   :  { %v929_v62 = vmul.f32 %v4572_v46, %v928_v12  ;;  %v935_v23 = vmul.f32 %v4640_v18, %v4575_v22  ;;  %1260 = vmatmul.f32.gmra.mxu3 %v4633_v32  ;;  %v1045_v48 = vsub.f32 %v4620_v21, %v4633_v32  ;;  %1650 = vmatpush.msrb.mxu1 %v4624_v37  ;;  %vm941_vm13 = vweird.f32 %v4640_v18 }
 0x1ad   :  { %v999_v14 = vsel %vm61_vm0, %v976_v11, 0  ;;  %3818 = vrsqrt.f32 %v4643_v0  ;;  %1584 = vmatpush.msrb.mxu0 %v4570_v8  ;;  %v1528_v59 = vsub.f32 %v4647_v35, %v1527_v24  ;;  %1435 = vmatpush.msrb.mxu2 %v4687_v34  ;;  %vm942_vm15 = vmor %vm940_vm14, %vm941_vm13  ;;  %v1539_v22 = vand.u32 4294901760, %v4708_v28 }
 0x1ae   :  { %v4671_v30 = vand.u32 4294901760, %v999_v14  ;;  %v933_v36 = vsel %vm932_vm12, %v4572_v46, %v929_v62  ;;  %v936_v6 = vmul.f32 %v4640_v18, %v935_v23  ;;  %v4675_v51 = vand.u32 4294901760, %v1045_v48  ;;  %1652 = vmatpush.msrb.mxu1 %v4687_v34 }
 0x1af   :  { %v957_v39 = vmul.f32 %v933_v36, %v4324_v31  ;;  %v1522_v31 = vsub.f32 %v4637_v7, %v1521_v41  ;;  %1587 = vmatpush.msrb.mxu0 %v4614_v15  ;;  %v1529_v45 = vand.u32 4294901760, %v1528_v59  ;;  %v1533_v62 = vand.u32 4294901760, %v4705_v20  ;;  %1437 = vmatpush.msrb.mxu2 %v4689_v54 }
 0x1b0   :  { %v937_v53 = vmul.f32 0.5, %v936_v6  ;;  %1047 = vmatmul.f32.gmra.mxu0 %v4675_v51  ;;  %1148 = vmatmul.f32.gmra.mxu1 %v4671_v30  ;;  %v4685_v46 = vsub.f32 %v999_v14, %v4671_v30  ;;  %v1540_v36 = vsub.f32 %v4708_v28, %v1539_v22  ;;  %vm950_vm2 = vweird.f32 %v4643_v0 }
 0x1b1   :  { %v967_v55 = vmul.f32 %v4503_v52, %v957_v39  ;;  %v1523_v43 = vand.u32 4294901760, %v1522_v31  ;;  %1590 = vmatpush.msrb.mxu0 %v4637_v7  ;;  %1654 = vmatpush.msrb.mxu1 %v4689_v54  ;;  %v1534_v1 = vsub.f32 %v4705_v20, %v1533_v62  ;;  %vm2008_vm12 = vcmask 1046528  }
 0x1b2   :  { %v938_v61 = vsub.f32 1.5, %v937_v53  ;;  %1208 = vmatmul.f32.gmra.mxu2 %v4685_v46  ;;  %v4702_v9 = vand.u32 4294901760, %v4685_v46  ;;  %v1541_v39 = vand.u32 4294901760, %v1540_v36  ;;  %vm2026_vm13 = vcmask 1045504  }
 0x1b3   :  { %v3819_v26 = vpop.eup %3818  ;;  %v977_v47 = vadd.f32 %v4512_v27, %v967_v55  ;;  %1524 = vmatpush.msrb.mxu3 %v1523_v43  ;;  %1703 = vmatpush.msra.mxu2 %v1497_v10  ;;  %v1535_v10 = vand.u32 4294901760, %v1534_v1  ;;  %vm2044_vm14 = vcmask 1044480  }
 0x1b4   :  { %v939_v12 = vmul.f32 %v4640_v18, %v938_v61  ;;  %v945_v49 = vmul.f32 %v3819_v26, %v4643_v0  ;;  %1266 = vmatmul.f32.gmra.mxu3 %v4702_v9  ;;  %v1053_v11 = vsub.f32 %v4685_v46, %v4702_v9  ;;  %1593 = vmatpush.msrb.mxu0 %v4647_v35  ;;  %vm951_vm1 = vweird.f32 %v3819_v26 }
 0x1b5   :  { %v1002_v29 = vsel %vm61_vm0, %v977_v47, 0  ;;  %1530 = vmatpush.msrb.mxu3 %v1529_v45  ;;  %1707 = vmatpush.msra.mxu2 %v1503_v33  ;;  %vm952_vm3 = vmor %vm950_vm2, %vm951_vm1  ;;  %vm2080_vm1 = vcmask 1042432   ;;  %vm2098_vm2 = vcmask 1041408  }
 0x1b6   :  { %v4727_v23 = vand.u32 4294901760, %v1002_v29  ;;  %v943_v48 = vsel %vm942_vm15, %v4640_v18, %v939_v12  ;;  %v946_v14 = vmul.f32 %v3819_v26, %v945_v49  ;;  %v4730_v40 = vand.u32 4294901760, %v1053_v11  ;;  %1596 = vmatpush.msrb.mxu0 %v4705_v20 }
 0x1b7   :  { %v958_v19 = vmul.f32 %v943_v48, %v4332_v56  ;;  %1536 = vmatpush.msrb.mxu3 %v1535_v10  ;;  %1711 = vmatpush.msra.mxu2 %v1509_v63  ;;  %vm2062_vm15 = vcmask 1043456  }
 0x1b8   :  { %v947_v6 = vmul.f32 0.5, %v946_v14  ;;  %1055 = vmatmul.f32.gmra.mxu0 %v4730_v40  ;;  %1152 = vmatmul.f32.gmra.mxu1 %v4727_v23  ;;  %v4741_v18 = vsub.f32 %v1002_v29, %v4727_v23 }
 0x1b9   :  { %v968_v58 = vmul.f32 %v4503_v52, %v958_v19  ;;  %1599 = vmatpush.msrb.mxu0 %v4708_v28  ;;  %1542 = vmatpush.msrb.mxu3 %v1541_v39 }
 0x1ba   :  { %v948_v56 = vsub.f32 1.5, %v947_v6  ;;  %1213 = vmatmul.f32.gmra.mxu2 %v4741_v18  ;;  %v4749_v13 = vand.u32 4294901760, %v4741_v18 }
 0x1bb   :  { %v978_v53 = vadd.f32 %v4512_v27, %v968_v58  ;;  %1715 = vmatpush.msra.mxu2 %v1515_v25  ;;  %1766 = vmatpush.msra.mxu3 %v4525_v50 }
 0x1bc   :  { %v949_v55 = vmul.f32 %v3819_v26, %v948_v56  ;;  %1272 = vmatmul.f32.gmra.mxu3 %v4749_v13  ;;  %v1061_v3 = vsub.f32 %v4741_v18, %v4749_v13 }
 0x1bd   :  { %v1005_v33 = vsel %vm61_vm0, %v978_v53, 0  ;;  %1719 = vmatpush.msra.mxu2 %v1521_v41  ;;  %1768 = vmatpush.msra.mxu3 %v4540_v44 }
 0x1be   :  { %v4762_v31 = vand.u32 4294901760, %v1005_v33  ;;  %v953_v8 = vsel %vm952_vm3, %v3819_v26, %v949_v55  ;;  %v1062_v63 = vand.u32 4294901760, %v1061_v3  ;;  %vm2114_vm3 = vcmask 1040384  }
 0x1bf   :  { %v959_v0 = vmul.f32 %v953_v8, %v4338_v17  ;;  %1723 = vmatpush.msra.mxu2 %v1527_v24  ;;  %1770 = vmatpush.msra.mxu3 %v4550_v60 }
 0x1c0   :  { %1063 = vmatmul.f32.gmra.mxu0 %v1062_v63  ;;  %1156 = vmatmul.f32.gmra.mxu1 %v4762_v31  ;;  %v4770_v59 = vsub.f32 %v1005_v33, %v4762_v31 }
 0x1c1   :  { %v969_v15 = vmul.f32 %v4503_v52, %v959_v0  ;;  %1727 = vmatpush.msra.mxu2 %v1533_v62  ;;  %1772 = vmatpush.msra.mxu3 %v4579_v16 }
 0x1c2   :  { %1218 = vmatmul.f32.gmra.mxu2 %v4770_v59  ;;  %v4778_v17 = vand.u32 4294901760, %v4770_v59 }
 0x1c3   :  { %v979_v50 = vadd.f32 %v4512_v27, %v969_v15  ;;  %1731 = vmatpush.msra.mxu2 %v1539_v22  ;;  %1774 = vmatpush.msra.mxu3 %v4622_v4 }
 0x1c4   :  { %1278 = vmatmul.f32.gmra.mxu3 %v4778_v17  ;;  %v1069_v52 = vsub.f32 %v4770_v59, %v4778_v17 }
 0x1c5   :  { %v1008_v44 = vsel %vm61_vm0, %v979_v50, 0  ;;  %1776 = vmatpush.msra.mxu3 %v4624_v37 }
 0x1c6   :  { %v4787_v25 = vand.u32 4294901760, %v1008_v44  ;;  %v1070_v7 = vand.u32 4294901760, %v1069_v52 }
 0x1c7   :  { %1778 = vmatpush.msra.mxu3 %v4687_v34 }
 0x1c8   :  { %1071 = vmatmul.f32.gmra.mxu0 %v1070_v7  ;;  %1160 = vmatmul.f32.gmra.mxu1 %v4787_v25  ;;  %v4792_v27 = vsub.f32 %v1008_v44, %v4787_v25 }
 0x1c9   :  { %1780 = vmatpush.msra.mxu3 %v4689_v54 }
 0x1ca   :  { %1223 = vmatmul.f32.gmra.mxu2 %v4792_v27  ;;  %v1076_v60 = vand.u32 4294901760, %v4792_v27 }
 0x1cc   :  { %1284 = vmatmul.f32.gmra.mxu3 %v1076_v60  ;;  %v1077_v16 = vsub.f32 %v4792_v27, %v1076_v60 }
 0x1ce   :  { %v1078_v4 = vand.u32 4294901760, %v1077_v16 }
 0x1d0   :  { %1079 = vmatmul.f32.gmra.mxu0 %v1078_v4  ;;  %1378 = vmatmul.f32.vlgmr.msra.gmra.mxu1 %v4532_v5 }
 0x1d2   :  { %1443 = vmatmul.f32.vlgmr.msrb.gmra.mxu2 %v4606_v42 }
 0x1d4   :  { %1544 = vmatmul.f32.vlgmr.msrb.gmra.mxu3 %v4532_v5 }
 0x1d8   :  { %1329 = vmatmul.f32.vlgmr.msra.gmra.mxu0 %v4532_v5  ;;  %1382 = vmatmul.f32.gmra.mxu1 %v4602_v38 }
 0x1da   :  { %1451 = vmatmul.f32.gmra.mxu2 %v4675_v51 }
 0x1dc   :  { %1548 = vmatmul.f32.gmra.mxu3 %v4602_v38 }
 0x1e0   :  { %1333 = vmatmul.f32.gmra.mxu0 %v4602_v38  ;;  %1386 = vmatmul.f32.gmra.mxu1 %v4671_v30 }
 0x1e2   :  { %1459 = vmatmul.f32.gmra.mxu2 %v4730_v40 }
 0x1e4   :  { %1552 = vmatmul.f32.gmra.mxu3 %v4671_v30 }
 0x1e8   :  { %1337 = vmatmul.f32.gmra.mxu0 %v4671_v30  ;;  %1390 = vmatmul.f32.gmra.mxu1 %v4727_v23 }
 0x1ea   :  { %1467 = vmatmul.f32.gmra.mxu2 %v1062_v63 }
 0x1ec   :  { %1556 = vmatmul.f32.gmra.mxu3 %v4727_v23 }
 0x1f0   :  { %1341 = vmatmul.f32.gmra.mxu0 %v4727_v23  ;;  %1394 = vmatmul.f32.gmra.mxu1 %v4762_v31 }
 0x1f2   :  { %1475 = vmatmul.f32.gmra.mxu2 %v1070_v7 }
 0x1f4   :  { %1560 = vmatmul.f32.gmra.mxu3 %v4762_v31 }
 0x1f8   :  { %1345 = vmatmul.f32.gmra.mxu0 %v4762_v31  ;;  %1398 = vmatmul.f32.gmra.mxu1 %v4787_v25 }
 0x1fa   :  { %1483 = vmatmul.f32.gmra.mxu2 %v1078_v4 }
 0x1fc   :  { %1564 = vmatmul.f32.gmra.mxu3 %v4787_v25 }
 0x200   :  { %1349 = vmatmul.f32.gmra.mxu0 %v4787_v25  ;;  %1658 = vmatmul.f32.vlgmr.msrb.gmra.mxu1 %v4564_v2 }
 0x202   :  { %1733 = vmatmul.f32.vlgmr.msra.gmra.mxu2 %v4532_v5 }
 0x204   :  { %1782 = vmatmul.f32.vlgmr.msra.gmra.mxu3 %v4532_v5 }
 0x208   :  { %1602 = vmatmul.f32.vlgmr.msrb.gmra.mxu0 %v4547_v57  ;;  %1664 = vmatmul.f32.gmra.mxu1 %v4633_v32 }
 0x20a   :  { %1737 = vmatmul.f32.gmra.mxu2 %v4602_v38 }
 0x20c   :  { %1786 = vmatmul.f32.gmra.mxu3 %v4602_v38 }
 0x210   :  { %1607 = vmatmul.f32.gmra.mxu0 %v4620_v21  ;;  %1670 = vmatmul.f32.gmra.mxu1 %v4702_v9 }
 0x212   :  { %1741 = vmatmul.f32.gmra.mxu2 %v4671_v30 }
 0x214   :  { %1790 = vmatmul.f32.gmra.mxu3 %v4671_v30  ;;  %v3803_v30 = vld [vmem:[%s6105_s6] ss:$0 sm:$0xff] }
 0x218   :  { %1612 = vmatmul.f32.gmra.mxu0 %v4685_v46  ;;  %1676 = vmatmul.f32.gmra.mxu1 %v4749_v13 }
 0x21a   :  { %1745 = vmatmul.f32.gmra.mxu2 %v4727_v23 }
 0x21c   :  { %1794 = vmatmul.f32.gmra.mxu3 %v4727_v23 }
 0x21d   :  { %v1141_v5 = vpop.f32.mrf.mxu1 }
 0x220   :  { %1617 = vmatmul.f32.gmra.mxu0 %v4741_v18  ;;  %1682 = vmatmul.f32.gmra.mxu1 %v4778_v17 }
 0x222   :  { %1749 = vmatmul.f32.gmra.mxu2 %v4762_v31 }
 0x224   :  { %1798 = vmatmul.f32.gmra.mxu3 %v4762_v31 }
 0x225   :  { %v1040_v57 = vpop.f32.mrf.mxu0  ;;  %v1145_v2 = vpop.f32.mrf.mxu1 }
 0x226   :  { %v1199_v38 = vpop.f32.mrf.mxu2  ;;  %v4854_v2 = vld [vmem:[%s6108_s8] sm:$0xff] }
 0x227   :  { %v1255_v42 = vpop.f32.mrf.mxu3  ;;  %v3804_v38 = vld [vmem:[%s6106_s7] ss:$0 sm:$0xff] }
 0x228   :  { %1622 = vmatmul.f32.gmra.mxu0 %v4770_v59  ;;  %1688 = vmatmul.f32.gmra.mxu1 %v1076_v60 }
 0x22a   :  { %1753 = vmatmul.f32.gmra.mxu2 %v4787_v25 }
 0x22c   :  { %1802 = vmatmul.f32.gmra.mxu3 %v4787_v25 }
 0x22d   :  { %v1048_v21 = vpop.f32.mrf.mxu0  ;;  %v1149_v37 = vpop.f32.mrf.mxu1 }
 0x22e   :  { %v1204_v32 = vpop.f32.mrf.mxu2 }
 0x22f   :  { %v1261_v35 = vpop.f32.mrf.mxu3  ;;  %v6121_v32 = vperm.slane %v4854_v2, 1 }
 0x230   :  { %1627 = vmatmul.f32.gmra.mxu0 %v4792_v27 }
 0x235   :  { %v1056_v51 = vpop.f32.mrf.mxu0  ;;  %v1153_v41 = vpop.f32.mrf.mxu1 }
 0x236   :  { %v1057_v24 = vadd.f32 %v3803_v30, %v1056_v51  ;;  %v1209_v46 = vpop.f32.mrf.mxu2 }
 0x237   :  { %v1267_v34 = vpop.f32.mrf.mxu3 }
 0x238   :  { %v1150_v54 = vadd.f32 %v1149_v37, %v1057_v24  ;;  %v6122_v37 = vperm.slane %v4854_v2, 0  ;;  %v4865_v24 = vld [vmem:[%s6107_s9] ss:$0 sm:$0xff] }
 0x23a   :  { %v1210_v61 = vadd.f32 %v1209_v46, %v1150_v54  ;;  %v1996_v46 = vmul.f32 0.0, %v6122_v37 }
 0x23c   :  { %v1268_v9 = vadd.f32 %v1267_v34, %v1210_v61  ;;  %v4871_v34 = vmul.f32 0.0, %v6121_v32 }
 0x23d   :  { %v1064_v20 = vpop.f32.mrf.mxu0  ;;  %v1157_v28 = vpop.f32.mrf.mxu1 }
 0x23e   :  { %v1065_v26 = vadd.f32 %v3803_v30, %v1064_v20  ;;  %v1214_v47 = vpop.f32.mrf.mxu2  ;;  %v6119_v20 = vperm.slane %v4854_v2, 3  ;;  %v4875_v28 = vadd.f32 %v4865_v24, %v1996_v46 }
 0x23f   :  { %v1273_v43 = vpop.f32.mrf.mxu3 }
 0x240   :  { %v1154_v45 = vadd.f32 %v1153_v41, %v1065_v26  ;;  %v6120_v41 = vperm.slane %v4854_v2, 2  ;;  %v6117_v26 = vrot.slane %v4871_v34, 1 }
 0x242   :  { %v1215_v12 = vadd.f32 %v1214_v47, %v1154_v45  ;;  %v4880_v47 = vmul.f32 0.0, %v6120_v41 }
 0x244   :  { %v1274_v49 = vadd.f32 %v1273_v43, %v1215_v12 }
 0x245   :  { %v1072_v11 = vpop.f32.mrf.mxu0  ;;  %v1161_v29 = vpop.f32.mrf.mxu1 }
 0x246   :  { %v1219_v62 = vpop.f32.mrf.mxu2  ;;  %v6118_v29 = vperm.slane %v4854_v2, 4 }
 0x247   :  { %v1279_v22 = vpop.f32.mrf.mxu3  ;;  %v2017_v62 = vadd.f32 %v6117_v26, %v4875_v28  ;;  %v2540_v26 = vld [vmem:[%s6109_s11 + $0x30] sm:$0xff] }
 0x248   :  { %v6115_v22 = vrot.slane %v4880_v47, 2 }
 0x24d   :  { %v1080_v23 = vpop.f32.mrf.mxu0  ;;  %v1379_v48 = vpop.f32.mrf.mxu1 }
 0x24e   :  { %v1224_v14 = vpop.f32.mrf.mxu2  ;;  %v4889_v23 = vmul.f32 0.0, %v6119_v20  ;;  %v5105_v20 = vand.u32 4294901760, %v2540_v26 }
 0x24f   :  { %v1285_v40 = vpop.f32.mrf.mxu3  ;;  %v4894_v14 = vld [vmem:[%s6108_s8 + $0x8] sm:$0xff] }
 0x250   :  { %6198 = vst [vmem:[#allocation2_spill] sm:$0xff] %v4894_v14 }
 0x251   :  { %6223 = vst [vmem:[#allocation27_spill] sm:$0xff] %v5105_v20 }
 0x255   :  { %v1330_v19 = vpop.f32.mrf.mxu0  ;;  %v1383_v1 = vpop.f32.mrf.mxu1 }
 0x256   :  { %v1444_v36 = vpop.f32.mrf.mxu2  ;;  %v6116_v1 = vperm.slane %v4854_v2, 5 }
 0x257   :  { %v1545_v6 = vpop.f32.mrf.mxu3  ;;  %v2542_v36 = vld [vmem:[%s6109_s11 + $0x40] sm:$0xff] }
 0x25d   :  { %v1334_v18 = vpop.f32.mrf.mxu0  ;;  %v1387_v58 = vpop.f32.mrf.mxu1 }
 0x25e   :  { %v1452_v10 = vpop.f32.mrf.mxu2 }
 0x25f   :  { %v1549_v39 = vpop.f32.mrf.mxu3  ;;  %v2035_v10 = vadd.f32 %v6115_v22, %v2017_v62 }
 0x260   :  { %v6114_v39 = vrot.slane %v4889_v23, 3 }
 0x265   :  { %v1338_v56 = vpop.f32.mrf.mxu0  ;;  %v1391_v13 = vpop.f32.mrf.mxu1 }
 0x266   :  { %v1339_v53 = vadd.f32 %v1338_v56, %v1268_v9  ;;  %v1460_v55 = vpop.f32.mrf.mxu2  ;;  %v4904_v56 = vmul.f32 0.0, %v6118_v29 }
 0x267   :  { %v1553_v3 = vpop.f32.mrf.mxu3  ;;  %v1461_v51 = vadd.f32 %v3804_v38, %v1460_v55 }
 0x268   :  { %v4847_v33 = vadd.f32 %v1387_v58, %v1339_v53 }
 0x269   :  { %v1554_v54 = vadd.f32 %v1553_v3, %v1461_v51  ;;  %v4909_v3 = vld [vmem:[%s6108_s8 + $0x10] sm:$0xff] }
 0x26a   :  { %6199 = vst [vmem:[#allocation3_spill] sm:$0xff] %v4909_v3 }
 0x26d   :  { %v1342_v31 = vpop.f32.mrf.mxu0  ;;  %v1395_v8 = vpop.f32.mrf.mxu1 }
 0x26e   :  { %v1343_v63 = vadd.f32 %v1342_v31, %v1274_v49  ;;  %v1468_v0 = vpop.f32.mrf.mxu2  ;;  %v4912_v31 = vperm.slane %v4894_v14, 0  ;;  %v4915_v8 = vperm.slane %v4894_v14, 1 }
 0x26f   :  { %v1557_v59 = vpop.f32.mrf.mxu3  ;;  %v1469_v49 = vadd.f32 %v3804_v38, %v1468_v0  ;;  %v4918_v0 = vperm.slane %v4894_v14, 2  ;;  %v2547_v38 = vld [vmem:[%s6109_s11 + $0x68] sm:$0xff] }
 0x270   :  { %v4849_v15 = vadd.f32 %v1391_v13, %v1343_v63  ;;  %v4965_v46 = vand.u32 4294901760, %v2547_v38 }
 0x271   :  { %v1558_v40 = vadd.f32 %v1557_v59, %v1469_v49  ;;  %v4921_v59 = vperm.slane %v4894_v14, 3 }
 0x273   :  { %6200 = vst [vmem:[#allocation4_spill] sm:$0xff] %v4921_v59 }
 0x275   :  { %v1346_v17 = vpop.f32.mrf.mxu0  ;;  %v1399_v50 = vpop.f32.mrf.mxu1 }
 0x276   :  { %v1476_v52 = vpop.f32.mrf.mxu2  ;;  %v4924_v17 = vperm.slane %v4894_v14, 4  ;;  %v4927_v50 = vperm.slane %v4894_v14, 5 }
 0x277   :  { %v1561_v44 = vpop.f32.mrf.mxu3 }
 0x278   :  { %6201 = vst [vmem:[#allocation5_spill] sm:$0xff] %v4924_v17  ;;  %v4930_v44 = vperm.slane %v4894_v14, 6  ;;  %v2536_v17 = vld [vmem:[%s6109_s11 + $0x10] sm:$0xff] }
 0x279   :  { %6202 = vst [vmem:[#allocation6_spill] sm:$0xff] %v4927_v50 }
 0x27a   :  { %6203 = vst [vmem:[#allocation7_spill] sm:$0xff] %v4930_v44 }
 0x27d   :  { %v1350_v25 = vpop.f32.mrf.mxu0  ;;  %v1659_v7 = vpop.f32.mrf.mxu1 }
 0x27e   :  { %v1484_v27 = vpop.f32.mrf.mxu2  ;;  %v4934_v7 = vperm.slane %v4909_v3, 0 }
 0x27f   :  { %v1565_v60 = vpop.f32.mrf.mxu3  ;;  %v4937_v27 = vperm.slane %v4909_v3, 1 }
 0x280   :  { %6204 = vst [vmem:[#allocation8_spill] sm:$0xff] %v4934_v7  ;;  %v4940_v60 = vperm.slane %v4909_v3, 2 }
 0x281   :  { %6205 = vst [vmem:[#allocation9_spill] sm:$0xff] %v4937_v27 }
 0x282   :  { %6206 = vst [vmem:[#allocation10_spill] sm:$0xff] %v4940_v60 }
 0x285   :  { %v1603_v16 = vpop.f32.mrf.mxu0  ;;  %v1665_v4 = vpop.f32.mrf.mxu1 }
 0x286   :  { %v1734_v5 = vpop.f32.mrf.mxu2  ;;  %v4943_v16 = vperm.slane %v4909_v3, 3 }
 0x287   :  { %v1783_v57 = vpop.f32.mrf.mxu3  ;;  %v2549_v5 = vld [vmem:[%s6109_s11 + $0x78] sm:$0xff] }
 0x288   :  { %6207 = vst [vmem:[#allocation11_spill] sm:$0xff] %v4943_v16  ;;  %v2548_v57 = vld [vmem:[%s6109_s11 + $0x70] sm:$0xff] }
 0x289   :  { %v4963_v51 = vand.u32 4294901760, %v2548_v57 }
 0x28d   :  { %v1608_v42 = vpop.f32.mrf.mxu0  ;;  %v1671_v21 = vpop.f32.mrf.mxu1 }
 0x28e   :  { %v1738_v35 = vpop.f32.mrf.mxu2  ;;  %v4955_v42 = vperm.slane %v4909_v3, 4 }
 0x28f   :  { %v1787_v30 = vpop.f32.mrf.mxu3  ;;  %v6127_v35 = vrot.slane %v4904_v56, 4 }
 0x290   :  { %6208 = vst [vmem:[#allocation12_spill] sm:$0xff] %v4955_v42  ;;  %v4961_v30 = vand.u32 4294901760, %v2549_v5 }
 0x292   :  { %2561 = vmatpush.msra.mxu0 %v4961_v30  ;;  %2774 = vmatpush.msrb.mxu3 %v4961_v30 }
 0x294   :  { %2563 = vmatpush.msra.mxu0 %v4963_v51  ;;  %2776 = vmatpush.msrb.mxu3 %v4963_v51 }
 0x295   :  { %v1613_v61 = vpop.f32.mrf.mxu0  ;;  %v1677_v9 = vpop.f32.mrf.mxu1 }
 0x296   :  { %v1614_v43 = vadd.f32 %v1613_v61, %v1554_v54  ;;  %v1742_v45 = vpop.f32.mrf.mxu2  ;;  %v2546_v54 = vld [vmem:[%s6109_s11 + $0x60] sm:$0xff]  ;;  %v2545_v61 = vld [vmem:[%s6109_s11 + $0x58] sm:$0xff]  ;;  %2565 = vmatpush.msra.mxu0 %v4965_v46  ;;  %2778 = vmatpush.msrb.mxu3 %v4965_v46 }
 0x297   :  { %v1791_v12 = vpop.f32.mrf.mxu3  ;;  %v4980_v49 = vand.u32 4294901760, %v2545_v61 }
 0x298   :  { %v1672_v11 = vadd.f32 %v1671_v21, %v1614_v43  ;;  %v4958_v21 = vperm.slane %v4909_v3, 5  ;;  %v2053_v43 = vadd.f32 %v6114_v39, %v2035_v10 }
 0x299   :  { %6210 = vst [vmem:[#allocation14_spill] sm:$0xff] %v4980_v49 }
 0x29a   :  { %v1743_v48 = vadd.f32 %v1742_v45, %v1672_v11  ;;  %6209 = vst [vmem:[#allocation13_spill] sm:$0xff] %v4958_v21  ;;  %v5069_v29 = vadd.f32 %v6127_v35, %v2053_v43 }
 0x29c   :  { %v1792_v19 = vadd.f32 %v1791_v12, %v1743_v48  ;;  %v4978_v12 = vand.u32 4294901760, %v2546_v54 }
 0x29d   :  { %v1618_v6 = vpop.f32.mrf.mxu0  ;;  %v1683_v18 = vpop.f32.mrf.mxu1 }
 0x29e   :  { %v3778_v13 = vmul.f32 -1.442695, %v1792_v19  ;;  %v1619_v53 = vadd.f32 %v1618_v6, %v1558_v40  ;;  %v1746_v55 = vpop.f32.mrf.mxu2  ;;  %v4985_v40 = vsub.f32 %v2549_v5, %v4961_v30  ;;  %v4988_v19 = vsub.f32 %v2548_v57, %v4963_v51  ;;  %2567 = vmatpush.msra.mxu0 %v4978_v12  ;;  %2780 = vmatpush.msrb.mxu3 %v4978_v12 }
 0x29f   :  { %v1795_v63 = vpop.f32.mrf.mxu3  ;;  %v4991_v6 = vsub.f32 %v2547_v38, %v4965_v46  ;;  %v4997_v18 = vmul.f32 0.0, %v6116_v1  ;;  %v2541_v1 = vld [vmem:[%s6109_s11 + $0x38] sm:$0xff] }
 0x2a0   :  { %3820 = vpow2.f32 %v3778_v13  ;;  %v1678_v52 = vadd.f32 %v1677_v9, %v1619_v53  ;;  %v2544_v9 = vld [vmem:[%s6109_s11 + $0x50] sm:$0xff]  ;;  %6212 = vst [vmem:[#allocation16_spill] sm:$0xff] %v4985_v40  ;;  %v5014_v38 = vand.u32 4294901760, %v4985_v40  ;;  %2716 = vmatpush.msrb.mxu2 %v4985_v40  ;;  %2569 = vmatpush.msra.mxu0 %v4980_v49 }
 0x2a1   :  { %v4982_v11 = vand.u32 4294901760, %v2544_v9  ;;  %6213 = vst [vmem:[#allocation17_spill] sm:$0xff] %v4988_v19  ;;  %2782 = vmatpush.msrb.mxu3 %v4980_v49 }
 0x2a2   :  { %v1747_v4 = vadd.f32 %v1746_v55, %v1678_v52  ;;  %6214 = vst [vmem:[#allocation18_spill] sm:$0xff] %v4991_v6  ;;  %v5000_v55 = vsub.f32 %v2546_v54, %v4978_v12  ;;  %v5020_v54 = vand.u32 4294901760, %v4991_v6  ;;  %2719 = vmatpush.msrb.mxu2 %v4988_v19 }
 0x2a3   :  { %6211 = vst [vmem:[#allocation15_spill] sm:$0xff] %v4982_v11  ;;  %v5006_v52 = vsub.f32 %v2544_v9, %v4982_v11  ;;  %2571 = vmatpush.msra.mxu0 %v4982_v11  ;;  %2784 = vmatpush.msrb.mxu3 %v4982_v11 }
 0x2a4   :  { %v1796_v45 = vadd.f32 %v1795_v63, %v1747_v4  ;;  %6215 = vst [vmem:[#allocation19_spill] sm:$0xff] %v5000_v55  ;;  %v5003_v63 = vsub.f32 %v2545_v61, %v4980_v49  ;;  %v2543_v4 = vld [vmem:[%s6109_s11 + $0x48] sm:$0xff]  ;;  %v5025_v61 = vand.u32 4294901760, %v5000_v55  ;;  %v2624_v25 = vsub.f32 %v4991_v6, %v5020_v54  ;;  %2722 = vmatpush.msrb.mxu2 %v4991_v6 }
 0x2a5   :  { %v1623_v62 = vpop.f32.mrf.mxu0  ;;  %v1689_v48 = vpop.f32.mrf.mxu1  ;;  %6217 = vst [vmem:[#allocation21_spill] sm:$0xff] %v5006_v52 }
 0x2a6   :  { %v3821_v10 = vpop.eup %3820  ;;  %v3779_v13 = vmul.f32 -1.442695, %v1796_v45  ;;  %v1750_v53 = vpop.f32.mrf.mxu2  ;;  %6216 = vst [vmem:[#allocation20_spill] sm:$0xff] %v5003_v63  ;;  %v5017_v45 = vand.u32 4294901760, %v4988_v19  ;;  %v5028_v9 = vand.u32 4294901760, %v5003_v63  ;;  %v5031_v62 = vand.u32 4294901760, %v5006_v52  ;;  %2725 = vmatpush.msrb.mxu2 %v5000_v55 }
 0x2a7   :  { %v5011_v5 = vadd.f32 1.0, %v3821_v10  ;;  %v1799_v57 = vpop.f32.mrf.mxu3  ;;  %v5037_v10 = vand.u32 4294901760, %v2543_v4  ;;  %v2612_v53 = vsub.f32 %v4985_v40, %v5014_v38  ;;  %v2630_v58 = vsub.f32 %v5000_v55, %v5025_v61  ;;  %v2539_v40 = vld [vmem:[%s6109_s11 + $0x28] sm:$0xff]  ;;  %v2537_v55 = vld [vmem:[%s6109_s11 + $0x18] sm:$0xff] }
 0x2a8   :  { %3822 = vpow2.f32 %v3779_v13  ;;  %v5041_v13 = vperm.slane %v4909_v3, 6  ;;  %v2618_v57 = vsub.f32 %v4988_v19, %v5017_v45  ;;  %v2636_v39 = vsub.f32 %v5003_v63, %v5028_v9  ;;  %2728 = vmatpush.msrb.mxu2 %v5003_v63 }
 0x2a9   :  { %3824 = vrcp.f32 %v5011_v5  ;;  %v1871_v48 = vand.u32 2147483648, %v5011_v5  ;;  %6218 = vst [vmem:[#allocation22_spill] sm:$0xff] %v5037_v10  ;;  %v2642_v22 = vsub.f32 %v5006_v52, %v5031_v62  ;;  %v1869_v41 = vand.u32 2147483647, %v5011_v5  ;;  %2573 = vmatpush.msra.mxu0 %v5037_v10  ;;  %2786 = vmatpush.msrb.mxu3 %v5037_v10 }
 0x2aa   :  { %6219 = vst [vmem:[#allocation23_spill] sm:$0xff] %v5041_v13  ;;  %v5075_v37 = vand.u32 4294901760, %v2612_v53  ;;  %v5077_v19 = vand.u32 4294901760, %v2618_v57  ;;  %v5083_v13 = vand.u32 4294901760, %v2624_v25  ;;  %v5085_v43 = vand.u32 4294901760, %v2630_v58  ;;  %v2538_v53 = vld [vmem:[%s6109_s11 + $0x20] sm:$0xff]  ;;  %2731 = vmatpush.msrb.mxu2 %v5006_v52 }
 0x2ab   :  { %v5073_v32 = vor.u32 1.1754944e-38, %v1871_v48  ;;  %v5088_v35 = vsub.f32 %v2543_v4, %v5037_v10  ;;  %v5090_v48 = vand.u32 4294901760, %v2542_v36  ;;  %vm1865_vm4 = vweird.f32 %v5011_v5 }
 0x2ac   :  { %2614 = vmatpush.msra.mxu1 %v5075_v37  ;;  %v5099_v58 = vand.u32 4294901760, %v2636_v39  ;;  %v5103_v4 = vand.u32 4294901760, %v2541_v1  ;;  %v5122_v16 = vand.u32 4294901760, %v2539_v40  ;;  %vm5127_vm5 = vcmp.eq.f32.partialorder %v1869_v41, 8.507059e+37 }
 0x2ad   :  { %v1628_v6 = vpop.f32.mrf.mxu0  ;;  %6220 = vst [vmem:[#allocation24_spill] sm:$0xff] %v5088_v35  ;;  %v5116_v39 = vand.u32 4294901760, %v5088_v35  ;;  %v5145_v63 = vand.u32 4294901760, %v2537_v55  ;;  %2575 = vmatpush.msra.mxu0 %v5090_v48  ;;  %2734 = vmatpush.msrb.mxu2 %v5088_v35 }
 0x2ae   :  { %6221 = vst [vmem:[#allocation25_spill] sm:$0xff] %v5090_v48  ;;  %v3823_v57 = vpop.eup %3822  ;;  %v1754_v25 = vpop.f32.mrf.mxu2  ;;  %v5101_v6 = vand.u32 4294901760, %v2642_v22  ;;  %v5119_v22 = vsub.f32 %v2542_v36, %v5090_v48  ;;  %2620 = vmatpush.msra.mxu1 %v5077_v19  ;;  %v5136_v36 = vsub.f32 %v2540_v26, %v5105_v20  ;;  %2788 = vmatpush.msrb.mxu3 %v5090_v48 }
 0x2af   :  { %6222 = vst [vmem:[#allocation26_spill] sm:$0xff] %v5103_v4  ;;  %v5111_v21 = vpop.eup %3824  ;;  %v5113_v42 = vadd.f32 1.0, %v3823_v57  ;;  %v1803_v25 = vpop.f32.mrf.mxu3  ;;  %v5133_v57 = vsub.f32 %v2541_v1, %v5103_v4  ;;  %v2648_v26 = vsub.f32 %v5088_v35, %v5116_v39  ;;  %2577 = vmatpush.msra.mxu0 %v5103_v4 }
 0x2b0   :  { %6224 = vst [vmem:[#allocation28_spill] sm:$0xff] %v5119_v22  ;;  %v1861_v60 = vmul.f32 %v5111_v21, %v5011_v5  ;;  %v5138_v25 = vand.u32 4294901760, %v2538_v53  ;;  %vm1866_vm6 = vweird.f32 %v5111_v21  ;;  %2626 = vmatpush.msra.mxu1 %v5083_v13  ;;  %v5152_v7 = vand.u32 4294901760, %v5119_v22  ;;  %2737 = vmatpush.msrb.mxu2 %v5119_v22  ;;  %v2535_v5 = vld [vmem:[%s6109_s11 + $0x8] sm:$0xff] }
 0x2b1   :  { %6225 = vst [vmem:[#allocation29_spill] sm:$0xff] %v5122_v16  ;;  %3826 = vrcp.f32 %v5113_v42  ;;  %v1886_v41 = vand.u32 2147483648, %v5113_v42  ;;  %v5155_v14 = vand.u32 4294901760, %v5133_v57  ;;  %v1884_v44 = vand.u32 2147483647, %v5113_v42  ;;  %2790 = vmatpush.msrb.mxu3 %v5103_v4  ;;  %vm5210_vm8 = vmor %vm1865_vm4, %vm1866_vm6  ;;  %2579 = vmatpush.msra.mxu0 %v5105_v20 }
 0x2b2   :  { %6228 = vst [vmem:[#allocation30_spill] sm:$0xff] %v5133_v57  ;;  %v1862_v1 = vsub.f32 1.0, %v1861_v60  ;;  %v5162_v52 = vand.u32 4294901760, %v5136_v36  ;;  %v5165_v60 = vsub.f32 %v2539_v40, %v5122_v16  ;;  %2632 = vmatpush.msra.mxu1 %v5085_v43  ;;  %v2654_v11 = vsub.f32 %v5119_v22, %v5152_v7  ;;  %2740 = vmatpush.msrb.mxu2 %v5133_v57 }
 0x2b3   :  { %6229 = vst [vmem:[#allocation31_spill] sm:$0xff] %v5136_v36  ;;  %v5159_v50 = vor.u32 1.1754944e-38, %v1886_v41  ;;  %v5174_v41 = vand.u32 4294901760, %v2648_v26  ;;  %v2660_v40 = vsub.f32 %v5133_v57, %v5155_v14  ;;  %v5191_v26 = vsub.f32 %v2537_v55, %v5145_v63  ;;  %v2534_v57 = vld [vmem:[%s6109_s11] sm:$0xff]  ;;  %2792 = vmatpush.msrb.mxu3 %v5105_v20  ;;  %2581 = vmatpush.msra.mxu0 %v5122_v16 }
 0x2b4   :  { %6230 = vst [vmem:[#allocation32_spill] sm:$0xff] %v5152_v7  ;;  %v1863_v10 = vmul.f32 %v5111_v21, %v1862_v1  ;;  %v2666_v49 = vsub.f32 %v5136_v36, %v5162_v52  ;;  %v5184_v59 = vand.u32 4294901760, %v5165_v60  ;;  %v5187_v1 = vsub.f32 %v2538_v53, %v5138_v25  ;;  %2638 = vmatpush.msra.mxu1 %v5099_v58 }
 0x2b5   :  { %6231 = vst [vmem:[#allocation33_spill] sm:$0xff] %v5155_v14  ;;  %vm1880_vm7 = vweird.f32 %v5113_v42  ;;  %v5197_v48 = vand.u32 4294901760, %v2654_v11  ;;  %v5201_v14 = vand.u32 4294901760, %v2536_v17  ;;  %v5222_v22 = vand.u32 4294901760, %v5191_v26  ;;  %2743 = vmatpush.msrb.mxu2 %v5136_v36  ;;  %2794 = vmatpush.msrb.mxu3 %v5122_v16 }
 0x2b6   :  { %6232 = vst [vmem:[#allocation34_spill] sm:$0xff] %v5162_v52  ;;  %v1864_v35 = vadd.f32 %v5111_v21, %v1863_v10  ;;  %v5199_v52 = vand.u32 4294901760, %v2660_v40  ;;  %v5214_v10 = vand.u32 4294901760, %v2666_v49  ;;  %v2672_v11 = vsub.f32 %v5165_v60, %v5184_v59  ;;  %2644 = vmatpush.msra.mxu1 %v5101_v6  ;;  %2583 = vmatpush.msra.mxu0 %v5138_v25 }
 0x2b7   :  { %6233 = vst [vmem:[#allocation35_spill] sm:$0xff] %v5165_v60  ;;  %v5204_v53 = vpop.eup %3826  ;;  %v5219_v40 = vand.u32 4294901760, %v5187_v1  ;;  %vm5235_vm10 = vcmp.eq.f32.partialorder %v1884_v44, 8.507059e+37  ;;  %v5241_v7 = vsub.f32 %v2536_v17, %v5201_v14  ;;  %v2684_v55 = vsub.f32 %v5191_v26, %v5222_v22  ;;  %v5261_v17 = vld [vmem:[%s6108_s8 + $0x18] sm:$0x7f]  ;;  %2746 = vmatpush.msrb.mxu2 %v5165_v60  ;;  %2796 = vmatpush.msrb.mxu3 %v5138_v25 }
 0x2b8   :  { %6234 = vst [vmem:[#allocation36_spill] sm:$0xff] %v5184_v59  ;;  %v1868_v49 = vsel %vm5210_vm8, %v5111_v21, %v1864_v35  ;;  %v1876_v4 = vmul.f32 %v5204_v53, %v5113_v42  ;;  %vm1881_vm9 = vweird.f32 %v5204_v53  ;;  %v5250_v35 = vand.u32 4294901760, %v2672_v11  ;;  %2650 = vmatpush.msra.mxu1 %v5174_v41  ;;  %2585 = vmatpush.msra.mxu0 %v5145_v63 }
 0x2b9   :  { %6235 = vst [vmem:[#allocation37_spill] sm:$0xff] %v5187_v1  ;;  %v1873_v21 = vsel %vm5127_vm5, %v5073_v32, %v1868_v49  ;;  %v2678_v44 = vsub.f32 %v5187_v1, %v5219_v40  ;;  %v5268_v11 = vand.u32 4294901760, %v5241_v7  ;;  %v5270_v49 = vand.u32 4294901760, %v2535_v5  ;;  %2749 = vmatpush.msrb.mxu2 %v5187_v1  ;;  %2798 = vmatpush.msrb.mxu3 %v5145_v63  ;;  %vm1882_vm11 = vmor %vm1880_vm7, %vm1881_vm9 }
 0x2ba   :  { %6236 = vst [vmem:[#allocation38_spill] sm:$0xff] %v5191_v26  ;;  %v5264_v27 = vmul.f32 %v1873_v21, %v4847_v33  ;;  %v1877_v32 = vsub.f32 1.0, %v1876_v4  ;;  %v5275_v36 = vand.u32 4294901760, %v2684_v55  ;;  %v5278_v20 = vand.u32 4294901760, %v2534_v57  ;;  %2656 = vmatpush.msra.mxu1 %v5197_v48  ;;  %2587 = vmatpush.msra.mxu0 %v5201_v14 }
 0x2bb   :  { %6239 = vst [vmem:[#allocation39_spill] sm:$0xff] %v5219_v40  ;;  %v2690_v21 = vsub.f32 %v5241_v7, %v5268_v11  ;;  %2752 = vmatpush.msrb.mxu2 %v5191_v26  ;;  %v6252_v33 = vperm.slane %v4854_v2, 0  ;;  %2800 = vmatpush.msrb.mxu3 %v5201_v14  ;;  %v6253_v26 = vperm.slane %v4854_v2, 1  ;;  %v6254_v59 = vperm.slane %v4854_v2, 2 }
 0x2bc   :  { %6240 = vst [vmem:[#allocation40_spill] sm:$0xff] %v5222_v22  ;;  %v5273_v22 = vand.u32 4294901760, %v2678_v44  ;;  %v1878_v4 = vmul.f32 %v5204_v53, %v1877_v32  ;;  %v5287_v44 = vsub.f32 %v2535_v5, %v5270_v49  ;;  %v5292_v16 = vsub.f32 %v2534_v57, %v5278_v20  ;;  %2662 = vmatpush.msra.mxu1 %v5199_v52 }
 0x2bd   :  { %6243 = vst [vmem:[#allocation41_spill] sm:$0xff] %v5241_v7  ;;  %v5301_v3 = vand.u32 4294901760, %v2690_v21  ;;  %v1998_v57 = vmul.f32 %v6252_v33, %v5264_v27  ;;  %v2004_v1 = vmul.f32 %v6253_v26, %v5264_v27  ;;  %2589 = vmatpush.msra.mxu0 %v5270_v49  ;;  %2755 = vmatpush.msrb.mxu2 %v5241_v7 }
 0x2be   :  { %6244 = vst [vmem:[#allocation42_spill] sm:$0xff] %v5261_v17  ;;  %v1879_v5 = vadd.f32 %v5204_v53, %v1878_v4  ;;  %v5304_v55 = vand.u32 4294901760, %v5287_v44  ;;  %v5313_v60 = vand.u32 4294901760, %v5292_v16  ;;  %2668 = vmatpush.msra.mxu1 %v5214_v10  ;;  %2802 = vmatpush.msrb.mxu3 %v5270_v49  ;;  %v6258_v17 = vperm.slane %v4854_v2, 5 }
 0x2bf   :  { %6245 = vst [vmem:[#allocation43_spill] sm:$0xff] %v5268_v11  ;;  %v2012_v4 = vrot.slane %v2004_v1, 1  ;;  %2591 = vmatpush.msra.mxu0 %v5278_v20  ;;  %2758 = vmatpush.msrb.mxu2 %v5287_v44  ;;  %v6256_v1 = vperm.slane %v4854_v2, 4 }
 0x2c0   :  { %6246 = vst [vmem:[#allocation44_spill] sm:$0xff] %v5270_v49  ;;  %v1883_v32 = vsel %vm1882_vm11, %v5204_v53, %v1879_v5  ;;  %v2696_v42 = vsub.f32 %v5287_v44, %v5304_v55  ;;  %v2702_v33 = vsub.f32 %v5292_v16, %v5313_v60  ;;  %v2001_v53 = vadd.f32 %v4865_v24, %v1998_v57 }
 0x2c1   :  { %6247 = vst [vmem:[#allocation45_spill] sm:$0xff] %v5278_v20  ;;  %v1888_v21 = vsel %vm5235_vm10, %v5159_v50, %v1883_v32  ;;  %2674 = vmatpush.msra.mxu1 %v5250_v35  ;;  %v2022_v50 = vmul.f32 %v6254_v59, %v5264_v27  ;;  %v2058_v57 = vmul.f32 %v6256_v1, %v5264_v27 }
 0x2c2   :  { %6248 = vst [vmem:[#allocation46_spill] sm:$0xff] %v5287_v44  ;;  %v5339_v5 = vmul.f32 %v1888_v21, %v4849_v15  ;;  %v5342_v26 = vand.u32 4294901760, %v2696_v42  ;;  %v5348_v32 = vand.u32 4294901760, %v2702_v33  ;;  %v6255_v15 = vperm.slane %v4854_v2, 3  ;;  %2821 = vmatpush.msrb.mxu0 %v5014_v38  ;;  %2761 = vmatpush.msrb.mxu2 %v5292_v16 }
 0x2c3   :  { %6249 = vst [vmem:[#allocation47_spill] sm:$0xff] %v5292_v16  ;;  %2680 = vmatpush.msra.mxu1 %v5273_v22  ;;  %v6257_v21 = vrot.slane %v4871_v34, 1  ;;  %v2019_v33 = vadd.f32 %v2012_v4, %v2001_v53  ;;  %v2030_v59 = vrot.slane %v2022_v50, 2  ;;  %v2076_v49 = vmul.f32 %v6258_v17, %v5264_v27  ;;  %2804 = vmatpush.msrb.mxu3 %v5278_v20 }
 0x2c4   :  { %6250 = vst [vmem:[#allocation48_spill] sm:$0xff] %v5304_v55  ;;  %v2040_v24 = vmul.f32 %v6255_v15, %v5264_v27  ;;  %v2066_v15 = vrot.slane %v2058_v57, 4  ;;  %2825 = vmatpush.msrb.mxu0 %v5017_v45  ;;  %v6259_v34 = vrot.slane %v4880_v47, 2  ;;  %v6261_v17 = vrot.slane %v4889_v23, 3  ;;  %2957 = vmatpush.msra.mxu2 %v4961_v30 }
 0x2c5   :  { %6251 = vst [vmem:[#allocation49_spill] sm:$0xff] %v5313_v60  ;;  %v2013_v42 = vsel %vm2008_vm12, %v6257_v21, %v2012_v4  ;;  %2686 = vmatpush.msra.mxu1 %v5275_v36  ;;  %v2037_v53 = vadd.f32 %v2030_v59, %v2019_v33  ;;  %v6262_v57 = vrot.slane %v4904_v56, 4  ;;  %3010 = vmatpush.msra.mxu3 %v5075_v37 }
 0x2c6   :  { %v2018_v44 = vadd.f32 %v2013_v42, %v4875_v28  ;;  %v2048_v7 = vrot.slane %v2040_v24, 3  ;;  %v2031_v4 = vsel %vm2026_vm13, %v6259_v34, %v2030_v59  ;;  %v6260_v28 = vrot.slane %v4997_v18, 5  ;;  %2829 = vmatpush.msrb.mxu0 %v5020_v54  ;;  %2959 = vmatpush.msra.mxu2 %v4963_v51 }
 0x2c7   :  { %v2067_v21 = vsel %vm2062_vm15, %v6262_v57, %v2066_v15  ;;  %v2084_v42 = vrot.slane %v2076_v49, 5  ;;  %2692 = vmatpush.msra.mxu1 %v5301_v3  ;;  %v6266_v59 = vperm.slane %v4854_v2, 7  ;;  %3016 = vmatpush.msra.mxu3 %v5077_v19  ;;  %v2124_v57 = vmul.f32 0.0, %v4912_v31 }
 0x2c8   :  { %v2089_v50 = vadd.f32 %v6260_v28, %v5069_v29  ;;  %v2036_v24 = vadd.f32 %v2031_v4, %v2018_v44  ;;  %v2049_v1 = vsel %vm2044_vm14, %v6261_v17, %v2048_v7  ;;  %v2055_v47 = vadd.f32 %v2048_v7, %v2037_v53  ;;  %2833 = vmatpush.msrb.mxu0 %v5025_v61 }
 0x2c9   :  { %v6263_v29 = vperm.slane %v4854_v2, 6  ;;  %v6265_v49 = vmov %v6260_v28  ;;  %v2110_v34 = vmul.f32 0.0, %v6266_v59  ;;  %v6267_v4 = vmov %v6266_v59  ;;  %2698 = vmatpush.msra.mxu1 %v5342_v26  ;;  %3022 = vmatpush.msra.mxu3 %v5083_v13 }
 0x2ca   :  { %v2054_v56 = vadd.f32 %v2049_v1, %v2036_v24  ;;  %v2085_v37 = vsel %vm2080_vm1, %v6265_v49, %v2084_v42  ;;  %v2111_v7 = vmul.f32 %v6267_v4, %v5264_v27  ;;  %v2073_v53 = vadd.f32 %v2066_v15, %v2055_v47  ;;  %2961 = vmatpush.msra.mxu2 %v4965_v46 }
 0x2cb   :  { %v2092_v44 = vmul.f32 0.0, %v6263_v29  ;;  %v6264_v23 = vmov %v6263_v29  ;;  %v2115_v17 = vrot.slane %v2110_v34, 7  ;;  %2704 = vmatpush.msra.mxu1 %v5348_v32  ;;  %v2125_v15 = vmul.f32 %v4912_v31, %v5264_v27  ;;  %2837 = vmatpush.msrb.mxu0 %v5028_v9 }
 0x2cc   :  { %v2094_v33 = vmul.f32 %v6264_v23, %v5264_v27  ;;  %v2072_v24 = vadd.f32 %v2067_v21, %v2054_v56  ;;  %v2116_v1 = vrot.slane %v2111_v7, 7  ;;  %v2091_v2 = vadd.f32 %v2084_v42, %v2073_v53  ;;  %3028 = vmatpush.msra.mxu3 %v5085_v43  ;;  %2963 = vmatpush.msra.mxu2 %v4978_v12 }
 0x2cd   :  { %v2099_v28 = vrot.slane %v2092_v44, 6  ;;  %2892 = vmatpush.msrb.mxu1 %v4961_v30  ;;  %v2126_v44 = vmul.f32 %v4912_v31, %v5339_v5  ;;  %v2130_v13 = vmul.f32 0.0, %v4915_v8  ;;  %v2147_v31 = vmul.f32 0.0, %v4918_v0  ;;  %2841 = vmatpush.msrb.mxu0 %v5031_v62 }
 0x2ce   :  { %v2102_v18 = vrot.slane %v2094_v33, 6  ;;  %v2090_v21 = vadd.f32 %v2085_v37, %v2072_v24  ;;  %v2117_v47 = vsel %vm2114_vm3, %v2115_v17, %v2116_v1  ;;  %v2132_v33 = vmul.f32 %v4915_v8, %v5339_v5  ;;  %3034 = vmatpush.msra.mxu3 %v5099_v58  ;;  %v6269_v58 = vld [vmem:[#allocation14_spill] sm:$0xff] }
 0x2cf   :  { %v2107_v29 = vadd.f32 %v2099_v28, %v2089_v50  ;;  %v2131_v50 = vmul.f32 %v4915_v8, %v5264_v27  ;;  %2894 = vmatpush.msrb.mxu1 %v4963_v51  ;;  %v2136_v49 = vrot.slane %v2130_v13, 1  ;;  %v2148_v37 = vmul.f32 %v4918_v0, %v5264_v27  ;;  %2845 = vmatpush.msrb.mxu0 %v5116_v39 }
 0x2d0   :  { %v2103_v19 = vsel %vm2098_vm2, %v2099_v28, %v2102_v18  ;;  %v2109_v23 = vadd.f32 %v2102_v18, %v2091_v2  ;;  %v2139_v7 = vrot.slane %v2132_v33, 1  ;;  %v2149_v43 = vmul.f32 %v4918_v0, %v5339_v5  ;;  %3040 = vmatpush.msra.mxu3 %v5101_v6  ;;  %2965 = vmatpush.msra.mxu2 %v6269_v58  ;;  %v6271_v6 = vld [vmem:[#allocation15_spill] sm:$0xff]  ;;  %v6272_v33 = vld [vmem:[#allocation5_spill] sm:$0xff] }
 0x2d1   :  { %v2121_v42 = vadd.f32 %v2115_v17, %v2107_v29  ;;  %v2108_v56 = vadd.f32 %v2103_v19, %v2090_v21  ;;  %v2137_v4 = vrot.slane %v2131_v50, 1  ;;  %2896 = vmatpush.msrb.mxu1 %v4965_v46  ;;  %v2153_v53 = vrot.slane %v2147_v31, 2  ;;  %v6270_v21 = vld [vmem:[#allocation32_spill] sm:$0xff] }
 0x2d2   :  { %v2123_v59 = vadd.f32 %v2116_v1, %v2109_v23  ;;  %v2154_v28 = vrot.slane %v2148_v37, 2  ;;  %v6268_v1 = vld [vmem:[#allocation4_spill] sm:$0xff]  ;;  %v2156_v29 = vrot.slane %v2149_v43, 2  ;;  %2849 = vmatpush.msrb.mxu0 %v6270_v21  ;;  %3046 = vmatpush.msra.mxu3 %v5174_v41  ;;  %v6274_v41 = vld [vmem:[#allocation22_spill] sm:$0xff] }
 0x2d3   :  { %v2127_v34 = vadd.f32 %v2124_v57, %v2121_v42  ;;  %v2122_v8 = vadd.f32 %v2117_v47, %v2108_v56  ;;  %v2138_v24 = vsel %vm2008_vm12, %v2136_v49, %v2137_v4  ;;  %v2140_v17 = vsel %vm2008_vm12, %v2137_v4, %v2139_v7  ;;  %2898 = vmatpush.msrb.mxu1 %v4978_v12  ;;  %v6273_v49 = vld [vmem:[#allocation33_spill] sm:$0xff]  ;;  %v6275_v43 = vld [vmem:[#allocation6_spill] sm:$0xff] }
 0x2d4   :  { %v2129_v18 = vadd.f32 %v2126_v44, %v2123_v59  ;;  %v2164_v57 = vmul.f32 0.0, %v6268_v1  ;;  %v2155_v0 = vsel %vm2026_vm13, %v2153_v53, %v2154_v28  ;;  %v2165_v44 = vmul.f32 %v6268_v1, %v5264_v27  ;;  %2967 = vmatpush.msra.mxu2 %v6271_v6  ;;  %2853 = vmatpush.msrb.mxu0 %v6273_v49 }
 0x2d5   :  { %v2128_v2 = vadd.f32 %v2125_v15, %v2122_v8  ;;  %v2144_v19 = vadd.f32 %v2138_v24, %v2127_v34  ;;  %v2166_v13 = vmul.f32 %v6268_v1, %v5339_v5  ;;  %2900 = vmatpush.msrb.mxu1 %v6269_v58  ;;  %v2157_v42 = vsel %vm2026_vm13, %v2154_v28, %v2156_v29  ;;  %v6276_v28 = vld [vmem:[#allocation34_spill] sm:$0xff] }
 0x2d6   :  { %v2146_v47 = vadd.f32 %v2139_v7, %v2129_v18  ;;  %v2170_v23 = vrot.slane %v2164_v57, 3  ;;  %v2181_v56 = vmul.f32 0.0, %v6272_v33  ;;  %v2171_v37 = vrot.slane %v2165_v44, 3  ;;  %3052 = vmatpush.msra.mxu3 %v5197_v48  ;;  %2969 = vmatpush.msra.mxu2 %v6274_v41  ;;  %v6277_v48 = vld [vmem:[#allocation25_spill] sm:$0xff] }
 0x2d7   :  { %v2145_v15 = vadd.f32 %v2140_v17, %v2128_v2  ;;  %v2161_v50 = vadd.f32 %v2155_v0, %v2144_v19  ;;  %v2173_v59 = vrot.slane %v2166_v13, 3  ;;  %v2182_v34 = vmul.f32 %v6272_v33, %v5264_v27  ;;  %2902 = vmatpush.msrb.mxu1 %v6271_v6  ;;  %2857 = vmatpush.msrb.mxu0 %v6276_v28 }
 0x2d8   :  { %v2163_v31 = vadd.f32 %v2156_v29, %v2146_v47  ;;  %v2183_v7 = vmul.f32 %v6272_v33, %v5339_v5  ;;  %v2187_v8 = vrot.slane %v2181_v56, 4  ;;  %v2198_v53 = vmul.f32 0.0, %v6275_v43  ;;  %3058 = vmatpush.msra.mxu3 %v5199_v52  ;;  %2971 = vmatpush.msra.mxu2 %v6277_v48  ;;  %v6278_v29 = vld [vmem:[#allocation36_spill] sm:$0xff] }
 0x2d9   :  { %v2162_v4 = vadd.f32 %v2157_v42, %v2145_v15  ;;  %v2172_v18 = vsel %vm2044_vm14, %v2170_v23, %v2171_v37  ;;  %v2174_v24 = vsel %vm2044_vm14, %v2171_v37, %v2173_v59  ;;  %v2188_v1 = vrot.slane %v2182_v34, 4  ;;  %2904 = vmatpush.msrb.mxu1 %v6274_v41  ;;  %2861 = vmatpush.msrb.mxu0 %v6278_v29  ;;  %v6279_v23 = vld [vmem:[#allocation7_spill] sm:$0xff]  ;;  %v6280_v15 = vld [vmem:[#allocation26_spill] sm:$0xff] }
 0x2da   :  { %v2180_v17 = vadd.f32 %v2173_v59, %v2163_v31  ;;  %v2178_v57 = vadd.f32 %v2172_v18, %v2161_v50  ;;  %v2190_v19 = vrot.slane %v2183_v7, 4  ;;  %v2199_v0 = vmul.f32 %v6275_v43, %v5264_v27  ;;  %3064 = vmatpush.msra.mxu3 %v5214_v10  ;;  %2973 = vmatpush.msra.mxu2 %v6280_v15  ;;  %v6281_v10 = vld [vmem:[#allocation27_spill] sm:$0xff] }
 0x2db   :  { %v2179_v2 = vadd.f32 %v2174_v24, %v2162_v4  ;;  %v2189_v47 = vsel %vm2062_vm15, %v2187_v8, %v2188_v1  ;;  %v2200_v44 = vmul.f32 %v6275_v43, %v5339_v5  ;;  %v2204_v13 = vrot.slane %v2198_v53, 5  ;;  %2906 = vmatpush.msrb.mxu1 %v6277_v48  ;;  %2865 = vmatpush.msrb.mxu0 %v5219_v40  ;;  %v6282_v8 = vld [vmem:[#allocation2_spill] sm:$0xff] }
 0x2dc   :  { %v2215_v52 = vmul.f32 0.0, %v6279_v23  ;;  %v2191_v42 = vsel %vm2062_vm15, %v2188_v1, %v2190_v19  ;;  %v2195_v50 = vadd.f32 %v2189_v47, %v2178_v57  ;;  %v2197_v33 = vadd.f32 %v2190_v19, %v2180_v17  ;;  %3070 = vmatpush.msra.mxu3 %v5250_v35  ;;  %2975 = vmatpush.msra.mxu2 %v6281_v10  ;;  %v6285_v17 = vld [vmem:[#allocation40_spill] sm:$0xff]  ;;  %v6286_v19 = vld [vmem:[#allocation29_spill] sm:$0xff] }
 0x2dd   :  { %v2205_v56 = vrot.slane %v2199_v0, 5  ;;  %v2196_v31 = vadd.f32 %v2191_v42, %v2179_v2  ;;  %v2207_v37 = vrot.slane %v2200_v44, 5  ;;  %v2216_v59 = vmul.f32 %v6279_v23, %v5264_v27  ;;  %2908 = vmatpush.msrb.mxu1 %v6280_v15  ;;  %2869 = vmatpush.msrb.mxu0 %v6285_v17 }
 0x2de   :  { %v2217_v34 = vmul.f32 %v6279_v23, %v5339_v5  ;;  %v2221_v7 = vrot.slane %v2215_v52, 6  ;;  %v6283_v43 = vperm.slane %v6282_v8, 7  ;;  %3076 = vmatpush.msra.mxu3 %v5273_v22  ;;  %2977 = vmatpush.msra.mxu2 %v6286_v19  ;;  %v6287_v52 = vld [vmem:[#allocation8_spill] sm:$0xff]  ;;  %v6288_v22 = vld [vmem:[#allocation9_spill] sm:$0xff] }
 0x2df   :  { %v2206_v4 = vsel %vm2080_vm1, %v2204_v13, %v2205_v56  ;;  %v2208_v35 = vsel %vm2080_vm1, %v2205_v56, %v2207_v37  ;;  %v2214_v57 = vadd.f32 %v2207_v37, %v2197_v33  ;;  %v2222_v2 = vrot.slane %v2216_v59, 6  ;;  %2910 = vmatpush.msrb.mxu1 %v6281_v10  ;;  %2873 = vmatpush.msrb.mxu0 %v5268_v11 }
 0x2e0   :  { %v2232_v53 = vmul.f32 %v6283_v43, %v5264_v27  ;;  %v6284_v18 = vmov %v6283_v43  ;;  %v2212_v1 = vadd.f32 %v2206_v4, %v2195_v50  ;;  %v2213_v0 = vadd.f32 %v2208_v35, %v2196_v31  ;;  %3082 = vmatpush.msra.mxu3 %v5275_v36  ;;  %v6289_v43 = vld [vmem:[#allocation10_spill] sm:$0xff]  ;;  %2979 = vmatpush.msra.mxu2 %v5138_v25 }
 0x2e1   :  { %v5490_v24 = vmul.f32 %v6284_v18, %v5339_v5  ;;  %v2224_v47 = vrot.slane %v2217_v34, 6  ;;  %v2223_v23 = vsel %vm2098_vm2, %v2221_v7, %v2222_v2  ;;  %v2245_v42 = vmul.f32 %v6287_v52, %v5264_v27  ;;  %2912 = vmatpush.msrb.mxu1 %v6286_v19  ;;  %2877 = vmatpush.msrb.mxu0 %v5304_v55 }
 0x2e2   :  { %v2236_v44 = vrot.slane %v2232_v53, 7  ;;  %v2246_v50 = vmul.f32 %v6287_v52, %v5339_v5  ;;  %v2251_v33 = vmul.f32 %v6288_v22, %v5264_v27  ;;  %v2229_v31 = vadd.f32 %v2223_v23, %v2212_v1  ;;  %3088 = vmatpush.msra.mxu3 %v5301_v3  ;;  %v6290_v3 = vld [vmem:[#allocation11_spill] sm:$0xff]  ;;  %2981 = vmatpush.msra.mxu2 %v5145_v63 }
 0x2e3   :  { %v6186_v13 = vrot.slane %v5490_v24, 7  ;;  %v2225_v56 = vsel %vm2098_vm2, %v2222_v2, %v2224_v47  ;;  %v5509_v37 = vadd.f32 %v2224_v47, %v2214_v57  ;;  %v2252_v4 = vmul.f32 %v6288_v22, %v5339_v5  ;;  %2914 = vmatpush.msrb.mxu1 %v5138_v25  ;;  %2881 = vmatpush.msrb.mxu0 %v5313_v60 }
 0x2e4   :  { %v2230_v34 = vadd.f32 %v2225_v56, %v2213_v0  ;;  %v5518_v7 = vmul.f32 0.0, %v6288_v22  ;;  %v2257_v8 = vrot.slane %v2251_v33, 1  ;;  %v2242_v36 = vadd.f32 %v2236_v44, %v2229_v31  ;;  %3094 = vmatpush.msra.mxu3 %v5342_v26  ;;  %2983 = vmatpush.msra.mxu2 %v5201_v14 }
 0x2e5   :  { %v2238_v59 = vsel %vm2114_vm3, %v2236_v44, %v6186_v13  ;;  %v2268_v53 = vmul.f32 %v6289_v43, %v5264_v27  ;;  %v2269_v18 = vmul.f32 %v6289_v43, %v5339_v5  ;;  %v5527_v35 = vmul.f32 0.0, %v6289_v43  ;;  %2916 = vmatpush.msrb.mxu1 %v5145_v63  ;;  %v6291_v43 = vld [vmem:[#allocation12_spill] sm:$0xff] }
 0x2e6   :  { %v2243_v1 = vadd.f32 %v2238_v59, %v2230_v34  ;;  %v2258_v57 = vrot.slane %v2252_v4, 1  ;;  %v6184_v2 = vrot.slane %v5518_v7, 1  ;;  %v2285_v0 = vmul.f32 %v6290_v3, %v5264_v27  ;;  %3100 = vmatpush.msra.mxu3 %v5348_v32 }
 0x2e7   :  { %v2248_v47 = vadd.f32 %v2245_v42, %v2242_v36  ;;  %v2274_v44 = vrot.slane %v2268_v53, 2  ;;  %v2275_v23 = vrot.slane %v2269_v18, 2  ;;  %v6183_v22 = vrot.slane %v5527_v35, 2  ;;  %2918 = vmatpush.msrb.mxu1 %v5201_v14 }
 0x2e8   :  { %v2249_v33 = vadd.f32 %v2246_v50, %v2243_v1  ;;  %v2259_v56 = vsel %vm2008_vm12, %v2257_v8, %v2258_v57  ;;  %v2261_v31 = vsel %vm2008_vm12, %v2258_v57, %v6184_v2  ;;  %v2286_v59 = vmul.f32 %v6290_v3, %v5339_v5 }
 0x2e9   :  { %v2265_v26 = vadd.f32 %v2259_v56, %v2248_v47  ;;  %v2276_v42 = vsel %vm2026_vm13, %v2274_v44, %v2275_v23  ;;  %v2278_v34 = vsel %vm2026_vm13, %v2275_v23, %v6183_v22  ;;  %v5551_v50 = vmul.f32 0.0, %v6290_v3  ;;  %v6292_v3 = vld [vmem:[#allocation44_spill] sm:$0xff]  ;;  %v6293_v23 = vld [vmem:[#allocation13_spill] sm:$0xff]  ;;  %v6295_v22 = vld [vmem:[#allocation3_spill] sm:$0xff] }
 0x2ea   :  { %v2266_v4 = vadd.f32 %v2261_v31, %v2249_v33  ;;  %v2291_v8 = vrot.slane %v2285_v0, 3  ;;  %v2292_v36 = vrot.slane %v2286_v59, 3  ;;  %v2302_v32 = vmul.f32 %v6291_v43, %v5264_v27  ;;  %2920 = vmatpush.msrb.mxu1 %v6292_v3  ;;  %2985 = vmatpush.msra.mxu2 %v6292_v3 }
 0x2eb   :  { %v2282_v53 = vadd.f32 %v2276_v42, %v2265_v26  ;;  %v6182_v18 = vrot.slane %v5551_v50, 3  ;;  %v2303_v1 = vmul.f32 %v6291_v43, %v5339_v5  ;;  %v5561_v57 = vmul.f32 0.0, %v6291_v43 }
 0x2ec   :  { %v2283_v47 = vadd.f32 %v2278_v34, %v2266_v4  ;;  %v2293_v0 = vsel %vm2044_vm14, %v2291_v8, %v2292_v36  ;;  %v2308_v44 = vrot.slane %v2302_v32, 4  ;;  %v2319_v33 = vmul.f32 %v6293_v23, %v5264_v27  ;;  %2922 = vmatpush.msrb.mxu1 %v5278_v20  ;;  %2987 = vmatpush.msra.mxu2 %v5278_v20  ;;  %v6294_v32 = vld [vmem:[#allocation23_spill] sm:$0xff] }
 0x2ed   :  { %v2295_v56 = vsel %vm2044_vm14, %v2292_v36, %v6182_v18  ;;  %v2299_v31 = vadd.f32 %v2293_v0, %v2282_v53  ;;  %v2309_v59 = vrot.slane %v2303_v1, 4  ;;  %v6185_v26 = vrot.slane %v5561_v57, 4 }
 0x2ee   :  { %v2300_v42 = vadd.f32 %v2295_v56, %v2283_v47  ;;  %v2320_v34 = vmul.f32 %v6293_v23, %v5339_v5  ;;  %v5577_v4 = vmul.f32 0.0, %v6293_v23  ;;  %v2325_v8 = vrot.slane %v2319_v33, 5 }
 0x2ef   :  { %v2310_v43 = vsel %vm2062_vm15, %v2308_v44, %v2309_v59  ;;  %v2312_v36 = vsel %vm2062_vm15, %v2309_v59, %v6185_v26  ;;  %v2336_v53 = vmul.f32 %v6294_v32, %v5264_v27  ;;  %v2337_v1 = vmul.f32 %v6294_v32, %v5339_v5 }
 0x2f0   :  { %v2316_v47 = vadd.f32 %v2310_v43, %v2299_v31  ;;  %v2317_v0 = vadd.f32 %v2312_v36, %v2300_v42  ;;  %v2326_v56 = vrot.slane %v2320_v34, 5  ;;  %v6188_v18 = vrot.slane %v5577_v4, 5  ;;  %v6298_v34 = vld [vmem:[#allocation42_spill] sm:$0xff] }
 0x2f1   :  { %v5589_v23 = vmul.f32 0.0, %v6294_v32  ;;  %v2342_v33 = vrot.slane %v2336_v53, 6  ;;  %v2343_v44 = vrot.slane %v2337_v1, 6  ;;  %v6296_v2 = vperm.slane %v6295_v22, 7 }
 0x2f2   :  { %v2327_v26 = vsel %vm2080_vm1, %v2325_v8, %v2326_v56  ;;  %v2329_v27 = vsel %vm2080_vm1, %v2326_v56, %v6188_v18  ;;  %v6299_v43 = vperm.slane %v6298_v34, 0  ;;  %v6301_v22 = vperm.slane %v6298_v34, 1 }
 0x2f3   :  { %v2353_v59 = vmul.f32 %v6296_v2, %v5339_v5  ;;  %v6297_v31 = vmov %v6296_v2  ;;  %v2333_v32 = vadd.f32 %v2327_v26, %v2316_v47  ;;  %v2334_v53 = vadd.f32 %v2329_v27, %v2317_v0 }
 0x2f4   :  { %v5600_v42 = vmul.f32 0.0, %v6297_v31  ;;  %v2366_v36 = vmul.f32 %v6299_v43, %v5339_v5  ;;  %v2344_v1 = vsel %vm2098_vm2, %v2342_v33, %v2343_v44  ;;  %v6192_v2 = vrot.slane %v5589_v23, 6 }
 0x2f5   :  { %v2357_v13 = vrot.slane %v2353_v59, 7  ;;  %v6300_v60 = vmov %v6299_v43  ;;  %v2372_v31 = vmul.f32 %v6301_v22, %v5339_v5  ;;  %v2350_v47 = vadd.f32 %v2344_v1, %v2333_v32 }
 0x2f6   :  { %v6193_v8 = vrot.slane %v5600_v42, 7  ;;  %v5610_v56 = vmul.f32 0.0, %v6300_v60  ;;  %v2346_v26 = vsel %vm2098_vm2, %v2343_v44, %v6192_v2  ;;  %v6302_v0 = vmov %v6301_v22 }
 0x2f7   :  { %v2373_v33 = vmul.f32 0.0, %v6302_v0  ;;  %v6303_v59 = vperm.slane %v6298_v34, 2  ;;  %v2351_v43 = vadd.f32 %v2346_v26, %v2334_v53  ;;  %v2378_v18 = vrot.slane %v2372_v31, 1 }
 0x2f8   :  { %v2359_v60 = vsel %vm2114_vm3, %v2357_v13, %v6193_v8  ;;  %v2363_v55 = vadd.f32 %v2357_v13, %v2350_v47  ;;  %v6305_v32 = vperm.slane %v6298_v34, 3  ;;  %v6307_v26 = vperm.slane %v6298_v34, 4 }
 0x2f9   :  { %v2389_v27 = vmul.f32 %v6303_v59, %v5339_v5  ;;  %v6304_v22 = vmov %v6303_v59  ;;  %v2379_v11 = vrot.slane %v2373_v33, 1  ;;  %v2364_v0 = vadd.f32 %v2359_v60, %v2351_v43 }
 0x2fa   :  { %v2390_v16 = vmul.f32 0.0, %v6304_v22  ;;  %v2406_v1 = vmul.f32 %v6305_v32, %v5339_v5  ;;  %v6306_v59 = vmov %v6305_v32  ;;  %v2423_v8 = vmul.f32 %v6307_v26, %v5339_v5 }
 0x2fb   :  { %v2395_v44 = vrot.slane %v2389_v27, 2  ;;  %v2407_v53 = vmul.f32 0.0, %v6306_v59  ;;  %v2369_v31 = vadd.f32 %v2366_v36, %v2363_v55  ;;  %v6308_v22 = vmov %v6307_v26 }
 0x2fc   :  { %v2396_v2 = vrot.slane %v2390_v16, 2  ;;  %v2412_v17 = vrot.slane %v2406_v1, 3  ;;  %v2424_v13 = vmul.f32 0.0, %v6308_v22  ;;  %v2370_v47 = vadd.f32 %v5610_v56, %v2364_v0 }
 0x2fd   :  { %v2380_v33 = vsel %vm2008_vm12, %v2378_v18, %v2379_v11  ;;  %v2413_v43 = vrot.slane %v2407_v53, 3  ;;  %v2429_v60 = vrot.slane %v2423_v8, 4  ;;  %v6309_v32 = vperm.slane %v6298_v34, 5 }
 0x2fe   :  { %v2397_v27 = vsel %vm2026_vm13, %v2395_v44, %v2396_v2  ;;  %v2386_v16 = vadd.f32 %v2380_v33, %v2369_v31  ;;  %v2387_v36 = vadd.f32 %v2379_v11, %v2370_v47  ;;  %v2430_v1 = vrot.slane %v2424_v13, 4 }
 0x2ff   :  { %v2440_v59 = vmul.f32 %v6309_v32, %v5339_v5  ;;  %v6310_v26 = vmov %v6309_v32  ;;  %v6311_v22 = vperm.slane %v6298_v34, 6  ;;  %v2414_v53 = vsel %vm2044_vm14, %v2412_v17, %v2413_v43 }
 0x300   :  { %v2441_v55 = vmul.f32 0.0, %v6310_v26  ;;  %v2403_v44 = vadd.f32 %v2397_v27, %v2386_v16  ;;  %v2404_v8 = vadd.f32 %v2396_v2, %v2387_v36  ;;  %v6313_v32 = vrot.slane %v5490_v24, 7 }
 0x301   :  { %v2457_v0 = vmul.f32 %v6311_v22, %v5339_v5  ;;  %v6312_v18 = vmov %v6311_v22  ;;  %v2446_v31 = vrot.slane %v2440_v59, 5  ;;  %v2247_v13 = vmul.f32 0.0, %v6287_v52 }
 0x302   :  { %v2458_v20 = vmul.f32 0.0, %v6312_v18  ;;  %v2447_v33 = vrot.slane %v2441_v55, 5  ;;  %v2244_v40 = vadd.f32 %v6313_v32, %v5509_v37  ;;  %v2420_v26 = vadd.f32 %v2414_v53, %v2403_v44 }
 0x303   :  { %v2421_v47 = vadd.f32 %v2413_v43, %v2404_v8  ;;  %v2431_v3 = vsel %vm2062_vm15, %v2429_v60, %v2430_v1  ;;  %v2463_v5 = vrot.slane %v2457_v0, 6  ;;  %v6314_v59 = vrot.slane %v5518_v7, 1 }
 0x304   :  { %v2464_v22 = vrot.slane %v2458_v20, 6  ;;  %v2437_v34 = vadd.f32 %v2431_v3, %v2420_v26  ;;  %v2250_v18 = vadd.f32 %v2247_v13, %v2244_v40  ;;  %v2448_v17 = vsel %vm2080_vm1, %v2446_v31, %v2447_v33 }
 0x305   :  { %v2438_v27 = vadd.f32 %v2430_v1, %v2421_v47  ;;  %v6315_v52 = vrot.slane %v5527_v35, 2  ;;  %v6316_v20 = vrot.slane %v5551_v50, 3  ;;  %v6317_v0 = vrot.slane %v5561_v57, 4 }
 0x306   :  { %v2454_v16 = vadd.f32 %v2448_v17, %v2437_v34  ;;  %v2267_v55 = vadd.f32 %v6314_v59, %v2250_v18  ;;  %v2465_v24 = vsel %vm2098_vm2, %v2463_v5, %v2464_v22  ;;  %v6318_v7 = vrot.slane %v5577_v4, 5 }
 0x307   :  { %v2455_v36 = vadd.f32 %v2447_v33, %v2438_v27  ;;  %v6319_v32 = vrot.slane %v5589_v23, 6  ;;  %v6320_v35 = vrot.slane %v5600_v42, 7 }
 0x308   :  { %v2471_v37 = vadd.f32 %v2465_v24, %v2454_v16  ;;  %v2284_v44 = vadd.f32 %v6315_v52, %v2267_v55 }
 0x309   :  { %v2472_v53 = vadd.f32 %v2464_v22, %v2455_v36 }
 0x30a   :  { %v3782_v60 = vmul.f32 -1.442695, %v2471_v37  ;;  %v2301_v3 = vadd.f32 %v6316_v20, %v2284_v44 }
 0x30b   :  { %v3783_v40 = vmul.f32 -1.442695, %v2472_v53 }
 0x30c   :  { %3828 = vpow2.f32 %v3782_v60  ;;  %v2318_v8 = vadd.f32 %v6317_v0, %v2301_v3 }
 0x30d   :  { %3830 = vpow2.f32 %v3783_v40 }
 0x30e   :  { %v2335_v31 = vadd.f32 %v6318_v7, %v2318_v8 }
 0x310   :  { %v2352_v26 = vadd.f32 %v6319_v32, %v2335_v31 }
 0x312   :  { %v3829_v13 = vpop.eup %3828  ;;  %v2365_v47 = vadd.f32 %v6320_v35, %v2352_v26 }
 0x313   :  { %v3831_v5 = vpop.eup %3830  ;;  %v2483_v34 = vadd.f32 1.0, %v3829_v13 }
 0x314   :  { %v2484_v50 = vadd.f32 1.0, %v3831_v5  ;;  %v2371_v18 = vadd.f32 %v5610_v56, %v2365_v47 }
 0x315   :  { %3832 = vrcp.f32 %v2483_v34  ;;  %v2497_v24 = vand.u32 2147483648, %v2483_v34  ;;  %v2495_v60 = vand.u32 2147483647, %v2483_v34  ;;  %vm2491_vm6 = vweird.f32 %v2483_v34 }
 0x316   :  { %3834 = vrcp.f32 %v2484_v50  ;;  %v2388_v57 = vadd.f32 %v2379_v11, %v2371_v18  ;;  %v2512_v20 = vand.u32 2147483648, %v2484_v50  ;;  %v2510_v56 = vand.u32 2147483647, %v2484_v50 }
 0x317   :  { %vm2506_vm8 = vweird.f32 %v2484_v50  ;;  %vm2496_vm9 = vcmp.eq.f32.partialorder %v2495_v60, 8.507059e+37  ;;  %v6338_v60 = vld [vmem:[#allocation41_spill] sm:$0xff] }
 0x318   :  { %v2405_v27 = vadd.f32 %v2396_v2, %v2388_v57  ;;  %v2498_v2 = vor.u32 1.1754944e-38, %v2497_v24  ;;  %vm2511_vm11 = vcmp.eq.f32.partialorder %v2510_v56, 8.507059e+37  ;;  %v6332_v24 = vld [vmem:[#allocation44_spill] sm:$0xff]  ;;  %v6342_v56 = vld [vmem:[#allocation47_spill] sm:$0xff] }
 0x31a   :  { %v2422_v16 = vadd.f32 %v2413_v43, %v2405_v27 }
 0x31b   :  { %v3833_v17 = vpop.eup %3832 }
 0x31c   :  { %v3835_v4 = vpop.eup %3834  ;;  %v2487_v59 = vmul.f32 %v3833_v17, %v2483_v34  ;;  %v2439_v23 = vadd.f32 %v2430_v1, %v2422_v16  ;;  %vm2492_vm4 = vweird.f32 %v3833_v17 }
 0x31d   :  { %v2502_v55 = vmul.f32 %v3835_v4, %v2484_v50  ;;  %vm2507_vm5 = vweird.f32 %v3835_v4  ;;  %vm2493_vm7 = vmor %vm2491_vm6, %vm2492_vm4 }
 0x31e   :  { %v2488_v36 = vsub.f32 1.0, %v2487_v59  ;;  %v2456_v42 = vadd.f32 %v2447_v33, %v2439_v23  ;;  %vm2508_vm10 = vmor %vm2506_vm8, %vm2507_vm5  ;;  %v2513_v33 = vor.u32 1.1754944e-38, %v2512_v20  ;;  %v6324_v59 = vld [vmem:[#allocation19_spill] sm:$0xff]  ;;  %v6340_v20 = vld [vmem:[#allocation46_spill] sm:$0xff] }
 0x31f   :  { %v2503_v52 = vsub.f32 1.0, %v2502_v55  ;;  %v6325_v55 = vld [vmem:[#allocation20_spill] sm:$0xff] }
 0x320   :  { %v2489_v44 = vmul.f32 %v3833_v17, %v2488_v36  ;;  %v5674_v40 = vadd.f32 %v2464_v22, %v2456_v42  ;;  %v6330_v36 = vld [vmem:[#allocation31_spill] sm:$0xff]  ;;  %v6334_v42 = vld [vmem:[#allocation37_spill] sm:$0xff] }
 0x321   :  { %v2504_v3 = vmul.f32 %v3835_v4, %v2503_v52  ;;  %v6333_v52 = vld [vmem:[#allocation39_spill] sm:$0xff] }
 0x322   :  { %v2490_v11 = vadd.f32 %v3833_v17, %v2489_v44  ;;  %v3784_v1 = vmul.f32 -1.442695, %v5674_v40  ;;  %v6336_v44 = vld [vmem:[#allocation38_spill] sm:$0xff] }
 0x323   :  { %v2505_v43 = vadd.f32 %v3835_v4, %v2504_v3  ;;  %v6341_v3 = vld [vmem:[#allocation48_spill] sm:$0xff] }
 0x324   :  { %v2494_v0 = vsel %vm2493_vm7, %v3833_v17, %v2490_v11  ;;  %3836 = vpow2.f32 %v3784_v1 }
 0x325   :  { %v2499_v8 = vsel %vm2496_vm9, %v2498_v2, %v2494_v0  ;;  %v2509_v7 = vsel %vm2508_vm10, %v3835_v4, %v2505_v43  ;;  %v6322_v4 = vld [vmem:[#allocation17_spill] sm:$0xff] }
 0x326   :  { %v2514_v31 = vsel %vm2511_vm11, %v2513_v33, %v2509_v7  ;;  %v5677_v32 = vmul.f32 %v2499_v8, %v2471_v37 }
 0x327   :  { %v5679_v22 = vmul.f32 %v2514_v31, %v2472_v53 }
 0x328   :  { %v2553_v26 = vrot.slane %v5677_v32, 1 }
 0x329   :  { %v2554_v13 = vrot.slane %v5679_v22, 1 }
 0x32a   :  { %v3837_v35 = vpop.eup %3836 }
 0x32b   :  { %v2555_v47 = vsel %vm2008_vm12, %v2553_v26, %v2554_v13  ;;  %v2485_v34 = vadd.f32 1.0, %v3837_v35 }
 0x32c   :  { %v5686_v5 = vand.u32 4294901760, %v2555_v47 }
 0x32d   :  { %3838 = vrcp.f32 %v2485_v34  ;;  %v2527_v16 = vand.u32 2147483648, %v2485_v34  ;;  %vm2521_vm14 = vweird.f32 %v2485_v34 }
 0x32e   :  { %2706 = vmatmul.f32.vlgmr.msra.gmra.mxu1 %v5686_v5  ;;  %v2593_v50 = vsub.f32 %v2555_v47, %v5686_v5 }
 0x32f   :  { %3170 = vmatpush.msra.mxu1 %v4961_v30 }
 0x330   :  { %2764 = vmatmul.f32.vlgmr.msrb.gmra.mxu2 %v2593_v50  ;;  %v2594_v37 = vand.u32 4294901760, %v2593_v50 }
 0x331   :  { %3172 = vmatpush.msra.mxu1 %v4963_v51  ;;  %3217 = vmatpush.msrb.mxu2 %v5014_v38  ;;  %v6321_v38 = vld [vmem:[#allocation16_spill] sm:$0xff] }
 0x332   :  { %2808 = vmatmul.f32.vlgmr.msrb.gmra.mxu3 %v2594_v37  ;;  %v2595_v53 = vsub.f32 %v2593_v50, %v2594_v37 }
 0x333   :  { %3174 = vmatpush.msra.mxu1 %v4965_v46  ;;  %3288 = vmatpush.msrb.mxu3 %v4961_v30  ;;  %v3839_v18 = vpop.eup %3838 }
 0x334   :  { %v2596_v57 = vand.u32 4294901760, %v2595_v53  ;;  %3221 = vmatpush.msrb.mxu2 %v5017_v45  ;;  %v2517_v27 = vmul.f32 %v3839_v18, %v2485_v34  ;;  %vm2522_vm13 = vweird.f32 %v3839_v18  ;;  %v2525_v45 = vand.u32 2147483647, %v2485_v34 }
 0x335   :  { %3176 = vmatpush.msra.mxu1 %v4978_v12  ;;  %3290 = vmatpush.msrb.mxu3 %v4963_v51  ;;  %vm2523_vm15 = vmor %vm2521_vm14, %vm2522_vm13 }
 0x336   :  { %2597 = vmatmul.f32.vlgmr.msra.gmra.mxu0 %v2596_v57  ;;  %3225 = vmatpush.msrb.mxu2 %v5020_v54  ;;  %v2518_v17 = vsub.f32 1.0, %v2517_v27  ;;  %v6323_v54 = vld [vmem:[#allocation18_spill] sm:$0xff]  ;;  %vm2526_vm1 = vcmp.eq.f32.partialorder %v2525_v45, 8.507059e+37 }
 0x337   :  { %3112 = vmatpush.msra.mxu0 %v6321_v38  ;;  %3178 = vmatpush.msra.mxu1 %v6269_v58 }
 0x338   :  { %3292 = vmatpush.msrb.mxu3 %v4965_v46  ;;  %3229 = vmatpush.msrb.mxu2 %v5025_v61  ;;  %v2519_v30 = vmul.f32 %v3839_v18, %v2518_v17  ;;  %v2528_v46 = vor.u32 1.1754944e-38, %v2527_v16 }
 0x339   :  { %3115 = vmatpush.msra.mxu0 %v6322_v4  ;;  %3180 = vmatpush.msra.mxu1 %v6271_v6 }
 0x33a   :  { %3294 = vmatpush.msrb.mxu3 %v4978_v12  ;;  %3233 = vmatpush.msrb.mxu2 %v5028_v9  ;;  %v2520_v51 = vadd.f32 %v3839_v18, %v2519_v30 }
 0x33b   :  { %3118 = vmatpush.msra.mxu0 %v6323_v54  ;;  %3182 = vmatpush.msra.mxu1 %v6274_v41 }
 0x33c   :  { %3296 = vmatpush.msrb.mxu3 %v6269_v58  ;;  %3237 = vmatpush.msrb.mxu2 %v5031_v62  ;;  %v2524_v61 = vsel %vm2523_vm15, %v3839_v18, %v2520_v51  ;;  %v6326_v58 = vld [vmem:[#allocation21_spill] sm:$0xff] }
 0x33d   :  { %3121 = vmatpush.msra.mxu0 %v6324_v59  ;;  %3184 = vmatpush.msra.mxu1 %v6277_v48  ;;  %v2529_v12 = vsel %vm2526_vm1, %v2528_v46, %v2524_v61 }
 0x33e   :  { %3298 = vmatpush.msrb.mxu3 %v6271_v6  ;;  %3241 = vmatpush.msrb.mxu2 %v5116_v39  ;;  %v5716_v9 = vmul.f32 %v2529_v12, %v5674_v40  ;;  %v6327_v6 = vld [vmem:[#allocation24_spill] sm:$0xff] }
 0x33f   :  { %3124 = vmatpush.msra.mxu0 %v6325_v55  ;;  %3186 = vmatpush.msra.mxu1 %v6280_v15 }
 0x340   :  { %3300 = vmatpush.msrb.mxu3 %v6274_v41  ;;  %3245 = vmatpush.msrb.mxu2 %v6270_v21  ;;  %v2556_v62 = vrot.slane %v5716_v9, 1  ;;  %v6328_v21 = vld [vmem:[#allocation28_spill] sm:$0xff] }
 0x341   :  { %3127 = vmatpush.msra.mxu0 %v6326_v58  ;;  %3188 = vmatpush.msra.mxu1 %v6281_v10 }
 0x342   :  { %3302 = vmatpush.msrb.mxu3 %v6277_v48  ;;  %3249 = vmatpush.msrb.mxu2 %v6273_v49  ;;  %v2557_v39 = vsel %vm2008_vm12, %v2554_v13, %v2556_v62  ;;  %v6329_v49 = vld [vmem:[#allocation30_spill] sm:$0xff] }
 0x343   :  { %3130 = vmatpush.msra.mxu0 %v6327_v6  ;;  %3190 = vmatpush.msra.mxu1 %v6286_v19  ;;  %v2600_v41 = vand.u32 4294901760, %v2557_v39 }
 0x344   :  { %3304 = vmatpush.msrb.mxu3 %v6280_v15  ;;  %3253 = vmatpush.msrb.mxu2 %v6276_v28  ;;  %v6331_v15 = vld [vmem:[#allocation35_spill] sm:$0xff] }
 0x345   :  { %3133 = vmatpush.msra.mxu0 %v6328_v21  ;;  %3192 = vmatpush.msra.mxu1 %v5138_v25  ;;  %v2601_v48 = vsub.f32 %v2557_v39, %v2600_v41 }
 0x346   :  { %2710 = vmatmul.f32.gmra.mxu1 %v2600_v41  ;;  %3306 = vmatpush.msrb.mxu3 %v6281_v10 }
 0x347   :  { %3136 = vmatpush.msra.mxu0 %v6329_v49  ;;  %3194 = vmatpush.msra.mxu1 %v5145_v63  ;;  %v2602_v23 = vand.u32 4294901760, %v2601_v48  ;;  %v3383_v49 = vld [vmem:[%s6111_s12 + $0x78] sm:$0xff] }
 0x348   :  { %2769 = vmatmul.f32.gmra.mxu2 %v2601_v48  ;;  %3308 = vmatpush.msrb.mxu3 %v6286_v19  ;;  %v6335_v19 = vld [vmem:[#allocation45_spill] sm:$0xff] }
 0x349   :  { %3139 = vmatpush.msra.mxu0 %v6330_v36  ;;  %3196 = vmatpush.msra.mxu1 %v5201_v14  ;;  %v2603_v28 = vsub.f32 %v2601_v48, %v2602_v23 }
 0x34a   :  { %2814 = vmatmul.f32.gmra.mxu3 %v2602_v23  ;;  %3257 = vmatpush.msrb.mxu2 %v6278_v29  ;;  %v6337_v29 = vld [vmem:[#allocation40_spill] sm:$0xff]  ;;  %v5784_v23 = vand.u32 4294901760, %v3383_v49 }
 0x34b   :  { %3142 = vmatpush.msra.mxu0 %v6331_v15  ;;  %3198 = vmatpush.msra.mxu1 %v6332_v24  ;;  %v2604_v10 = vand.u32 4294901760, %v2603_v28 }
 0x34c   :  { %3310 = vmatpush.msrb.mxu3 %v5138_v25  ;;  %3261 = vmatpush.msrb.mxu2 %v6333_v52  ;;  %v6339_v25 = vld [vmem:[#allocation43_spill] sm:$0xff]  ;;  %v5787_v36 = vsub.f32 %v3383_v49, %v5784_v23 }
 0x34d   :  { %3145 = vmatpush.msra.mxu0 %v6334_v42  ;;  %3200 = vmatpush.msra.mxu1 %v6335_v19  ;;  %v3382_v42 = vld [vmem:[%s6111_s12 + $0x70] sm:$0xff] }
 0x34e   :  { %2605 = vmatmul.f32.gmra.mxu0 %v2604_v10  ;;  %2924 = vmatmul.f32.vlgmr.msrb.gmra.mxu1 %v5686_v5  ;;  %v3449_v28 = vand.u32 4294901760, %v5787_v36 }
 0x34f   :  { %3148 = vmatpush.msra.mxu0 %v6336_v44  ;;  %3312 = vmatpush.msrb.mxu3 %v5145_v63  ;;  %v6343_v63 = vld [vmem:[#allocation49_spill] sm:$0xff]  ;;  %v3381_v44 = vld [vmem:[%s6111_s12 + $0x68] sm:$0xff] }
 0x350   :  { %3265 = vmatpush.msrb.mxu2 %v6337_v29  ;;  %v3450_v15 = vsub.f32 %v5787_v36, %v3449_v28 }
 0x351   :  { %3151 = vmatpush.msra.mxu0 %v6338_v60  ;;  %3314 = vmatpush.msrb.mxu3 %v5201_v14 }
 0x352   :  { %3269 = vmatpush.msrb.mxu2 %v6339_v25  ;;  %v5807_v25 = vand.u32 4294901760, %v3381_v44 }
 0x353   :  { %3154 = vmatpush.msra.mxu0 %v6340_v20  ;;  %3316 = vmatpush.msrb.mxu3 %v6332_v24  ;;  %v3451_v24 = vand.u32 4294901760, %v3450_v15 }
 0x354   :  { %3273 = vmatpush.msrb.mxu2 %v6341_v3  ;;  %v3380_v3 = vld [vmem:[%s6111_s12 + $0x60] sm:$0xff] }
 0x355   :  { %3157 = vmatpush.msra.mxu0 %v6342_v56  ;;  %3318 = vmatpush.msrb.mxu3 %v6335_v19  ;;  %v5799_v19 = vand.u32 4294901760, %v3382_v42 }
 0x356   :  { %2883 = vmatmul.f32.vlgmr.msrb.gmra.mxu0 %v5686_v5  ;;  %2928 = vmatmul.f32.gmra.mxu1 %v2600_v41 }
 0x357   :  { %3277 = vmatpush.msrb.mxu2 %v6343_v63  ;;  %3399 = vmatpush.msrb.mxu0 %v5784_v23  ;;  %v5805_v60 = vsub.f32 %v3382_v42, %v5799_v19  ;;  %v3372_v42 = vld [vmem:[%s6111_s12 + $0x20] sm:$0xff] }
 0x358   :  { %3452 = vmatpush.msrb.mxu1 %v3451_v24 }
 0x359   :  { %3401 = vmatpush.msrb.mxu0 %v5799_v19 }
 0x35b   :  { %3403 = vmatpush.msrb.mxu0 %v5807_v25 }
 0x35e   :  { %2887 = vmatmul.f32.gmra.mxu0 %v2600_v41 }
 0x3ab   :  { %v2707_v40 = vpop.f32.mrf.mxu1 }
 0x3b3   :  { %v2598_v14 = vpop.f32.mrf.mxu0  ;;  %v2765_v43 = vpop.f32.mrf.mxu2 }
 0x3b4   :  { %v2708_v2 = vadd.f32 %v2707_v40, %v2598_v14  ;;  %v3455_v40 = vand.u32 4294901760, %v5805_v60  ;;  %v5816_v14 = vsub.f32 %v3381_v44, %v5807_v25 }
 0x3b5   :  { %v2809_v33 = vpop.f32.mrf.mxu3 }
 0x3b6   :  { %v2766_v0 = vadd.f32 %v2765_v43, %v2708_v2  ;;  %v3379_v2 = vld [vmem:[%s6111_s12 + $0x58] sm:$0xff]  ;;  %v3456_v43 = vsub.f32 %v5805_v60, %v3455_v40 }
 0x3b8   :  { %v2810_v8 = vadd.f32 %v2809_v33, %v2766_v0  ;;  %v5833_v33 = vand.u32 4294901760, %v3379_v2 }
 0x3c3   :  { %v2711_v11 = vpop.f32.mrf.mxu1 }
 0x3cb   :  { %v2606_v1 = vpop.f32.mrf.mxu0  ;;  %v2925_v31 = vpop.f32.mrf.mxu1 }
 0x3cc   :  { %v2712_v7 = vadd.f32 %v2711_v11, %v2606_v1  ;;  %v2770_v35 = vpop.f32.mrf.mxu2  ;;  %v5818_v11 = vand.u32 4294901760, %v3380_v3  ;;  %v3461_v1 = vand.u32 4294901760, %v5816_v14 }
 0x3cd   :  { %v2815_v34 = vpop.f32.mrf.mxu3 }
 0x3ce   :  { %v2771_v47 = vadd.f32 %v2770_v35, %v2712_v7  ;;  %v5831_v0 = vsub.f32 %v3380_v3, %v5818_v11  ;;  %3405 = vmatpush.msrb.mxu0 %v5818_v11  ;;  %v3378_v7 = vld [vmem:[%s6111_s12 + $0x50] sm:$0xff]  ;;  %v5920_v3 = vand.u32 4294901760, %v3372_v42 }
 0x3d0   :  { %v2816_v50 = vadd.f32 %v2815_v34, %v2771_v47  ;;  %v3467_v35 = vand.u32 4294901760, %v5831_v0  ;;  %v5846_v47 = vsub.f32 %v3379_v2, %v5833_v33  ;;  %3407 = vmatpush.msrb.mxu0 %v5833_v33  ;;  %v3377_v34 = vld [vmem:[%s6111_s12 + $0x48] sm:$0xff] }
 0x3d3   :  { %v2884_v26 = vpop.f32.mrf.mxu0  ;;  %v2929_v57 = vpop.f32.mrf.mxu1 }
 0x3d4   :  { %v2885_v13 = vadd.f32 %v2884_v26, %v2810_v8  ;;  %v3457_v26 = vand.u32 4294901760, %v3456_v43 }
 0x3d6   :  { %v2926_v5 = vadd.f32 %v2925_v31, %v2885_v13  ;;  %v3462_v13 = vsub.f32 %v5816_v14, %v3461_v1  ;;  %3458 = vmatpush.msrb.mxu1 %v3457_v26 }
 0x3d8   :  { %v2934_v37 = vrot.slane %v2926_v5, 7  ;;  %v5850_v5 = vand.u32 4294901760, %v3378_v7 }
 0x3da   :  { %v5764_v17 = vsub.f32 %v5677_v32, %v2934_v37  ;;  %3409 = vmatpush.msrb.mxu0 %v5850_v5 }
 0x3db   :  { %v2888_v53 = vpop.f32.mrf.mxu0 }
 0x3dc   :  { %v2889_v18 = vadd.f32 %v2888_v53, %v2816_v50  ;;  %v2943_v45 = vmul.f32 %v5764_v17, %v5764_v17  ;;  %v3463_v50 = vand.u32 4294901760, %v3462_v13  ;;  %v3473_v53 = vand.u32 4294901760, %v5846_v47 }
 0x3de   :  { %v2930_v27 = vadd.f32 %v2929_v57, %v2889_v18  ;;  %v2949_v46 = vrot.slane %v2943_v45, 1  ;;  %v5860_v18 = vand.u32 4294901760, %v3377_v34  ;;  %3464 = vmatpush.msrb.mxu1 %v3463_v50  ;;  %v3369_v50 = vld [vmem:[%s6111_s12 + $0x8] sm:$0xff] }
 0x3e0   :  { %v2935_v38 = vrot.slane %v2930_v27, 7  ;;  %3411 = vmatpush.msrb.mxu0 %v5860_v18 }
 0x3e2   :  { %v2936_v16 = vsel %vm2114_vm3, %v2934_v37, %v2935_v38  ;;  %v5768_v30 = vsub.f32 %v5716_v9, %v2935_v38  ;;  %v3468_v37 = vsub.f32 %v5831_v0, %v3467_v35  ;;  %v5864_v38 = vsub.f32 %v3378_v7, %v5850_v5 }
 0x3e3   :  { %v5773_v4 = vsub.f32 %v5679_v22, %v2936_v16  ;;  %v3376_v16 = vld [vmem:[%s6111_s12 + $0x40] sm:$0xff] }
 0x3e4   :  { %v2945_v51 = vmul.f32 %v5768_v30, %v5768_v30 }
 0x3e5   :  { %v2944_v54 = vmul.f32 %v5773_v4, %v5773_v4 }
 0x3e6   :  { %v2952_v32 = vrot.slane %v2945_v51, 1 }
 0x3e7   :  { %v2950_v61 = vrot.slane %v2944_v54, 1  ;;  %v3469_v54 = vand.u32 4294901760, %v3468_v37 }
 0x3e9   :  { %v2951_v59 = vsel %vm2008_vm12, %v2949_v46, %v2950_v61  ;;  %v2953_v12 = vsel %vm2008_vm12, %v2950_v61, %v2952_v32  ;;  %v3474_v32 = vsub.f32 %v5846_v47, %v3473_v53  ;;  %v5875_v46 = vsub.f32 %v3377_v34, %v5860_v18  ;;  %3470 = vmatpush.msrb.mxu1 %v3469_v54 }
 0x3ea   :  { %v2988_v9 = vand.u32 4294901760, %v2951_v59  ;;  %v2996_v55 = vand.u32 4294901760, %v2953_v12  ;;  %v5877_v61 = vand.u32 4294901760, %v3376_v16  ;;  %v5943_v34 = vsub.f32 %v3372_v42, %v5920_v3 }
 0x3ec   :  { %3102 = vmatmul.f32.vlgmr.msra.gmra.mxu3 %v2988_v9  ;;  %v2989_v62 = vsub.f32 %v2951_v59, %v2988_v9  ;;  %v2997_v58 = vsub.f32 %v2953_v12, %v2996_v55  ;;  %v3479_v12 = vand.u32 4294901760, %v5864_v38  ;;  %3413 = vmatpush.msrb.mxu0 %v5877_v61 }
 0x3ed   :  { %3612 = vmatpush.msra.mxu3 %v5784_v23 }
 0x3ee   :  { %3160 = vmatmul.f32.vlgmr.msra.gmra.mxu0 %v2989_v62  ;;  %v2990_v22 = vand.u32 4294901760, %v2989_v62  ;;  %v2998_v41 = vand.u32 4294901760, %v2997_v58 }
 0x3ef   :  { %3614 = vmatpush.msra.mxu3 %v5799_v19 }
 0x3f0   :  { %3204 = vmatmul.f32.vlgmr.msra.gmra.mxu1 %v2990_v22  ;;  %v2991_v39 = vsub.f32 %v2989_v62, %v2990_v22  ;;  %v2999_v21 = vsub.f32 %v2997_v58, %v2998_v41  ;;  %v3475_v62 = vand.u32 4294901760, %v3474_v32  ;;  %v3485_v22 = vand.u32 4294901760, %v5875_v46 }
 0x3f1   :  { %3616 = vmatpush.msra.mxu3 %v5807_v25  ;;  %v3515_v32 = vand.u32 4294901760, %v5943_v34 }
 0x3f2   :  { %v2992_v6 = vand.u32 4294901760, %v2991_v39  ;;  %v3000_v48 = vand.u32 4294901760, %v2999_v21  ;;  %v3480_v21 = vsub.f32 %v5864_v38, %v3479_v12  ;;  %3476 = vmatpush.msrb.mxu1 %v3475_v62  ;;  %v3486_v49 = vsub.f32 %v5875_v46, %v3485_v22 }
 0x3f3   :  { %3618 = vmatpush.msra.mxu3 %v5818_v11 }
 0x3f4   :  { %2993 = vmatmul.f32.vlgmr.msra.gmra.mxu2 %v2992_v6  ;;  %3106 = vmatmul.f32.gmra.mxu3 %v2996_v55  ;;  %v3487_v2 = vand.u32 4294901760, %v3486_v49 }
 0x3f5   :  { %3554 = vmatpush.msra.mxu2 %v5787_v36  ;;  %3620 = vmatpush.msra.mxu3 %v5833_v33 }
 0x3f6   :  { %3165 = vmatmul.f32.gmra.mxu0 %v2997_v58  ;;  %v5887_v58 = vsub.f32 %v3376_v16, %v5877_v61 }
 0x3f7   :  { %3557 = vmatpush.msra.mxu2 %v5805_v60  ;;  %3622 = vmatpush.msra.mxu3 %v5850_v5 }
 0x3f8   :  { %3210 = vmatmul.f32.gmra.mxu1 %v2998_v41  ;;  %v3491_v15 = vand.u32 4294901760, %v5887_v58 }
 0x3f9   :  { %3560 = vmatpush.msra.mxu2 %v5816_v14  ;;  %3624 = vmatpush.msra.mxu3 %v5860_v18  ;;  %v3806_v14 = vld [vmem:[%s6110_s10] ss:$0 sm:$0xff] }
 0x3fa   :  { %v3492_v43 = vsub.f32 %v5887_v58, %v3491_v15 }
 0x3fb   :  { %3563 = vmatpush.msra.mxu2 %v5831_v0  ;;  %3626 = vmatpush.msra.mxu3 %v5877_v61 }
 0x3fc   :  { %3001 = vmatmul.f32.gmra.mxu2 %v3000_v48  ;;  %3320 = vmatmul.f32.vlgmr.msrb.gmra.mxu3 %v2988_v9  ;;  %v3374_v48 = vld [vmem:[%s6111_s12 + $0x30] sm:$0xff] }
 0x3fd   :  { %3566 = vmatpush.msra.mxu2 %v5846_v47 }
 0x3ff   :  { %3569 = vmatpush.msra.mxu2 %v5864_v38 }
 0x401   :  { %3572 = vmatpush.msra.mxu2 %v5875_v46 }
 0x403   :  { %3575 = vmatpush.msra.mxu2 %v5887_v58 }
 0x404   :  { %3279 = vmatmul.f32.vlgmr.msrb.gmra.mxu2 %v2988_v9  ;;  %3324 = vmatmul.f32.gmra.mxu3 %v2996_v55  ;;  %v3375_v9 = vld [vmem:[%s6111_s12 + $0x38] sm:$0xff] }
 0x405   :  { %v5889_v39 = vand.u32 4294901760, %v3375_v9 }
 0x407   :  { %v5905_v24 = vsub.f32 %v3375_v9, %v5889_v39  ;;  %3415 = vmatpush.msrb.mxu0 %v5889_v39  ;;  %3628 = vmatpush.msra.mxu3 %v5889_v39  ;;  %v3368_v9 = vld [vmem:[%s6111_s12] sm:$0xff] }
 0x409   :  { %3578 = vmatpush.msra.mxu2 %v5905_v24 }
 0x40c   :  { %3283 = vmatmul.f32.gmra.mxu2 %v2996_v55 }
 0x46b   :  { %v3161_v56 = vpop.f32.mrf.mxu0 }
 0x46d   :  { %v3205_v31 = vpop.f32.mrf.mxu1 }
 0x46f   :  { %v3103_v10 = vpop.f32.mrf.mxu3 }
 0x473   :  { %v3166_v55 = vpop.f32.mrf.mxu0 }
 0x477   :  { %v2994_v52 = vpop.f32.mrf.mxu2  ;;  %v3107_v29 = vpop.f32.mrf.mxu3 }
 0x478   :  { %v3104_v20 = vadd.f32 %v3103_v10, %v2994_v52  ;;  %v5907_v10 = vand.u32 4294901760, %v3374_v48  ;;  %v3373_v52 = vld [vmem:[%s6111_s12 + $0x28] sm:$0xff] }
 0x47a   :  { %v3162_v8 = vadd.f32 %v3161_v56, %v3104_v20  ;;  %v5918_v20 = vand.u32 4294901760, %v3373_v52  ;;  %v3371_v56 = vld [vmem:[%s6111_s12 + $0x18] sm:$0xff]  ;;  %v5932_v7 = vsub.f32 %v3374_v48, %v5907_v10  ;;  %3417 = vmatpush.msrb.mxu0 %v5907_v10  ;;  %3630 = vmatpush.msra.mxu3 %v5907_v10 }
 0x47c   :  { %v3206_v27 = vadd.f32 %v3205_v31, %v3162_v8  ;;  %v3497_v8 = vand.u32 4294901760, %v5905_v24  ;;  %v3370_v31 = vld [vmem:[%s6111_s12 + $0x10] sm:$0xff]  ;;  %v5940_v13 = vsub.f32 %v3373_v52, %v5918_v20  ;;  %v3503_v16 = vand.u32 4294901760, %v5932_v7  ;;  %3419 = vmatpush.msrb.mxu0 %v5918_v20  ;;  %3581 = vmatpush.msra.mxu2 %v5932_v7 }
 0x47d   :  { %3632 = vmatpush.msra.mxu3 %v5918_v20  ;;  %v3516_v52 = vsub.f32 %v5943_v34, %v3515_v32 }
 0x47e   :  { %v3509_v54 = vand.u32 4294901760, %v5940_v13  ;;  %3421 = vmatpush.msrb.mxu0 %v5920_v3  ;;  %3584 = vmatpush.msra.mxu2 %v5940_v13 }
 0x47f   :  { %v3002_v63 = vpop.f32.mrf.mxu2  ;;  %v3321_v45 = vpop.f32.mrf.mxu3  ;;  %3634 = vmatpush.msra.mxu3 %v5920_v3 }
 0x480   :  { %v3108_v57 = vadd.f32 %v3107_v29, %v3002_v63  ;;  %v3481_v29 = vand.u32 4294901760, %v3480_v21  ;;  %v3211_v63 = vpop.f32.mrf.mxu1  ;;  %v5971_v21 = vand.u32 4294901760, %v3369_v50  ;;  %v3510_v49 = vsub.f32 %v5940_v13, %v3509_v54  ;;  %3587 = vmatpush.msra.mxu2 %v5943_v34 }
 0x482   :  { %v3167_v6 = vadd.f32 %v3166_v55, %v3108_v57  ;;  %3482 = vmatpush.msrb.mxu1 %v3481_v29  ;;  %v3493_v57 = vand.u32 4294901760, %v3492_v43 }
 0x484   :  { %v3212_v26 = vadd.f32 %v3211_v63, %v3167_v6  ;;  %3488 = vmatpush.msrb.mxu1 %v3487_v2  ;;  %v3504_v6 = vsub.f32 %v5932_v7, %v3503_v16  ;;  %v5986_v63 = vsub.f32 %v3369_v50, %v5971_v21  ;;  %v5989_v2 = vand.u32 4294901760, %v3368_v9 }
 0x486   :  { %3494 = vmatpush.msrb.mxu1 %v3493_v57  ;;  %v3505_v29 = vand.u32 4294901760, %v3504_v6 }
 0x487   :  { %v3280_v51 = vpop.f32.mrf.mxu2  ;;  %v3325_v55 = vpop.f32.mrf.mxu3 }
 0x488   :  { %v3281_v59 = vadd.f32 %v3280_v51, %v3206_v27  ;;  %v3498_v27 = vsub.f32 %v5905_v24, %v3497_v8 }
 0x48a   :  { %v3322_v41 = vadd.f32 %v3321_v45, %v3281_v59  ;;  %v5953_v45 = vand.u32 4294901760, %v3371_v56  ;;  %v5959_v59 = vand.u32 4294901760, %v3370_v31  ;;  %v3499_v62 = vand.u32 4294901760, %v3498_v27 }
 0x48b   :  { %v3533_v27 = vand.u32 4294901760, %v5986_v63 }
 0x48c   :  { %v5916_v44 = vmax.f32 %v3322_v41, 1e-06  ;;  %v5969_v41 = vsub.f32 %v3371_v56, %v5953_v45  ;;  %v5982_v42 = vsub.f32 %v3370_v31, %v5959_v59  ;;  %3500 = vmatpush.msrb.mxu1 %v3499_v62  ;;  %3423 = vmatpush.msrb.mxu0 %v5953_v45  ;;  %v6008_v62 = vsub.f32 %v3368_v9, %v5989_v2 }
 0x48d   :  { %3636 = vmatpush.msra.mxu3 %v5953_v45 }
 0x48e   :  { %3840 = vrsqrt.f32 %v5916_v44  ;;  %v3521_v56 = vand.u32 4294901760, %v5969_v41  ;;  %v3527_v31 = vand.u32 4294901760, %v5982_v42  ;;  %3506 = vmatpush.msrb.mxu1 %v3505_v29  ;;  %3425 = vmatpush.msrb.mxu0 %v5959_v59  ;;  %vm3336_vm4 = vweird.f32 %v5916_v44 }
 0x48f   :  { %v3284_v37 = vpop.f32.mrf.mxu2  ;;  %3590 = vmatpush.msra.mxu2 %v5969_v41  ;;  %3638 = vmatpush.msra.mxu3 %v5959_v59 }
 0x490   :  { %v3285_v51 = vadd.f32 %v3284_v37, %v3212_v26  ;;  %v3511_v37 = vand.u32 4294901760, %v3510_v49  ;;  %v3522_v50 = vsub.f32 %v5969_v41, %v3521_v56  ;;  %v3534_v49 = vsub.f32 %v5986_v63, %v3533_v27  ;;  %3427 = vmatpush.msrb.mxu0 %v5971_v21 }
 0x491   :  { %3593 = vmatpush.msra.mxu2 %v5982_v42  ;;  %3640 = vmatpush.msra.mxu3 %v5971_v21 }
 0x492   :  { %v3326_v48 = vadd.f32 %v3325_v55, %v3285_v51  ;;  %v3517_v51 = vand.u32 4294901760, %v3516_v52  ;;  %v3528_v55 = vsub.f32 %v5982_v42, %v3527_v31  ;;  %3512 = vmatpush.msrb.mxu1 %v3511_v37  ;;  %v3539_v52 = vand.u32 4294901760, %v6008_v62  ;;  %3429 = vmatpush.msrb.mxu0 %v5989_v2 }
 0x493   :  { %3596 = vmatpush.msra.mxu2 %v5986_v63  ;;  %3642 = vmatpush.msra.mxu3 %v5989_v2 }
 0x494   :  { %v3841_v43 = vpop.eup %3840  ;;  %v5992_v26 = vmax.f32 %v3326_v48, 1e-06  ;;  %v3523_v48 = vand.u32 4294901760, %v3522_v50  ;;  %3518 = vmatpush.msrb.mxu1 %v3517_v51  ;;  %v3529_v9 = vand.u32 4294901760, %v3528_v55  ;;  %v3540_v37 = vsub.f32 %v6008_v62, %v3539_v52  ;;  %3659 = vmatpush.msra.mxu0 %v3449_v28 }
 0x495   :  { %v3331_v57 = vmul.f32 %v3841_v43, %v5916_v44  ;;  %vm3337_vm2 = vweird.f32 %v3841_v43  ;;  %3599 = vmatpush.msra.mxu2 %v6008_v62 }
 0x496   :  { %3842 = vrsqrt.f32 %v5992_v26  ;;  %3524 = vmatpush.msrb.mxu1 %v3523_v48  ;;  %3663 = vmatpush.msra.mxu0 %v3455_v40  ;;  %vm3338_vm5 = vmor %vm3336_vm4, %vm3337_vm2  ;;  %vm3346_vm7 = vweird.f32 %v5992_v26 }
 0x497   :  { %v3332_v6 = vmul.f32 %v3841_v43, %v3331_v57 }
 0x498   :  { %3530 = vmatpush.msrb.mxu1 %v3529_v9  ;;  %3667 = vmatpush.msra.mxu0 %v3461_v1 }
 0x499   :  { %v3333_v29 = vmul.f32 0.5, %v3332_v6  ;;  %v3535_v6 = vand.u32 4294901760, %v3534_v49 }
 0x49a   :  { %3671 = vmatpush.msra.mxu0 %v3467_v35 }
 0x49b   :  { %v3334_v57 = vsub.f32 1.5, %v3333_v29  ;;  %v3541_v29 = vand.u32 4294901760, %v3540_v37  ;;  %3536 = vmatpush.msrb.mxu1 %v3535_v6 }
 0x49c   :  { %v3843_v50 = vpop.eup %3842  ;;  %3675 = vmatpush.msra.mxu0 %v3473_v53 }
 0x49d   :  { %v3335_v51 = vmul.f32 %v3841_v43, %v3334_v57  ;;  %v3341_v55 = vmul.f32 %v3843_v50, %v5992_v26  ;;  %3542 = vmatpush.msrb.mxu1 %v3541_v29  ;;  %vm3347_vm6 = vweird.f32 %v3843_v50 }
 0x49e   :  { %vm3348_vm8 = vmor %vm3346_vm7, %vm3347_vm6  ;;  %3679 = vmatpush.msra.mxu0 %v3479_v12 }
 0x49f   :  { %v3342_v48 = vmul.f32 %v3843_v50, %v3341_v55  ;;  %v3339_v49 = vsel %vm3338_vm5, %v3841_v43, %v3335_v51  ;;  %3730 = vmatpush.msra.mxu1 %v5784_v23 }
 0x4a0   :  { %v3352_v28 = vrot.slane %v3339_v49, 7  ;;  %3683 = vmatpush.msra.mxu0 %v3485_v22 }
 0x4a1   :  { %v3343_v36 = vmul.f32 0.5, %v3342_v48  ;;  %3732 = vmatpush.msra.mxu1 %v5799_v19 }
 0x4a2   :  { %v3358_v40 = vmul.f32 %v3352_v28, %v5764_v17  ;;  %3687 = vmatpush.msra.mxu0 %v3491_v15 }
 0x4a3   :  { %v3344_v57 = vsub.f32 1.5, %v3343_v36  ;;  %3734 = vmatpush.msra.mxu1 %v5807_v25 }
 0x4a4   :  { %v3365_v17 = vmul.f32 %v3806_v14, %v3358_v40  ;;  %3691 = vmatpush.msra.mxu0 %v3497_v8 }
 0x4a5   :  { %v3345_v60 = vmul.f32 %v3843_v50, %v3344_v57  ;;  %3736 = vmatpush.msra.mxu1 %v5818_v11 }
 0x4a6   :  { %3695 = vmatpush.msra.mxu0 %v3503_v16 }
 0x4a7   :  { %v3349_v1 = vsel %vm3348_vm8, %v3843_v50, %v3345_v60  ;;  %3738 = vmatpush.msra.mxu1 %v5833_v33 }
 0x4a8   :  { %v3353_v23 = vrot.slane %v3349_v1, 7  ;;  %3699 = vmatpush.msra.mxu0 %v3509_v54 }
 0x4a9   :  { %3740 = vmatpush.msra.mxu1 %v5850_v5 }
 0x4aa   :  { %v3354_v19 = vsel %vm2114_vm3, %v3352_v28, %v3353_v23  ;;  %v3360_v0 = vmul.f32 %v3353_v23, %v5768_v30  ;;  %v3391_v30 = vrot.slane %v3365_v17, 1  ;;  %3703 = vmatpush.msra.mxu0 %v3515_v32 }
 0x4ab   :  { %v3359_v35 = vmul.f32 %v3354_v19, %v5773_v4  ;;  %3742 = vmatpush.msra.mxu1 %v5860_v18 }
 0x4ac   :  { %v3367_v47 = vmul.f32 %v3806_v14, %v3360_v0  ;;  %3707 = vmatpush.msra.mxu0 %v3521_v56 }
 0x4ad   :  { %v3366_v25 = vmul.f32 %v3806_v14, %v3359_v35  ;;  %3744 = vmatpush.msra.mxu1 %v5877_v61 }
 0x4ae   :  { %v3394_v11 = vrot.slane %v3367_v47, 1  ;;  %3711 = vmatpush.msra.mxu0 %v3527_v31 }
 0x4af   :  { %v3392_v53 = vrot.slane %v3366_v25, 1  ;;  %3746 = vmatpush.msra.mxu1 %v5889_v39 }
 0x4b0   :  { %3715 = vmatpush.msra.mxu0 %v3533_v27 }
 0x4b1   :  { %v3393_v4 = vsel %vm2008_vm12, %v3391_v30, %v3392_v53  ;;  %v3395_v33 = vsel %vm2008_vm12, %v3392_v53, %v3394_v11  ;;  %3748 = vmatpush.msra.mxu1 %v5907_v10  ;;  %v3807_v10 = vld [vmem:[%s6112_s13] ss:$0 sm:$0xff] }
 0x4b2   :  { %v3430_v38 = vand.u32 4294901760, %v3393_v4  ;;  %v3438_v5 = vand.u32 4294901760, %v3395_v33  ;;  %3719 = vmatpush.msra.mxu0 %v3539_v52 }
 0x4b3   :  { %3750 = vmatpush.msra.mxu1 %v5918_v20 }
 0x4b4   :  { %3544 = vmatmul.f32.vlgmr.msrb.gmra.mxu1 %v3430_v38  ;;  %v3431_v46 = vsub.f32 %v3393_v4, %v3430_v38  ;;  %v3439_v61 = vsub.f32 %v3395_v33, %v3438_v5 }
 0x4b5   :  { %3752 = vmatpush.msra.mxu1 %v5920_v3 }
 0x4b6   :  { %3602 = vmatmul.f32.vlgmr.msra.gmra.mxu2 %v3431_v46  ;;  %v3432_v18 = vand.u32 4294901760, %v3431_v46  ;;  %v3440_v58 = vand.u32 4294901760, %v3439_v61 }
 0x4b7   :  { %3754 = vmatpush.msra.mxu1 %v5953_v45 }
 0x4b8   :  { %3646 = vmatmul.f32.vlgmr.msra.gmra.mxu3 %v3432_v18  ;;  %v3433_v12 = vsub.f32 %v3431_v46, %v3432_v18  ;;  %v3441_v39 = vsub.f32 %v3439_v61, %v3440_v58 }
 0x4b9   :  { %3756 = vmatpush.msra.mxu1 %v5959_v59 }
 0x4ba   :  { %v3434_v22 = vand.u32 4294901760, %v3433_v12  ;;  %v3442_v15 = vand.u32 4294901760, %v3441_v39 }
 0x4bb   :  { %3758 = vmatpush.msra.mxu1 %v5971_v21 }
 0x4bc   :  { %3435 = vmatmul.f32.vlgmr.msrb.gmra.mxu0 %v3434_v22  ;;  %3548 = vmatmul.f32.gmra.mxu1 %v3438_v5 }
 0x4bd   :  { %3760 = vmatpush.msra.mxu1 %v5989_v2 }
 0x4be   :  { %3607 = vmatmul.f32.gmra.mxu2 %v3439_v61 }
 0x4c0   :  { %3652 = vmatmul.f32.gmra.mxu3 %v3440_v58 }
 0x4c4   :  { %3443 = vmatmul.f32.gmra.mxu0 %v3442_v15  ;;  %3762 = vmatmul.f32.vlgmr.msra.gmra.mxu1 %v3430_v38 }
 0x4cc   :  { %3721 = vmatmul.f32.vlgmr.msra.gmra.mxu0 %v3430_v38  ;;  %3766 = vmatmul.f32.gmra.mxu1 %v3438_v5 }
 0x4d4   :  { %3725 = vmatmul.f32.gmra.mxu0 %v3438_v5 }
 0x531   :  { %v3545_v24 = vpop.f32.mrf.mxu1 }
 0x539   :  { %v3436_v44 = vpop.f32.mrf.mxu0  ;;  %v3549_v3 = vpop.f32.mrf.mxu1 }
 0x53a   :  { %v3437_v20 = vadd.f32 %v3807_v10, %v3436_v44  ;;  %v3603_v7 = vpop.f32.mrf.mxu2 }
 0x53b   :  { %v3647_v45 = vpop.f32.mrf.mxu3 }
 0x53c   :  { %v3546_v8 = vadd.f32 %v3545_v24, %v3437_v20 }
 0x53e   :  { %v3604_v34 = vadd.f32 %v3603_v7, %v3546_v8 }
 0x540   :  { %v3648_v54 = vadd.f32 %v3647_v45, %v3604_v34 }
 0x541   :  { %v3444_v13 = vpop.f32.mrf.mxu0  ;;  %v3763_v59 = vpop.f32.mrf.mxu1 }
 0x542   :  { %v3445_v16 = vadd.f32 %v3807_v10, %v3444_v13  ;;  %v3608_v42 = vpop.f32.mrf.mxu2 }
 0x543   :  { %v3653_v2 = vpop.f32.mrf.mxu3 }
 0x544   :  { %v3550_v32 = vadd.f32 %v3549_v3, %v3445_v16 }
 0x546   :  { %v3609_v56 = vadd.f32 %v3608_v42, %v3550_v32 }
 0x548   :  { %v3654_v43 = vadd.f32 %v3653_v2, %v3609_v56 }
 0x549   :  { %v3722_v41 = vpop.f32.mrf.mxu0  ;;  %v3767_v27 = vpop.f32.mrf.mxu1 }
 0x54a   :  { %v3723_v21 = vadd.f32 %v3722_v41, %v3648_v54 }
 0x54c   :  { %v3764_v63 = vadd.f32 %v3763_v59, %v3723_v21 }
 0x54e   :  { %3770 = vst.msk [vmem:[%s6113_s14] sm:$0xff] %vm61_vm0, %v3764_v63 }
 0x551   :  { %v3726_v26 = vpop.f32.mrf.mxu0 }
 0x552   :  { %v3727_v31 = vadd.f32 %v3726_v26, %v3654_v43 }
 0x554   :  { %v3768_v62 = vadd.f32 %v3767_v27, %v3727_v31 }
 0x556   :  { %3771 = vst.msk [vmem:[%s6113_s14 + $0x8] sm:$0xff] %vm61_vm0, %v3768_v62 }

</bundles_post_ra>
